<compile_context>
chip_gen: v7x
topology: tpu7x:2x2x1
jax: 0.10.0
libtpu: 0.0.40
codegen_flags: <defaults>
</compile_context>

<pallas_src>
import jax
import jax.numpy as jnp
import numpy as np
from jax.experimental import pallas as pl
from jax.experimental.pallas import tpu as pltpu

EPS = 1e-5
LANES = 128


def adaptive_block_kernel(
    p1_ref,      # (M, 9*Cin)      bf16  conv1 im2col patches (built in wrapper)
    w1s_ref,     # (9*Cin, 2*Cp)   bf16  [conv1 | 1x1 shortcut] fused weight
    g1_ref,      # (1, Cp) f32     bn1 gamma (zero-padded past Cout)
    be1_ref,     # (1, Cp) f32     bn1 beta
    w2_ref,      # (9*Cp, Cp)      bf16  conv2 weight (zero-padded channels)
    g2_ref,      # (1, Cp) f32     bn2 gamma
    be2_ref,     # (1, Cp) f32     bn2 beta
    bs_ref,      # (1, Cp) f32     shortcut bias
    comp_ref,    # (N,)    f32     per-sample complexity, SMEM
    out_ref,     # (M, Cp) f32     lane-dense output (NHWC rows, padded channels)
    y1pad_ref,   # scratch (N, H+2, W+2, Cp) f32
):
    N, Hp, Wp, Cp = y1pad_ref.shape
    H, W = Hp - 2, Wp - 2
    HW = H * W
    M = N * HW

    inv_m = 1.0 / M

    def bn_affine(v, g_row, be_row):
        # Train-mode BatchNorm2d folded into one per-channel FMA.
        # Single-pass stats: var = E[x^2] - E[x]^2 (biased, eps=1e-5).
        # Conv outputs are ~zero-mean so f32 cancellation is not a concern here;
        # zero-padded channels give var=0 -> rsqrt(eps) * gamma(=0) -> exact zeros.
        s = jnp.sum(v, axis=0, keepdims=True)
        ss = jnp.sum(v * v, axis=0, keepdims=True)
        mean = s * inv_m
        var = ss * inv_m - mean * mean
        scale = g_row * jax.lax.rsqrt(var + EPS)   # rsqrt -> EUP (free slot)
        shift = be_row - mean * scale
        return v * scale + shift

    # ---- conv1 (+ fused 1x1 shortcut): one MXU matmul -> (M, 2*Cp) f32 ----------
    # conv biases b1/b2 are omitted on purpose: a per-channel constant bias is
    # exactly cancelled by the following train-mode BatchNorm mean subtraction.
    z = jnp.dot(p1_ref[...], w1s_ref[...], preferred_element_type=jnp.float32)
    y1 = jnp.maximum(bn_affine(z[:, :Cp], g1_ref[...], be1_ref[...]), 0.0)
    identity = z[:, Cp:] + bs_ref[...]

    # ---- stage y1 into the padded scratch; zero ONLY the 1-wide halo ------------
    y1pad_ref[:, 1:H + 1, 1:W + 1, :] = y1.reshape(N, H, W, Cp)
    zrow = jnp.zeros((N, 1, Wp, Cp), y1pad_ref.dtype)
    zcol = jnp.zeros((N, H, 1, Cp), y1pad_ref.dtype)
    y1pad_ref[:, 0:1, :, :] = zrow
    y1pad_ref[:, H + 1:Hp, :, :] = zrow
    y1pad_ref[:, 1:H + 1, 0:1, :] = zcol
    y1pad_ref[:, 1:H + 1, W + 1:Wp, :] = zcol

    # ---- conv2 via in-kernel im2col: 9 lane-aligned taps -> one K=9*Cp matmul ---
    taps = [
        y1pad_ref[:, dy:dy + H, dx:dx + W, :].astype(jnp.bfloat16)
        for dy in range(3) for dx in range(3)
    ]
    p2 = jnp.concatenate(taps, axis=-1).reshape(M, 9 * Cp)
    y2 = jnp.dot(p2, w2_ref[...], preferred_element_type=jnp.float32)
    y2 = bn_affine(y2, g2_ref[...], be2_ref[...])

    # ---- per-sample complexity scale + residual + ReLU; lane-dense stores -------
    for n in range(N):
        r0 = n * HW
        c = comp_ref[n]                          # SMEM scalar -> vector splat
        blk = jnp.maximum(y2[r0:r0 + HW, :] * c + identity[r0:r0 + HW, :], 0.0)
        out_ref[r0:r0 + HW, :] = blk.astype(out_ref.dtype)


def _round_up(x, m):
    return ((x + m - 1) // m) * m


@jax.jit
def adaptive_block_pallas(x_nchw, complexity, p):
    """x_nchw: (N, Cin, H, W) f32, complexity: (N,) f32, p: parameter dict."""
    N, Cin, H, W = x_nchw.shape
    Cout = p["w1"].shape[-1]
    Cp = _round_up(max(Cout, LANES), LANES)      # lane-dense channel padding
    M = N * H * W
    K1 = 9 * Cin
    K2 = 9 * Cp

    # --- wrapper glue (fuses into one XLA gather): NCHW->NHWC, pad, conv1 im2col.
    # The result is the tiny MXU-ready (M, 9*Cin) bf16 operand; no padded activation
    # round-trips through HBM.
    x = jnp.transpose(x_nchw, (0, 2, 3, 1))
    xp = jnp.pad(x, ((0, 0), (1, 1), (1, 1), (0, 0)))
    taps = [xp[:, dy:dy + H, dx:dx + W, :] for dy in range(3) for dx in range(3)]
    patches1 = jnp.concatenate(taps, axis=-1).reshape(M, K1).astype(jnp.bfloat16)

    # --- conv1 weight fused with the 1x1 shortcut into one (K1, 2*Cp) matrix.
    # The shortcut lives in the second Cp columns, on the rows of the CENTER tap
    # (dy=dx=1), which is exactly the un-padded input.
    w1s = jnp.zeros((K1, 2 * Cp), jnp.float32)
    w1s = w1s.at[:, :Cout].set(p["w1"].reshape(K1, Cout))
    w1s = w1s.at[4 * Cin:5 * Cin, Cp:Cp + Cout].set(p["ws"])
    w1s = w1s.astype(jnp.bfloat16)

    # --- conv2 weight, zero-padded to lane-dense channels, im2col row order.
    w2p = jnp.zeros((9, Cp, Cp), jnp.float32)
    w2p = w2p.at[:, :Cout, :Cout].set(p["w2"].reshape(9, Cout, Cout))
    w2p = w2p.reshape(K2, Cp).astype(jnp.bfloat16)

    def crow(v):  # (Cout,) -> (1, Cp), zero padded
        return jnp.zeros((1, Cp), jnp.float32).at[0, :Cout].set(v)

    comp = complexity.astype(jnp.float32).reshape(N)

    flops = 2 * M * K1 * (2 * Cp) + 2 * M * K2 * Cp
    bytes_accessed = (M * K1 * 2 + K1 * 2 * Cp * 2 + K2 * Cp * 2
                      + 5 * Cp * 4 + N * 4 + M * Cp * 4)

    out2d = pl.pallas_call(
        adaptive_block_kernel,
        out_shape=jax.ShapeDtypeStruct((M, Cp), jnp.float32),
        in_specs=[
            pl.BlockSpec(memory_space=pltpu.MemorySpace.VMEM),   # patches1
            pl.BlockSpec(memory_space=pltpu.MemorySpace.VMEM),   # w1s
            pl.BlockSpec(memory_space=pltpu.MemorySpace.VMEM),   # g1
            pl.BlockSpec(memory_space=pltpu.MemorySpace.VMEM),   # be1
            pl.BlockSpec(memory_space=pltpu.MemorySpace.VMEM),   # w2
            pl.BlockSpec(memory_space=pltpu.MemorySpace.VMEM),   # g2
            pl.BlockSpec(memory_space=pltpu.MemorySpace.VMEM),   # be2
            pl.BlockSpec(memory_space=pltpu.MemorySpace.VMEM),   # bs
            pl.BlockSpec(memory_space=pltpu.MemorySpace.SMEM),   # complexity
        ],
        out_specs=pl.BlockSpec(memory_space=pltpu.MemorySpace.VMEM),
        scratch_shapes=[pltpu.VMEM((N, H + 2, W + 2, Cp), jnp.float32)],
        compiler_params=pltpu.CompilerParams(vmem_limit_bytes=32 * 1024 * 1024),
        cost_estimate=pl.CostEstimate(flops=flops, transcendentals=2 * Cp,
                                      bytes_accessed=bytes_accessed),
    )(patches1, w1s, crow(p["g1"]), crow(p["be1"]), w2p,
      crow(p["g2"]), crow(p["be2"]), crow(p["bs"]), comp)

    out = out2d.reshape(N, H, W, Cp)[..., :Cout]
    return jnp.transpose(out, (0, 3, 1, 2))     # back to NCHW


# ----------------------------- pure-JAX reference ------------------------------
def adaptive_block_reference(x, complexity, p):
    dn = ("NCHW", "HWIO", "NCHW")

    def conv(xx, w, b, pad):
        y = jax.lax.conv_general_dilated(xx, w, (1, 1), pad, dimension_numbers=dn)
        return y + b.reshape(1, -1, 1, 1)

    def bn(xx, g, be):
        mean = jnp.mean(xx, axis=(0, 2, 3), keepdims=True)
        var = jnp.mean((xx - mean) ** 2, axis=(0, 2, 3), keepdims=True)
        inv = 1.0 / jnp.sqrt(var + EPS)
        return (xx - mean) * inv * g.reshape(1, -1, 1, 1) + be.reshape(1, -1, 1, 1)

    cin, cout = p["ws"].shape
    identity = conv(x, p["ws"].reshape(1, 1, cin, cout), p["bs"], "VALID")
    h = jax.nn.relu(bn(conv(x, p["w1"], p["b1"], [(1, 1), (1, 1)]), p["g1"], p["be1"]))
    h = bn(conv(h, p["w2"], p["b2"], [(1, 1), (1, 1)]), p["g2"], p["be2"])
    h = h * complexity.reshape(-1, 1, 1, 1)
    return jax.nn.relu(h + identity)


# ----------------------------- deterministic init ------------------------------
def init_params(key, cin, cout):
    ks = jax.random.split(key, 6)
    lim1 = 1.0 / np.sqrt(cin * 9.0)
    lim2 = 1.0 / np.sqrt(cout * 9.0)
    lims = 1.0 / np.sqrt(cin * 1.0)
    return dict(
        w1=jax.random.uniform(ks[0], (3, 3, cin, cout), jnp.float32, -lim1, lim1),
        b1=jax.random.uniform(ks[1], (cout,), jnp.float32, -lim1, lim1),
        g1=jnp.ones((cout,), jnp.float32),
        be1=jnp.zeros((cout,), jnp.float32),
        w2=jax.random.uniform(ks[2], (3, 3, cout, cout), jnp.float32, -lim2, lim2),
        b2=jax.random.uniform(ks[3], (cout,), jnp.float32, -lim2, lim2),
        g2=jnp.ones((cout,), jnp.float32),
        be2=jnp.zeros((cout,), jnp.float32),
        ws=jax.random.uniform(ks[4], (cin, cout), jnp.float32, -lims, lims),
        bs=jax.random.uniform(ks[5], (cout,), jnp.float32, -lims, lims),
    )


if __name__ == "__main__":
    key = jax.random.PRNGKey(0)
    k_x, k_c, k_p = jax.random.split(key, 3)

    N, Cin, Cout, H, W = 2, 4, 8, 16, 16
    x = jax.random.normal(k_x, (N, Cin, H, W), jnp.float32)            # NCHW, like PyTorch
    complexity = jax.random.uniform(k_c, (N,), jnp.float32, 0.5, 1.5)
    params = init_params(k_p, Cin, Cout)

    out = jax.block_until_ready(adaptive_block_pallas(x, complexity, params))
    ref = jax.block_until_ready(adaptive_block_reference(x, complexity, params))

    assert out.shape == (N, Cout, H, W)
    # Kernel uses bf16 MXU operands (f32 accumulate) through two conv+BN layers;
    # compared against a pure-f32 reference, so the tolerance is bf16-appropriate.
    np.testing.assert_allclose(np.asarray(out), np.asarray(ref), rtol=5e-2, atol=5e-2)
    print("KERNEL_OK")
</pallas_src>

<mosaic_0001>
module attributes {stable_mosaic.version = 11 : i64} {
  func.func @adaptive_block_kernel(%arg0: memref<512x36xbf16, #tpu.memory_space<vmem>>, %arg1: memref<36x256xbf16, #tpu.memory_space<vmem>>, %arg2: memref<1x128xf32, #tpu.memory_space<vmem>>, %arg3: memref<1x128xf32, #tpu.memory_space<vmem>>, %arg4: memref<1152x128xbf16, #tpu.memory_space<vmem>>, %arg5: memref<1x128xf32, #tpu.memory_space<vmem>>, %arg6: memref<1x128xf32, #tpu.memory_space<vmem>>, %arg7: memref<1x128xf32, #tpu.memory_space<vmem>>, %arg8: memref<2xf32, #tpu.memory_space<smem>>, %arg9: memref<512x128xf32, #tpu.memory_space<vmem>>, %arg10: memref<2x18x18x128xf32, #tpu.memory_space<vmem>>) attributes {dimension_semantics = [], scalar_prefetch = 0 : i64, scratch_operands = 1 : i64, tpu.core_type = #tpu.core_type<tc>} {
    %c0 = arith.constant 0 : index
    %c0_0 = arith.constant 0 : index
    %0 = vector.load %arg0[%c0, %c0_0] : memref<512x36xbf16, #tpu.memory_space<vmem>>, vector<512x36xbf16>
    %c0_1 = arith.constant 0 : index
    %c0_2 = arith.constant 0 : index
    %1 = vector.load %arg1[%c0_1, %c0_2] : memref<36x256xbf16, #tpu.memory_space<vmem>>, vector<36x256xbf16>
    %cst = arith.constant dense<0.000000e+00> : vector<512x256xf32>
    %2 = tpu.matmul %0, %1, %cst {dimension_numbers = #tpu.dot_dimension_numbers<[1], [0], [0], [1], [0, 0, 1, 1], [], []>} : vector<512x36xbf16>, vector<36x256xbf16>, vector<512x256xf32> -> vector<512x256xf32>
    %3 = vector.extract_strided_slice %2 {offsets = [0, 0], sizes = [512, 128], strides = [1, 1]} : vector<512x256xf32> to vector<512x128xf32>
    %c0_3 = arith.constant 0 : index
    %c0_4 = arith.constant 0 : index
    %4 = vector.load %arg2[%c0_3, %c0_4] : memref<1x128xf32, #tpu.memory_space<vmem>>, vector<1x128xf32>
    %c0_5 = arith.constant 0 : index
    %c0_6 = arith.constant 0 : index
    %5 = vector.load %arg3[%c0_5, %c0_6] : memref<1x128xf32, #tpu.memory_space<vmem>>, vector<1x128xf32>
    %cst_7 = arith.constant dense<0.000000e+00> : vector<128xf32>
    %6 = vector.multi_reduction <add>, %3, %cst_7 [0] : vector<512x128xf32> to vector<128xf32>
    %7 = vector.shape_cast %6 : vector<128xf32> to vector<1x128xf32>
    %8 = arith.mulf %3, %3 : vector<512x128xf32>
    %cst_8 = arith.constant dense<0.000000e+00> : vector<128xf32>
    %9 = vector.multi_reduction <add>, %8, %cst_8 [0] : vector<512x128xf32> to vector<128xf32>
    %10 = vector.shape_cast %9 : vector<128xf32> to vector<1x128xf32>
    %cst_9 = arith.constant 0.001953125 : f32
    %11 = vector.broadcast %cst_9 : f32 to vector<1x128xf32>
    %12 = arith.mulf %7, %11 : vector<1x128xf32>
    %cst_10 = arith.constant 0.001953125 : f32
    %13 = vector.broadcast %cst_10 : f32 to vector<1x128xf32>
    %14 = arith.mulf %10, %13 : vector<1x128xf32>
    %15 = arith.mulf %12, %12 : vector<1x128xf32>
    %16 = arith.subf %14, %15 : vector<1x128xf32>
    %cst_11 = arith.constant 9.99999974E-6 : f32
    %17 = vector.broadcast %cst_11 : f32 to vector<1x128xf32>
    %18 = arith.addf %16, %17 : vector<1x128xf32>
    %19 = math.rsqrt %18 : vector<1x128xf32>
    %20 = arith.mulf %4, %19 : vector<1x128xf32>
    %21 = arith.mulf %12, %20 : vector<1x128xf32>
    %22 = arith.subf %5, %21 : vector<1x128xf32>
    %23 = vector.broadcast %20 : vector<1x128xf32> to vector<512x128xf32>
    %24 = arith.mulf %3, %23 : vector<512x128xf32>
    %25 = vector.broadcast %22 : vector<1x128xf32> to vector<512x128xf32>
    %26 = arith.addf %24, %25 : vector<512x128xf32>
    %cst_12 = arith.constant 0.000000e+00 : f32
    %27 = vector.broadcast %cst_12 : f32 to vector<512x128xf32>
    %28 = arith.maximumf %26, %27 : vector<512x128xf32>
    %29 = vector.extract_strided_slice %2 {offsets = [0, 128], sizes = [512, 128], strides = [1, 1]} : vector<512x256xf32> to vector<512x128xf32>
    %c0_13 = arith.constant 0 : index
    %c0_14 = arith.constant 0 : index
    %30 = vector.load %arg7[%c0_13, %c0_14] : memref<1x128xf32, #tpu.memory_space<vmem>>, vector<1x128xf32>
    %31 = vector.broadcast %30 : vector<1x128xf32> to vector<512x128xf32>
    %32 = arith.addf %29, %31 : vector<512x128xf32>
    %33 = vector.shape_cast %28 : vector<512x128xf32> to vector<2x16x16x128xf32>
    %c0_15 = arith.constant 0 : index
    %c1 = arith.constant 1 : index
    %c1_16 = arith.constant 1 : index
    %c0_17 = arith.constant 0 : index
    %34 = vector.load %arg10[%c0_15, %c1, %c1_16, %c0_17] : memref<2x18x18x128xf32, #tpu.memory_space<vmem>>, vector<2x16x16x128xf32>
    tpu.vector_store %arg10[%c0_15, %c1, %c1_16, %c0_17], %33 {strides = array<i32>} : memref<2x18x18x128xf32, #tpu.memory_space<vmem>>, vector<2x16x16x128xf32>,
    %cst_18 = arith.constant 0.000000e+00 : f32
    %35 = vector.broadcast %cst_18 : f32 to vector<2x1x18x128xf32>
    %cst_19 = arith.constant 0.000000e+00 : f32
    %36 = vector.broadcast %cst_19 : f32 to vector<2x16x1x128xf32>
    %c0_20 = arith.constant 0 : index
    %c0_21 = arith.constant 0 : index
    %c0_22 = arith.constant 0 : index
    %c0_23 = arith.constant 0 : index
    %37 = vector.load %arg10[%c0_20, %c0_21, %c0_22, %c0_23] : memref<2x18x18x128xf32, #tpu.memory_space<vmem>>, vector<2x1x18x128xf32>
    tpu.vector_store %arg10[%c0_20, %c0_21, %c0_22, %c0_23], %35 {strides = array<i32>} : memref<2x18x18x128xf32, #tpu.memory_space<vmem>>, vector<2x1x18x128xf32>,
    %c0_24 = arith.constant 0 : index
    %c17 = arith.constant 17 : index
    %c0_25 = arith.constant 0 : index
    %c0_26 = arith.constant 0 : index
    %38 = vector.load %arg10[%c0_24, %c17, %c0_25, %c0_26] : memref<2x18x18x128xf32, #tpu.memory_space<vmem>>, vector<2x1x18x128xf32>
    tpu.vector_store %arg10[%c0_24, %c17, %c0_25, %c0_26], %35 {strides = array<i32>} : memref<2x18x18x128xf32, #tpu.memory_space<vmem>>, vector<2x1x18x128xf32>,
    %c0_27 = arith.constant 0 : index
    %c1_28 = arith.constant 1 : index
    %c0_29 = arith.constant 0 : index
    %c0_30 = arith.constant 0 : index
    %39 = vector.load %arg10[%c0_27, %c1_28, %c0_29, %c0_30] : memref<2x18x18x128xf32, #tpu.memory_space<vmem>>, vector<2x16x1x128xf32>
    tpu.vector_store %arg10[%c0_27, %c1_28, %c0_29, %c0_30], %36 {strides = array<i32>} : memref<2x18x18x128xf32, #tpu.memory_space<vmem>>, vector<2x16x1x128xf32>,
    %c0_31 = arith.constant 0 : index
    %c1_32 = arith.constant 1 : index
    %c17_33 = arith.constant 17 : index
    %c0_34 = arith.constant 0 : index
    %40 = vector.load %arg10[%c0_31, %c1_32, %c17_33, %c0_34] : memref<2x18x18x128xf32, #tpu.memory_space<vmem>>, vector<2x16x1x128xf32>
    tpu.vector_store %arg10[%c0_31, %c1_32, %c17_33, %c0_34], %36 {strides = array<i32>} : memref<2x18x18x128xf32, #tpu.memory_space<vmem>>, vector<2x16x1x128xf32>,
    %c0_35 = arith.constant 0 : index
    %c0_36 = arith.constant 0 : index
    %c0_37 = arith.constant 0 : index
    %c0_38 = arith.constant 0 : index
    %41 = vector.load %arg10[%c0_35, %c0_36, %c0_37, %c0_38] : memref<2x18x18x128xf32, #tpu.memory_space<vmem>>, vector<2x16x16x128xf32>
    %42 = arith.truncf %41 : vector<2x16x16x128xf32> to vector<2x16x16x128xbf16>
    %c0_39 = arith.constant 0 : index
    %c0_40 = arith.constant 0 : index
    %c1_41 = arith.constant 1 : index
    %c0_42 = arith.constant 0 : index
    %43 = vector.load %arg10[%c0_39, %c0_40, %c1_41, %c0_42] : memref<2x18x18x128xf32, #tpu.memory_space<vmem>>, vector<2x16x16x128xf32>
    %44 = arith.truncf %43 : vector<2x16x16x128xf32> to vector<2x16x16x128xbf16>
    %c0_43 = arith.constant 0 : index
    %c0_44 = arith.constant 0 : index
    %c2 = arith.constant 2 : index
    %c0_45 = arith.constant 0 : index
    %45 = vector.load %arg10[%c0_43, %c0_44, %c2, %c0_45] : memref<2x18x18x128xf32, #tpu.memory_space<vmem>>, vector<2x16x16x128xf32>
    %46 = arith.truncf %45 : vector<2x16x16x128xf32> to vector<2x16x16x128xbf16>
    %c0_46 = arith.constant 0 : index
    %c1_47 = arith.constant 1 : index
    %c0_48 = arith.constant 0 : index
    %c0_49 = arith.constant 0 : index
    %47 = vector.load %arg10[%c0_46, %c1_47, %c0_48, %c0_49] : memref<2x18x18x128xf32, #tpu.memory_space<vmem>>, vector<2x16x16x128xf32>
    %48 = arith.truncf %47 : vector<2x16x16x128xf32> to vector<2x16x16x128xbf16>
    %c0_50 = arith.constant 0 : index
    %c1_51 = arith.constant 1 : index
    %c1_52 = arith.constant 1 : index
    %c0_53 = arith.constant 0 : index
    %49 = vector.load %arg10[%c0_50, %c1_51, %c1_52, %c0_53] : memref<2x18x18x128xf32, #tpu.memory_space<vmem>>, vector<2x16x16x128xf32>
    %50 = arith.truncf %49 : vector<2x16x16x128xf32> to vector<2x16x16x128xbf16>
    %c0_54 = arith.constant 0 : index
    %c1_55 = arith.constant 1 : index
    %c2_56 = arith.constant 2 : index
    %c0_57 = arith.constant 0 : index
    %51 = vector.load %arg10[%c0_54, %c1_55, %c2_56, %c0_57] : memref<2x18x18x128xf32, #tpu.memory_space<vmem>>, vector<2x16x16x128xf32>
    %52 = arith.truncf %51 : vector<2x16x16x128xf32> to vector<2x16x16x128xbf16>
    %c0_58 = arith.constant 0 : index
    %c2_59 = arith.constant 2 : index
    %c0_60 = arith.constant 0 : index
    %c0_61 = arith.constant 0 : index
    %53 = vector.load %arg10[%c0_58, %c2_59, %c0_60, %c0_61] : memref<2x18x18x128xf32, #tpu.memory_space<vmem>>, vector<2x16x16x128xf32>
    %54 = arith.truncf %53 : vector<2x16x16x128xf32> to vector<2x16x16x128xbf16>
    %c0_62 = arith.constant 0 : index
    %c2_63 = arith.constant 2 : index
    %c1_64 = arith.constant 1 : index
    %c0_65 = arith.constant 0 : index
    %55 = vector.load %arg10[%c0_62, %c2_63, %c1_64, %c0_65] : memref<2x18x18x128xf32, #tpu.memory_space<vmem>>, vector<2x16x16x128xf32>
    %56 = arith.truncf %55 : vector<2x16x16x128xf32> to vector<2x16x16x128xbf16>
    %c0_66 = arith.constant 0 : index
    %c2_67 = arith.constant 2 : index
    %c2_68 = arith.constant 2 : index
    %c0_69 = arith.constant 0 : index
    %57 = vector.load %arg10[%c0_66, %c2_67, %c2_68, %c0_69] : memref<2x18x18x128xf32, #tpu.memory_space<vmem>>, vector<2x16x16x128xf32>
    %58 = arith.truncf %57 : vector<2x16x16x128xf32> to vector<2x16x16x128xbf16>
    %59 = tpu.concatenate %42, %44, %46, %48, %50, %52, %54, %56, %58 in 3 : vector<2x16x16x128xbf16>, vector<2x16x16x128xbf16>, vector<2x16x16x128xbf16>, vector<2x16x16x128xbf16>, vector<2x16x16x128xbf16>, vector<2x16x16x128xbf16>, vector<2x16x16x128xbf16>, vector<2x16x16x128xbf16>, vector<2x16x16x128xbf16> -> vector<2x16x16x1152xbf16>
    %60 = vector.shape_cast %59 : vector<2x16x16x1152xbf16> to vector<512x1152xbf16>
    %c0_70 = arith.constant 0 : index
    %c0_71 = arith.constant 0 : index
    %61 = vector.load %arg4[%c0_70, %c0_71] : memref<1152x128xbf16, #tpu.memory_space<vmem>>, vector<1152x128xbf16>
    %cst_72 = arith.constant dense<0.000000e+00> : vector<512x128xf32>
    %62 = tpu.matmul %60, %61, %cst_72 {dimension_numbers = #tpu.dot_dimension_numbers<[1], [0], [0], [1], [0, 0, 1, 1], [], []>} : vector<512x1152xbf16>, vector<1152x128xbf16>, vector<512x128xf32> -> vector<512x128xf32>
    %c0_73 = arith.constant 0 : index
    %c0_74 = arith.constant 0 : index
    %63 = vector.load %arg5[%c0_73, %c0_74] : memref<1x128xf32, #tpu.memory_space<vmem>>, vector<1x128xf32>
    %c0_75 = arith.constant 0 : index
    %c0_76 = arith.constant 0 : index
    %64 = vector.load %arg6[%c0_75, %c0_76] : memref<1x128xf32, #tpu.memory_space<vmem>>, vector<1x128xf32>
    %cst_77 = arith.constant dense<0.000000e+00> : vector<128xf32>
    %65 = vector.multi_reduction <add>, %62, %cst_77 [0] : vector<512x128xf32> to vector<128xf32>
    %66 = vector.shape_cast %65 : vector<128xf32> to vector<1x128xf32>
    %67 = arith.mulf %62, %62 : vector<512x128xf32>
    %cst_78 = arith.constant dense<0.000000e+00> : vector<128xf32>
    %68 = vector.multi_reduction <add>, %67, %cst_78 [0] : vector<512x128xf32> to vector<128xf32>
    %69 = vector.shape_cast %68 : vector<128xf32> to vector<1x128xf32>
    %cst_79 = arith.constant 0.001953125 : f32
    %70 = vector.broadcast %cst_79 : f32 to vector<1x128xf32>
    %71 = arith.mulf %66, %70 : vector<1x128xf32>
    %cst_80 = arith.constant 0.001953125 : f32
    %72 = vector.broadcast %cst_80 : f32 to vector<1x128xf32>
    %73 = arith.mulf %69, %72 : vector<1x128xf32>
    %74 = arith.mulf %71, %71 : vector<1x128xf32>
    %75 = arith.subf %73, %74 : vector<1x128xf32>
    %cst_81 = arith.constant 9.99999974E-6 : f32
    %76 = vector.broadcast %cst_81 : f32 to vector<1x128xf32>
    %77 = arith.addf %75, %76 : vector<1x128xf32>
    %78 = math.rsqrt %77 : vector<1x128xf32>
    %79 = arith.mulf %63, %78 : vector<1x128xf32>
    %80 = arith.mulf %71, %79 : vector<1x128xf32>
    %81 = arith.subf %64, %80 : vector<1x128xf32>
    %82 = vector.broadcast %79 : vector<1x128xf32> to vector<512x128xf32>
    %83 = arith.mulf %62, %82 : vector<512x128xf32>
    %84 = vector.broadcast %81 : vector<1x128xf32> to vector<512x128xf32>
    %85 = arith.addf %83, %84 : vector<512x128xf32>
    %c0_82 = arith.constant 0 : index
    %86 = memref.load %arg8[%c0_82] : memref<2xf32, #tpu.memory_space<smem>>
    %87 = vector.extract_strided_slice %85 {offsets = [0, 0], sizes = [256, 128], strides = [1, 1]} : vector<512x128xf32> to vector<256x128xf32>
    %88 = vector.broadcast %86 : f32 to vector<256x128xf32>
    %89 = arith.mulf %87, %88 : vector<256x128xf32>
    %90 = vector.extract_strided_slice %32 {offsets = [0, 0], sizes = [256, 128], strides = [1, 1]} : vector<512x128xf32> to vector<256x128xf32>
    %91 = arith.addf %89, %90 : vector<256x128xf32>
    %cst_83 = arith.constant 0.000000e+00 : f32
    %92 = vector.broadcast %cst_83 : f32 to vector<256x128xf32>
    %93 = arith.maximumf %91, %92 : vector<256x128xf32>
    %c0_84 = arith.constant 0 : index
    %c0_85 = arith.constant 0 : index
    %94 = vector.load %arg9[%c0_84, %c0_85] : memref<512x128xf32, #tpu.memory_space<vmem>>, vector<256x128xf32>
    tpu.vector_store %arg9[%c0_84, %c0_85], %93 {strides = array<i32>} : memref<512x128xf32, #tpu.memory_space<vmem>>, vector<256x128xf32>,
    %c1_86 = arith.constant 1 : index
    %95 = memref.load %arg8[%c1_86] : memref<2xf32, #tpu.memory_space<smem>>
    %96 = vector.extract_strided_slice %85 {offsets = [256, 0], sizes = [256, 128], strides = [1, 1]} : vector<512x128xf32> to vector<256x128xf32>
    %97 = vector.broadcast %95 : f32 to vector<256x128xf32>
    %98 = arith.mulf %96, %97 : vector<256x128xf32>
    %99 = vector.extract_strided_slice %32 {offsets = [256, 0], sizes = [256, 128], strides = [1, 1]} : vector<512x128xf32> to vector<256x128xf32>
    %100 = arith.addf %98, %99 : vector<256x128xf32>
    %cst_87 = arith.constant 0.000000e+00 : f32
    %101 = vector.broadcast %cst_87 : f32 to vector<256x128xf32>
    %102 = arith.maximumf %100, %101 : vector<256x128xf32>
    %c256 = arith.constant 256 : index
    %c0_88 = arith.constant 0 : index
    %103 = vector.load %arg9[%c256, %c0_88] : memref<512x128xf32, #tpu.memory_space<vmem>>, vector<256x128xf32>
    tpu.vector_store %arg9[%c256, %c0_88], %102 {strides = array<i32>} : memref<512x128xf32, #tpu.memory_space<vmem>>, vector<256x128xf32>,
    return
  }
}

</mosaic_0001>

<bundles_post_ra>
// kernel: adaptive_block_pallas.1
= control target key start
LH: loop header
LB: loop body
LE: loop exit
PB: predicated region body
PF: predicated region fallthrough
CT: control target
= control target key end

     0   :  { %14 = vsyncpa [#allocation4], 0  ;;  %s9755_s0 = inlined_call_operand.vmem [shape: bf16[512,36], index: 0, kind: input, shape index: {}]   ;;  %s9756_s1 = inlined_call_operand.vmem [shape: bf16[36,256], index: 1, kind: input, shape index: {}]   ;;  %s9757_s2 = inlined_call_operand.vmem [shape: f32[1,128], index: 2, kind: input, shape index: {}]   ;;  %s9758_s3 = inlined_call_operand.vmem [shape: f32[1,128], index: 3, kind: input, shape index: {}]   ;;  %s9759_s4 = inlined_call_operand.vmem [shape: bf16[1152,128], index: 4, kind: input, shape index: {}]   ;;  %s9760_s5 = inlined_call_operand.vmem [shape: f32[1,128], index: 5, kind: input, shape index: {}]   ;;  %s9761_s6 = inlined_call_operand.vmem [shape: f32[1,128], index: 6, kind: input, shape index: {}]   ;;  %s9762_s7 = inlined_call_operand.vmem [shape: f32[1,128], index: 7, kind: input, shape index: {}]   ;;  %s9763_s8 = inlined_call_operand.vmem [shape: f32[2], index: 8, kind: input, shape index: {}]   ;;  %s9764_s9 = inlined_call_operand.vmem [shape: f32[512,128], index: 9, kind: output, shape index: {}]  }
   0x1   :  { %s37_s11 = sshll.u32 %s9763_s8, 4  ;;  %s38_s11 = int_to_ptr.vmem [resolvable:$true] %s37_s11 }
   0x2   :  { %s5628_s12 = scalar_lea.vmem %s38_s11, 16  ;;  %p5633_p1 = scmp.lt.s32.totalorder %s38_s11, %s38_s11 }
   0x3   :  { %p5629_p0 = scmp.ne.s32.totalorder %s38_s11, %s5628_s12  ;;  %p5634_p2 = scmp.lt.s32.totalorder %s5628_s12, %s5628_s12 }
   0x5   :  { %p5635_p3 = por %p5634_p2, %p5633_p1 }
   0x7   :  { %p5636_p4 = pnand %p5635_p3, %p5629_p0 }
   0x9   :  { %5639 = shalt.err (!%p5636_p4)
}
   0xa   :  { %s5642_s13 = smov [#allocation3]  }
   0xb   :  { %40 = dma.vmem_to_smem %s38_s11, 16, %s5642_s13, [#allocation4]  }
   0xc   :  { %5640 = dma.done.wait [#allocation4], 16  }
   0xd   :  { %5641 = vsyncadd [#allocation4], 4294967280 }
   0xe   :  { %44 = sfence }
   0xf   :  { %v5511_v0 = vld [vmem:[%s9756_s1 + $0x4] ss:$8 sps:$4 sm:$0xff]   ;;  %v5513_v1 = vld [vmem:[%s9756_s1] ss:$8 sps:$4 sm:$0xff]   ;;  %v9765_v2 = vmov 0   ;;  %vm397_vm0 = vcmask 1041408  }
  0x10   :  { %436 = vmatprep.mubr.bf16.mxu0 %v9765_v2  ;;  %5156 = vmatprep.subr.bf16.mxu1 %v9765_v2  ;;  %v5514_v3 = vld [vmem:[%s9756_s1 + $0x14] ss:$8 sps:$4 sm:$0xff]   ;;  %v114_v4 = vld [vmem:[%s9756_s1 + $0x20] sm:$0x33]  ;;  %v5516_v5 = vld [vmem:[%s9756_s1 + $0x10] ss:$8 sps:$4 sm:$0xff]  }
  0x11   :  { %404 = vmatprep.subr.bf16.mxu0 %v5511_v0  ;;  %v4928_v6 = vcombine.high %v114_v4, %v114_v4  ;;  %v4927_v7 = vcombine.low %v114_v4, %v114_v4  ;;  %v5519_v9 = vld [vmem:[%s9755_s0] sm:$0xff]   ;;  %vm300_vm1 = vcmask 293888   ;;  %v5520_v10 = vld [vmem:[%s9755_s0 + $0x8] sm:$0xff]   ;;  %v5521_v11 = vld [vmem:[%s9755_s0 + $0x10] sm:$0xff]   ;;  %s8676_s17 = sld [smem:[#allocation3]]  ;;  %s8678_s8 = sld [smem:[#allocation3 + $0x1]] }
  0x12   :  { %405 = vmatpush1.bf16.msra.mxu0 %v5513_v1  ;;  %v5522_v12 = vld [vmem:[%s9755_s0 + $0x18] sm:$0xff]   ;;  %v5523_v13 = vld [vmem:[%s9755_s0 + $0x20] sm:$0xff]   ;;  %v5524_v14 = vld [vmem:[%s9755_s0 + $0x28] sm:$0xff]  }
  0x13   :  { %406 = vmatprep.subr.bf16.mxu0 %v5514_v3  ;;  %v399_v8 = vsel %vm397_vm0, %v4927_v7, 0  ;;  %v5525_v15 = vld [vmem:[%s9755_s0 + $0x30] sm:$0xff]   ;;  %v5526_v16 = vld [vmem:[%s9755_s0 + $0x38] sm:$0xff]   ;;  %v5527_v17 = vld [vmem:[%s9755_s0 + $0x40] sm:$0xff]  }
  0x14   :  { %v5528_v18 = vld [vmem:[%s9755_s0 + $0x48] sm:$0xff]   ;;  %v5529_v19 = vld [vmem:[%s9755_s0 + $0x50] sm:$0xff]   ;;  %v5530_v20 = vld [vmem:[%s9755_s0 + $0x58] sm:$0xff]  }
  0x15   :  { %v5531_v21 = vld [vmem:[%s9755_s0 + $0x60] sm:$0xff]   ;;  %v5532_v22 = vld [vmem:[%s9755_s0 + $0x68] sm:$0xff]   ;;  %v5533_v23 = vld [vmem:[%s9755_s0 + $0x70] sm:$0xff]  }
  0x16   :  { %407 = vmatpush1.bf16.msra.mxu0 %v5516_v5  ;;  %v5534_v24 = vld [vmem:[%s9755_s0 + $0x78] sm:$0xff]   ;;  %v5535_v25 = vld [vmem:[%s9755_s0 + $0x80] sm:$0xff]   ;;  %v5536_v26 = vld [vmem:[%s9755_s0 + $0x88] sm:$0xff]  }
  0x17   :  { %4929 = vmatprep.subr.msk.bf16.mxu0 %vm397_vm0, %v4928_v6  ;;  %v5537_v27 = vld [vmem:[%s9755_s0 + $0x90] sm:$0xff]   ;;  %v5538_v28 = vld [vmem:[%s9755_s0 + $0x98] sm:$0xff]   ;;  %v5539_v29 = vld [vmem:[%s9755_s0 + $0xa0] sm:$0xff]  }
  0x18   :  { %v5540_v30 = vld [vmem:[%s9755_s0 + $0xa8] sm:$0xff]   ;;  %v5541_v31 = vld [vmem:[%s9755_s0 + $0xb0] sm:$0xff]   ;;  %v5542_v32 = vld [vmem:[%s9755_s0 + $0xb8] sm:$0xff]  }
  0x19   :  { %v5543_v33 = vld [vmem:[%s9755_s0 + $0xc0] sm:$0xff]   ;;  %v5544_v34 = vld [vmem:[%s9755_s0 + $0xc8] sm:$0xff]   ;;  %v5545_v35 = vld [vmem:[%s9755_s0 + $0xd0] sm:$0xff]  }
  0x1a   :  { %409 = vmatpush1.bf16.msra.mxu0 %v399_v8  ;;  %v5546_v38 = vld [vmem:[%s9755_s0 + $0xd8] sm:$0xff]   ;;  %v5547_v49 = vld [vmem:[%s9755_s0 + $0xe0] sm:$0xff]   ;;  %v5548_v60 = vld [vmem:[%s9755_s0 + $0xe8] sm:$0xff]  }
  0x1b   :  { %2828 = vmatprep.subr.bf16.mxu0 %v9765_v2  ;;  %v5549_v8 = vld [vmem:[%s9755_s0 + $0xf0] sm:$0xff]  }
  0x1d   :  { %4930 = vmatmul.mubr.msk.bf16.vlgmr.msra.gmra.mrb[0].mxu0 %vm300_vm1, %v5519_v9 }
  0x1e   :  { %446 = vmatprep.mubr.bf16.mxu0 %v9765_v2 }
  0x25   :  { %4931 = vmatmul.mubr.msk.bf16.gmra.mrb[4].mxu0 %vm300_vm1, %v5520_v10 }
  0x26   :  { %456 = vmatprep.mubr.bf16.mxu0 %v9765_v2 }
  0x2d   :  { %4932 = vmatmul.mubr.msk.bf16.gmra.mrb[8].mxu0 %vm300_vm1, %v5521_v11 }
  0x2e   :  { %466 = vmatprep.mubr.bf16.mxu0 %v9765_v2 }
  0x35   :  { %4933 = vmatmul.mubr.msk.bf16.gmra.mrb[12].mxu0 %vm300_vm1, %v5522_v12 }
  0x36   :  { %476 = vmatprep.mubr.bf16.mxu0 %v9765_v2 }
  0x3d   :  { %4934 = vmatmul.mubr.msk.bf16.gmra.mrb[16].mxu0 %vm300_vm1, %v5523_v13 }
  0x3e   :  { %486 = vmatprep.mubr.bf16.mxu0 %v9765_v2 }
  0x45   :  { %4935 = vmatmul.mubr.msk.bf16.gmra.mrb[20].mxu0 %vm300_vm1, %v5524_v14 }
  0x46   :  { %496 = vmatprep.mubr.bf16.mxu0 %v9765_v2 }
  0x4d   :  { %4936 = vmatmul.mubr.msk.bf16.gmra.mrb[24].mxu0 %vm300_vm1, %v5525_v15 }
  0x4e   :  { %506 = vmatprep.mubr.bf16.mxu0 %v9765_v2 }
  0x55   :  { %4937 = vmatmul.mubr.msk.bf16.gmra.mrb[28].mxu0 %vm300_vm1, %v5526_v16 }
  0x56   :  { %516 = vmatprep.mubr.bf16.mxu0 %v9765_v2 }
  0x5d   :  { %4938 = vmatmul.mubr.msk.bf16.gmra.mrb[32].mxu0 %vm300_vm1, %v5527_v17 }
  0x5e   :  { %526 = vmatprep.mubr.bf16.mxu0 %v9765_v2 }
  0x65   :  { %4939 = vmatmul.mubr.msk.bf16.gmra.mrb[36].mxu0 %vm300_vm1, %v5528_v18 }
  0x66   :  { %536 = vmatprep.mubr.bf16.mxu0 %v9765_v2 }
  0x6d   :  { %4940 = vmatmul.mubr.msk.bf16.gmra.mrb[40].mxu0 %vm300_vm1, %v5529_v19  ;;  %v5550_v19 = vld [vmem:[%s9755_s0 + $0xf8] sm:$0xff]  }
  0x6e   :  { %546 = vmatprep.mubr.bf16.mxu0 %v9765_v2 }
  0x75   :  { %4941 = vmatmul.mubr.msk.bf16.gmra.mrb[44].mxu0 %vm300_vm1, %v5530_v20 }
  0x76   :  { %556 = vmatprep.mubr.bf16.mxu0 %v9765_v2 }
  0x7d   :  { %4942 = vmatmul.mubr.msk.bf16.gmra.mrb[48].mxu0 %vm300_vm1, %v5531_v21 }
  0x7e   :  { %566 = vmatprep.mubr.bf16.mxu0 %v9765_v2 }
  0x85   :  { %4943 = vmatmul.mubr.msk.bf16.gmra.mrb[52].mxu0 %vm300_vm1, %v5532_v22 }
  0x86   :  { %576 = vmatprep.mubr.bf16.mxu0 %v9765_v2 }
  0x8d   :  { %4944 = vmatmul.mubr.msk.bf16.gmra.mrb[56].mxu0 %vm300_vm1, %v5533_v23 }
  0x8e   :  { %586 = vmatprep.mubr.bf16.mxu0 %v9765_v2 }
  0x95   :  { %4945 = vmatmul.mubr.msk.bf16.gmra.mrb[60].mxu0 %vm300_vm1, %v5534_v24 }
  0x96   :  { %596 = vmatprep.mubr.bf16.mxu0 %v9765_v2 }
  0x9d   :  { %4946 = vmatmul.mubr.msk.bf16.gmra.mrb[64].mxu0 %vm300_vm1, %v5535_v25 }
  0x9e   :  { %606 = vmatprep.mubr.bf16.mxu0 %v9765_v2 }
  0xa5   :  { %4947 = vmatmul.mubr.msk.bf16.gmra.mrb[68].mxu0 %vm300_vm1, %v5536_v26 }
  0xa6   :  { %616 = vmatprep.mubr.bf16.mxu0 %v9765_v2 }
  0xad   :  { %4948 = vmatmul.mubr.msk.bf16.gmra.mrb[72].mxu0 %vm300_vm1, %v5537_v27 }
  0xae   :  { %626 = vmatprep.mubr.bf16.mxu0 %v9765_v2 }
  0xb5   :  { %4949 = vmatmul.mubr.msk.bf16.gmra.mrb[76].mxu0 %vm300_vm1, %v5538_v28 }
  0xb6   :  { %636 = vmatprep.mubr.bf16.mxu0 %v9765_v2 }
  0xbd   :  { %4950 = vmatmul.mubr.msk.bf16.gmra.mrb[80].mxu0 %vm300_vm1, %v5539_v29 }
  0xbe   :  { %646 = vmatprep.mubr.bf16.mxu0 %v9765_v2 }
  0xc5   :  { %4951 = vmatmul.mubr.msk.bf16.gmra.mrb[84].mxu0 %vm300_vm1, %v5540_v30 }
  0xc6   :  { %656 = vmatprep.mubr.bf16.mxu0 %v9765_v2 }
  0xcd   :  { %4952 = vmatmul.mubr.msk.bf16.gmra.mrb[88].mxu0 %vm300_vm1, %v5541_v31 }
  0xce   :  { %666 = vmatprep.mubr.bf16.mxu0 %v9765_v2 }
  0xd5   :  { %4953 = vmatmul.mubr.msk.bf16.gmra.mrb[92].mxu0 %vm300_vm1, %v5542_v32 }
  0xd6   :  { %676 = vmatprep.mubr.bf16.mxu0 %v9765_v2 }
  0xdd   :  { %4954 = vmatmul.mubr.msk.bf16.gmra.mrb[96].mxu0 %vm300_vm1, %v5543_v33 }
  0xde   :  { %686 = vmatprep.mubr.bf16.mxu0 %v9765_v2 }
  0xe5   :  { %4955 = vmatmul.mubr.msk.bf16.gmra.mrb[100].mxu0 %vm300_vm1, %v5544_v34 }
  0xe6   :  { %696 = vmatprep.mubr.bf16.mxu0 %v9765_v2 }
  0xed   :  { %4956 = vmatmul.mubr.msk.bf16.gmra.mrb[104].mxu0 %vm300_vm1, %v5545_v35 }
  0xee   :  { %706 = vmatprep.mubr.bf16.mxu0 %v9765_v2 }
  0xf0   :  { %v5852_v36 = vpop.f32.mrb[0].mxu0 }
  0xf1   :  { %v5854_v37 = vpop.f32.mrb[1].mxu0  ;;  %v828_v40 = vmul.f32 %v5852_v36, %v5852_v36 }
  0xf2   :  { %9824 = vst [vmem:[#allocation6_spill] sm:$0xff] %v5854_v37  ;;  %v5859_v39 = vpop.f32.mrb[2].mxu0  ;;  %v5570_v37 = vld [vmem:[%s9759_s4 + $0x50] sm:$0xff]  }
  0xf3   :  { %v759_v41 = vadd.f32 %v5859_v39, %v5852_v36  ;;  %v829_v42 = vmul.f32 %v5859_v39, %v5859_v39  ;;  %v5867_v43 = vpop.f32.mrb[3].mxu0 }
  0xf4   :  { %9825 = vst [vmem:[#allocation7_spill] sm:$0xff] %v5867_v43 }
  0xf5   :  { %v892_v44 = vadd.f32 %v829_v42, %v828_v40  ;;  %4957 = vmatmul.mubr.msk.bf16.gmra.mrb[108].mxu0 %vm300_vm1, %v5546_v38 }
  0xf6   :  { %716 = vmatprep.mubr.bf16.mxu0 %v9765_v2 }
  0xf8   :  { %v5871_v45 = vpop.f32.mrb[4].mxu0 }
  0xf9   :  { %v760_v46 = vadd.f32 %v759_v41, %v5871_v45  ;;  %v830_v47 = vmul.f32 %v5871_v45, %v5871_v45  ;;  %v5876_v48 = vpop.f32.mrb[5].mxu0 }
  0xfa   :  { %9826 = vst [vmem:[#allocation8_spill] sm:$0xff] %v5876_v48  ;;  %v5881_v50 = vpop.f32.mrb[6].mxu0 }
  0xfb   :  { %v893_v51 = vadd.f32 %v892_v44, %v830_v47  ;;  %v761_v52 = vadd.f32 %v760_v46, %v5881_v50  ;;  %v831_v53 = vmul.f32 %v5881_v50, %v5881_v50  ;;  %v5886_v54 = vpop.f32.mrb[7].mxu0 }
  0xfc   :  { %9827 = vst [vmem:[#allocation9_spill] sm:$0xff] %v5886_v54 }
  0xfd   :  { %v894_v55 = vadd.f32 %v893_v51, %v831_v53  ;;  %4958 = vmatmul.mubr.msk.bf16.gmra.mrb[112].mxu0 %vm300_vm1, %v5547_v49 }
  0xfe   :  { %726 = vmatprep.mubr.bf16.mxu0 %v9765_v2 }
 0x100   :  { %v5890_v56 = vpop.f32.mrb[8].mxu0 }
 0x101   :  { %v762_v57 = vadd.f32 %v761_v52, %v5890_v56  ;;  %v832_v58 = vmul.f32 %v5890_v56, %v5890_v56  ;;  %v5895_v59 = vpop.f32.mrb[9].mxu0 }
 0x102   :  { %9828 = vst [vmem:[#allocation10_spill] sm:$0xff] %v5895_v59  ;;  %v5900_v61 = vpop.f32.mrb[10].mxu0  ;;  %v5566_v59 = vld [vmem:[%s9759_s4 + $0x40] sm:$0xff]  }
 0x103   :  { %v895_v62 = vadd.f32 %v894_v55, %v832_v58  ;;  %v763_v63 = vadd.f32 %v762_v57, %v5900_v61  ;;  %v833_v0 = vmul.f32 %v5900_v61, %v5900_v61  ;;  %v5905_v1 = vpop.f32.mrb[11].mxu0 }
 0x104   :  { %9829 = vst [vmem:[#allocation11_spill] sm:$0xff] %v5905_v1 }
 0x105   :  { %v896_v3 = vadd.f32 %v895_v62, %v833_v0  ;;  %4959 = vmatmul.mubr.msk.bf16.gmra.mrb[116].mxu0 %vm300_vm1, %v5548_v60 }
 0x106   :  { %736 = vmatprep.mubr.bf16.mxu0 %v9765_v2 }
 0x108   :  { %v5909_v4 = vpop.f32.mrb[12].mxu0 }
 0x109   :  { %v764_v5 = vadd.f32 %v763_v63, %v5909_v4  ;;  %v834_v6 = vmul.f32 %v5909_v4, %v5909_v4  ;;  %v5914_v7 = vpop.f32.mrb[13].mxu0 }
 0x10a   :  { %9830 = vst [vmem:[#allocation12_spill] sm:$0xff] %v5914_v7  ;;  %v5919_v9 = vpop.f32.mrb[14].mxu0 }
 0x10b   :  { %v897_v10 = vadd.f32 %v896_v3, %v834_v6  ;;  %v765_v11 = vadd.f32 %v764_v5, %v5919_v9  ;;  %v835_v12 = vmul.f32 %v5919_v9, %v5919_v9  ;;  %v5924_v13 = vpop.f32.mrb[15].mxu0 }
 0x10c   :  { %9831 = vst [vmem:[#allocation13_spill] sm:$0xff] %v5924_v13 }
 0x10d   :  { %v898_v14 = vadd.f32 %v897_v10, %v835_v12  ;;  %4960 = vmatmul.mubr.msk.bf16.gmra.mrb[120].mxu0 %vm300_vm1, %v5549_v8 }
 0x10e   :  { %746 = vmatprep.mubr.bf16.mxu0 %v9765_v2 }
 0x110   :  { %v5928_v15 = vpop.f32.mrb[16].mxu0 }
 0x111   :  { %v766_v16 = vadd.f32 %v765_v11, %v5928_v15  ;;  %v836_v17 = vmul.f32 %v5928_v15, %v5928_v15  ;;  %v5933_v18 = vpop.f32.mrb[17].mxu0 }
 0x112   :  { %9832 = vst [vmem:[#allocation14_spill] sm:$0xff] %v5933_v18  ;;  %v5938_v20 = vpop.f32.mrb[18].mxu0 }
 0x113   :  { %v899_v21 = vadd.f32 %v898_v14, %v836_v17  ;;  %v767_v22 = vadd.f32 %v766_v16, %v5938_v20  ;;  %v837_v23 = vmul.f32 %v5938_v20, %v5938_v20  ;;  %v5943_v24 = vpop.f32.mrb[19].mxu0 }
 0x114   :  { %9833 = vst [vmem:[#allocation15_spill] sm:$0xff] %v5943_v24 }
 0x115   :  { %v900_v25 = vadd.f32 %v899_v21, %v837_v23  ;;  %4961 = vmatmul.mubr.msk.bf16.gmra.mrb[124].mxu0 %vm300_vm1, %v5550_v19 }
 0x118   :  { %v5946_v26 = vpop.f32.mrb[20].mxu0 }
 0x119   :  { %v768_v27 = vadd.f32 %v767_v22, %v5946_v26  ;;  %v838_v28 = vmul.f32 %v5946_v26, %v5946_v26  ;;  %v5951_v29 = vpop.f32.mrb[21].mxu0 }
 0x11a   :  { %9834 = vst [vmem:[#allocation16_spill] sm:$0xff] %v5951_v29  ;;  %v5953_v30 = vpop.f32.mrb[22].mxu0 }
 0x11b   :  { %v901_v31 = vadd.f32 %v900_v25, %v838_v28  ;;  %v769_v32 = vadd.f32 %v768_v27, %v5953_v30  ;;  %v839_v33 = vmul.f32 %v5953_v30, %v5953_v30  ;;  %v5958_v34 = vpop.f32.mrb[23].mxu0 }
 0x11c   :  { %9835 = vst [vmem:[#allocation17_spill] sm:$0xff] %v5958_v34 }
 0x11d   :  { %v902_v35 = vadd.f32 %v901_v31, %v839_v33 }
 0x120   :  { %v5960_v38 = vpop.f32.mrb[24].mxu0 }
 0x121   :  { %v770_v40 = vadd.f32 %v769_v32, %v5960_v38  ;;  %v840_v41 = vmul.f32 %v5960_v38, %v5960_v38  ;;  %v5965_v42 = vpop.f32.mrb[25].mxu0 }
 0x122   :  { %9836 = vst [vmem:[#allocation18_spill] sm:$0xff] %v5965_v42  ;;  %v5967_v44 = vpop.f32.mrb[26].mxu0 }
 0x123   :  { %v903_v46 = vadd.f32 %v902_v35, %v840_v41  ;;  %v771_v47 = vadd.f32 %v770_v40, %v5967_v44  ;;  %v841_v49 = vmul.f32 %v5967_v44, %v5967_v44  ;;  %v5972_v51 = vpop.f32.mrb[27].mxu0 }
 0x124   :  { %9837 = vst [vmem:[#allocation19_spill] sm:$0xff] %v5972_v51 }
 0x125   :  { %v904_v52 = vadd.f32 %v903_v46, %v841_v49 }
 0x128   :  { %v5974_v53 = vpop.f32.mrb[28].mxu0 }
 0x129   :  { %v772_v55 = vadd.f32 %v771_v47, %v5974_v53  ;;  %v842_v57 = vmul.f32 %v5974_v53, %v5974_v53  ;;  %v5979_v58 = vpop.f32.mrb[29].mxu0 }
 0x12a   :  { %9838 = vst [vmem:[#allocation20_spill] sm:$0xff] %v5979_v58  ;;  %v5981_v60 = vpop.f32.mrb[30].mxu0 }
 0x12b   :  { %v905_v62 = vadd.f32 %v904_v52, %v842_v57  ;;  %v773_v63 = vadd.f32 %v772_v55, %v5981_v60  ;;  %v843_v0 = vmul.f32 %v5981_v60, %v5981_v60  ;;  %v5986_v3 = vpop.f32.mrb[31].mxu0 }
 0x12c   :  { %9839 = vst [vmem:[#allocation21_spill] sm:$0xff] %v5986_v3 }
 0x12d   :  { %v906_v5 = vadd.f32 %v905_v62, %v843_v0 }
 0x130   :  { %v5988_v6 = vpop.f32.mrb[32].mxu0 }
 0x131   :  { %v774_v8 = vadd.f32 %v773_v63, %v5988_v6  ;;  %v844_v10 = vmul.f32 %v5988_v6, %v5988_v6  ;;  %v5993_v11 = vpop.f32.mrb[33].mxu0 }
 0x132   :  { %9840 = vst [vmem:[#allocation22_spill] sm:$0xff] %v5993_v11  ;;  %v5995_v12 = vpop.f32.mrb[34].mxu0 }
 0x133   :  { %v907_v14 = vadd.f32 %v906_v5, %v844_v10  ;;  %v775_v16 = vadd.f32 %v774_v8, %v5995_v12  ;;  %v845_v17 = vmul.f32 %v5995_v12, %v5995_v12  ;;  %v6000_v19 = vpop.f32.mrb[35].mxu0 }
 0x134   :  { %9841 = vst [vmem:[#allocation23_spill] sm:$0xff] %v6000_v19 }
 0x135   :  { %v908_v21 = vadd.f32 %v907_v14, %v845_v17 }
 0x138   :  { %v6002_v22 = vpop.f32.mrb[36].mxu0 }
 0x139   :  { %v776_v23 = vadd.f32 %v775_v16, %v6002_v22  ;;  %v846_v25 = vmul.f32 %v6002_v22, %v6002_v22  ;;  %v6007_v27 = vpop.f32.mrb[37].mxu0 }
 0x13a   :  { %9842 = vst [vmem:[#allocation24_spill] sm:$0xff] %v6007_v27  ;;  %v6009_v28 = vpop.f32.mrb[38].mxu0 }
 0x13b   :  { %v909_v31 = vadd.f32 %v908_v21, %v846_v25  ;;  %v777_v32 = vadd.f32 %v776_v23, %v6009_v28  ;;  %v847_v33 = vmul.f32 %v6009_v28, %v6009_v28  ;;  %v6014_v35 = vpop.f32.mrb[39].mxu0 }
 0x13c   :  { %9843 = vst [vmem:[#allocation25_spill] sm:$0xff] %v6014_v35 }
 0x13d   :  { %v910_v40 = vadd.f32 %v909_v31, %v847_v33 }
 0x140   :  { %v6016_v41 = vpop.f32.mrb[40].mxu0 }
 0x141   :  { %v778_v46 = vadd.f32 %v777_v32, %v6016_v41  ;;  %v848_v47 = vmul.f32 %v6016_v41, %v6016_v41  ;;  %v6021_v49 = vpop.f32.mrb[41].mxu0 }
 0x142   :  { %9844 = vst [vmem:[#allocation26_spill] sm:$0xff] %v6021_v49  ;;  %v6023_v52 = vpop.f32.mrb[42].mxu0 }
 0x143   :  { %v911_v55 = vadd.f32 %v910_v40, %v848_v47  ;;  %v779_v57 = vadd.f32 %v778_v46, %v6023_v52  ;;  %v849_v62 = vmul.f32 %v6023_v52, %v6023_v52  ;;  %v6028_v63 = vpop.f32.mrb[43].mxu0 }
 0x144   :  { %9845 = vst [vmem:[#allocation27_spill] sm:$0xff] %v6028_v63 }
 0x145   :  { %v912_v0 = vadd.f32 %v911_v55, %v849_v62 }
 0x148   :  { %v6030_v5 = vpop.f32.mrb[44].mxu0 }
 0x149   :  { %v780_v8 = vadd.f32 %v779_v57, %v6030_v5  ;;  %v850_v10 = vmul.f32 %v6030_v5, %v6030_v5  ;;  %v6035_v14 = vpop.f32.mrb[45].mxu0 }
 0x14a   :  { %9846 = vst [vmem:[#allocation28_spill] sm:$0xff] %v6035_v14  ;;  %v6037_v16 = vpop.f32.mrb[46].mxu0 }
 0x14b   :  { %v913_v17 = vadd.f32 %v912_v0, %v850_v10  ;;  %v781_v21 = vadd.f32 %v780_v8, %v6037_v16  ;;  %v851_v23 = vmul.f32 %v6037_v16, %v6037_v16  ;;  %v6042_v25 = vpop.f32.mrb[47].mxu0 }
 0x14c   :  { %9847 = vst [vmem:[#allocation29_spill] sm:$0xff] %v6042_v25 }
 0x14d   :  { %v914_v31 = vadd.f32 %v913_v17, %v851_v23  ;;  %v5551_v17 = vld [vmem:[%s9759_s4] sm:$0xff]  }
 0x14e   :  { %2829 = vmatpush1.bf16.msra.mxu0 %v5551_v17 }
 0x150   :  { %v6044_v32 = vpop.f32.mrb[48].mxu0 }
 0x151   :  { %v782_v33 = vadd.f32 %v781_v21, %v6044_v32  ;;  %v852_v40 = vmul.f32 %v6044_v32, %v6044_v32  ;;  %v6049_v46 = vpop.f32.mrb[49].mxu0 }
 0x152   :  { %9848 = vst [vmem:[#allocation30_spill] sm:$0xff] %v6049_v46  ;;  %v6051_v47 = vpop.f32.mrb[50].mxu0 }
 0x153   :  { %v915_v55 = vadd.f32 %v914_v31, %v852_v40  ;;  %v783_v57 = vadd.f32 %v782_v33, %v6051_v47  ;;  %v853_v62 = vmul.f32 %v6051_v47, %v6051_v47  ;;  %v6056_v0 = vpop.f32.mrb[51].mxu0 }
 0x154   :  { %9849 = vst [vmem:[#allocation31_spill] sm:$0xff] %v6056_v0  ;;  %v9852_v0 = vmov 0  }
 0x155   :  { %v916_v8 = vadd.f32 %v915_v55, %v853_v62  ;;  %2830 = vmatprep.subr.bf16.mxu0 %v9852_v0 }
 0x158   :  { %v6058_v10 = vpop.f32.mrb[52].mxu0 }
 0x159   :  { %v784_v21 = vadd.f32 %v783_v57, %v6058_v10  ;;  %v854_v23 = vmul.f32 %v6058_v10, %v6058_v10  ;;  %v6066_v31 = vpop.f32.mrb[53].mxu0  ;;  %v5552_v57 = vld [vmem:[%s9759_s4 + $0x8] sm:$0xff]  }
 0x15a   :  { %9850 = vst [vmem:[#allocation32_spill] sm:$0xff] %v6066_v31  ;;  %v6068_v33 = vpop.f32.mrb[54].mxu0  ;;  %2831 = vmatpush1.bf16.msra.mxu0 %v5552_v57 }
 0x15b   :  { %v917_v40 = vadd.f32 %v916_v8, %v854_v23  ;;  %v785_v2 = vadd.f32 %v784_v21, %v6068_v33  ;;  %v855_v55 = vmul.f32 %v6068_v33, %v6068_v33  ;;  %v6073_v62 = vpop.f32.mrb[55].mxu0  ;;  %2832 = vmatprep.subr.bf16.mxu0 %v9852_v0  ;;  %v5554_v8 = vld [vmem:[%s9759_s4 + $0x10] sm:$0xff]  }
 0x15c   :  { %9851 = vst [vmem:[#allocation33_spill] sm:$0xff] %v6073_v62 }
 0x15d   :  { %v918_v46 = vadd.f32 %v917_v40, %v855_v55  ;;  %v6095_v40 = vld [vmem:[%s9759_s4 + $0x80] sm:$0xff]  }
 0x15e   :  { %2833 = vmatpush1.bf16.msra.mxu0 %v5554_v8  ;;  %5172 = vmatpush1.bf16.msra.mxu1 %v6095_v40 }
 0x15f   :  { %2834 = vmatprep.subr.bf16.mxu0 %v9852_v0  ;;  %5157 = vmatprep.subr.bf16.mxu1 %v9852_v0 }
 0x160   :  { %v6080_v31 = vpop.f32.mrb[56].mxu0 }
 0x161   :  { %v786_v17 = vadd.f32 %v785_v2, %v6080_v31  ;;  %v856_v21 = vmul.f32 %v6080_v31, %v6080_v31  ;;  %v6088_v23 = vpop.f32.mrb[57].mxu0 }
 0x162   :  { %9853 = vst [vmem:[#allocation34_spill] sm:$0xff] %v6088_v23  ;;  %v6090_v62 = vpop.f32.mrb[58].mxu0  ;;  %v5556_v23 = vld [vmem:[%s9759_s4 + $0x18] sm:$0xff]  }
 0x163   :  { %v919_v55 = vadd.f32 %v918_v46, %v856_v21  ;;  %v787_v57 = vadd.f32 %v786_v17, %v6090_v62  ;;  %v857_v25 = vmul.f32 %v6090_v62, %v6090_v62  ;;  %v6100_v2 = vpop.f32.mrb[59].mxu0  ;;  %v6111_v46 = vld [vmem:[%s9759_s4 + $0x88] sm:$0xff]   ;;  %2835 = vmatpush1.bf16.msra.mxu0 %v5556_v23 }
 0x164   :  { %9854 = vst [vmem:[#allocation35_spill] sm:$0xff] %v6100_v2  ;;  %2836 = vmatprep.subr.bf16.mxu0 %v9852_v0  ;;  %5173 = vmatpush1.bf16.msra.mxu1 %v6111_v46 }
 0x165   :  { %v920_v14 = vadd.f32 %v919_v55, %v857_v25  ;;  %5158 = vmatprep.subr.bf16.mxu1 %v9852_v0 }
 0x168   :  { %v6114_v8 = vpop.f32.mrb[60].mxu0 }
 0x169   :  { %v788_v17 = vadd.f32 %v787_v57, %v6114_v8  ;;  %v858_v21 = vmul.f32 %v6114_v8, %v6114_v8  ;;  %v6120_v25 = vpop.f32.mrb[61].mxu0 }
 0x16a   :  { %9855 = vst [vmem:[#allocation36_spill] sm:$0xff] %v6120_v25  ;;  %v6123_v55 = vpop.f32.mrb[62].mxu0 }
 0x16b   :  { %v921_v2 = vadd.f32 %v920_v14, %v858_v21  ;;  %v789_v23 = vadd.f32 %v788_v17, %v6123_v55  ;;  %v859_v63 = vmul.f32 %v6123_v55, %v6123_v55  ;;  %v6128_v49 = vpop.f32.mrb[63].mxu0 }
 0x16c   :  { %9856 = vst [vmem:[#allocation37_spill] sm:$0xff] %v6128_v49 }
 0x16d   :  { %v922_v35 = vadd.f32 %v921_v2, %v859_v63 }
 0x170   :  { %v6130_v27 = vpop.f32.mrb[64].mxu0 }
 0x171   :  { %v790_v57 = vadd.f32 %v789_v23, %v6130_v27  ;;  %v860_v25 = vmul.f32 %v6130_v27, %v6130_v27  ;;  %v6135_v19 = vpop.f32.mrb[65].mxu0 }
 0x172   :  { %9857 = vst [vmem:[#allocation38_spill] sm:$0xff] %v6135_v19  ;;  %v6137_v11 = vpop.f32.mrb[66].mxu0 }
 0x173   :  { %v923_v14 = vadd.f32 %v922_v35, %v860_v25  ;;  %v791_v17 = vadd.f32 %v790_v57, %v6137_v11  ;;  %v861_v21 = vmul.f32 %v6137_v11, %v6137_v11  ;;  %v6142_v3 = vpop.f32.mrb[67].mxu0 }
 0x174   :  { %9858 = vst [vmem:[#allocation39_spill] sm:$0xff] %v6142_v3 }
 0x175   :  { %v924_v63 = vadd.f32 %v923_v14, %v861_v21 }
 0x178   :  { %v6144_v2 = vpop.f32.mrb[68].mxu0 }
 0x179   :  { %v792_v23 = vadd.f32 %v791_v17, %v6144_v2  ;;  %v862_v49 = vmul.f32 %v6144_v2, %v6144_v2  ;;  %v6149_v58 = vpop.f32.mrb[69].mxu0 }
 0x17a   :  { %9859 = vst [vmem:[#allocation40_spill] sm:$0xff] %v6149_v58  ;;  %v6151_v19 = vpop.f32.mrb[70].mxu0 }
 0x17b   :  { %v925_v35 = vadd.f32 %v924_v63, %v862_v49  ;;  %v793_v25 = vadd.f32 %v792_v23, %v6151_v19  ;;  %v863_v57 = vmul.f32 %v6151_v19, %v6151_v19  ;;  %v6156_v51 = vpop.f32.mrb[71].mxu0 }
 0x17c   :  { %9860 = vst [vmem:[#allocation41_spill] sm:$0xff] %v6156_v51 }
 0x17d   :  { %v926_v14 = vadd.f32 %v925_v35, %v863_v57 }
 0x180   :  { %v6158_v21 = vpop.f32.mrb[72].mxu0 }
 0x181   :  { %v794_v17 = vadd.f32 %v793_v25, %v6158_v21  ;;  %v864_v3 = vmul.f32 %v6158_v21, %v6158_v21  ;;  %v6163_v42 = vpop.f32.mrb[73].mxu0 }
 0x182   :  { %9861 = vst [vmem:[#allocation42_spill] sm:$0xff] %v6163_v42  ;;  %v6165_v58 = vpop.f32.mrb[74].mxu0 }
 0x183   :  { %9862 = vst [vmem:[#allocation43_spill] sm:$0xff] %v6165_v58  ;;  %v927_v49 = vadd.f32 %v926_v14, %v864_v3  ;;  %v795_v63 = vadd.f32 %v794_v17, %v6165_v58  ;;  %v865_v23 = vmul.f32 %v6165_v58, %v6165_v58  ;;  %v6170_v34 = vpop.f32.mrb[75].mxu0  ;;  %v6495_v58 = vld [vmem:[%s9759_s4 + $0xf0] sm:$0xff]  }
 0x184   :  { %9863 = vst [vmem:[#allocation44_spill] sm:$0xff] %v6170_v34 }
 0x185   :  { %v928_v35 = vadd.f32 %v927_v49, %v865_v23 }
 0x188   :  { %v6172_v57 = vpop.f32.mrb[76].mxu0 }
 0x189   :  { %9864 = vst [vmem:[#allocation45_spill] sm:$0xff] %v6172_v57  ;;  %v796_v25 = vadd.f32 %v795_v63, %v6172_v57  ;;  %v866_v51 = vmul.f32 %v6172_v57, %v6172_v57  ;;  %v6177_v29 = vpop.f32.mrb[77].mxu0 }
 0x18a   :  { %9865 = vst [vmem:[#allocation46_spill] sm:$0xff] %v6177_v29  ;;  %v6179_v42 = vpop.f32.mrb[78].mxu0 }
 0x18b   :  { %9866 = vst [vmem:[#allocation47_spill] sm:$0xff] %v6179_v42  ;;  %v929_v3 = vadd.f32 %v928_v35, %v866_v51  ;;  %v797_v14 = vadd.f32 %v796_v25, %v6179_v42  ;;  %v867_v17 = vmul.f32 %v6179_v42, %v6179_v42  ;;  %v6184_v24 = vpop.f32.mrb[79].mxu0  ;;  %v5558_v51 = vld [vmem:[%s9759_s4 + $0x20] sm:$0xff]  }
 0x18c   :  { %9867 = vst [vmem:[#allocation48_spill] sm:$0xff] %v6184_v24  ;;  %2837 = vmatpush1.bf16.msra.mxu0 %v5558_v51  ;;  %v5562_v24 = vld [vmem:[%s9759_s4 + $0x30] sm:$0xff]  }
 0x18d   :  { %v930_v49 = vadd.f32 %v929_v3, %v867_v17  ;;  %2838 = vmatprep.subr.bf16.mxu0 %v9852_v0 }
 0x190   :  { %v6186_v23 = vpop.f32.mrb[80].mxu0 }
 0x191   :  { %9868 = vst [vmem:[#allocation49_spill] sm:$0xff] %v6186_v23  ;;  %v798_v63 = vadd.f32 %v797_v14, %v6186_v23  ;;  %v868_v34 = vmul.f32 %v6186_v23, %v6186_v23  ;;  %v6191_v18 = vpop.f32.mrb[81].mxu0  ;;  %v6206_v14 = vld [vmem:[%s9759_s4 + $0x90] sm:$0xff]  }
 0x192   :  { %9869 = vst [vmem:[#allocation50_spill] sm:$0xff] %v6191_v18  ;;  %v6193_v29 = vpop.f32.mrb[82].mxu0  ;;  %5174 = vmatpush1.bf16.msra.mxu1 %v6206_v14 }
 0x193   :  { %9870 = vst [vmem:[#allocation51_spill] sm:$0xff] %v6193_v29  ;;  %v931_v35 = vadd.f32 %v930_v49, %v868_v34  ;;  %v799_v25 = vadd.f32 %v798_v63, %v6193_v29  ;;  %v869_v3 = vmul.f32 %v6193_v29, %v6193_v29  ;;  %v6201_v17 = vpop.f32.mrb[83].mxu0  ;;  %v5560_v34 = vld [vmem:[%s9759_s4 + $0x28] sm:$0xff]   ;;  %5159 = vmatprep.subr.bf16.mxu1 %v9852_v0  ;;  %v6219_v63 = vld [vmem:[%s9759_s4 + $0x98] sm:$0xff]  }
 0x194   :  { %9871 = vst [vmem:[#allocation52_spill] sm:$0xff] %v6201_v17  ;;  %2839 = vmatpush1.bf16.msra.mxu0 %v5560_v34 }
 0x195   :  { %v932_v18 = vadd.f32 %v931_v35, %v869_v3  ;;  %2840 = vmatprep.subr.bf16.mxu0 %v9852_v0 }
 0x196   :  { %5175 = vmatpush1.bf16.msra.mxu1 %v6219_v63 }
 0x197   :  { %5160 = vmatprep.subr.bf16.mxu1 %v9852_v0 }
 0x198   :  { %v6214_v49 = vpop.f32.mrb[84].mxu0  ;;  %2841 = vmatpush1.bf16.msra.mxu0 %v5562_v24 }
 0x199   :  { %9872 = vst [vmem:[#allocation53_spill] sm:$0xff] %v6214_v49  ;;  %v800_v51 = vadd.f32 %v799_v25, %v6214_v49  ;;  %v870_v35 = vmul.f32 %v6214_v49, %v6214_v49  ;;  %v6224_v3 = vpop.f32.mrb[85].mxu0  ;;  %2842 = vmatprep.subr.bf16.mxu0 %v9852_v0 }
 0x19a   :  { %9873 = vst [vmem:[#allocation54_spill] sm:$0xff] %v6224_v3  ;;  %v6227_v17 = vpop.f32.mrb[86].mxu0  ;;  %v6242_v3 = vld [vmem:[%s9759_s4 + $0xa0] sm:$0xff]  }
 0x19b   :  { %9874 = vst [vmem:[#allocation55_spill] sm:$0xff] %v6227_v17  ;;  %v933_v13 = vadd.f32 %v932_v18, %v870_v35  ;;  %v801_v34 = vadd.f32 %v800_v51, %v6227_v17  ;;  %v871_v25 = vmul.f32 %v6227_v17, %v6227_v17  ;;  %v6236_v7 = vpop.f32.mrb[87].mxu0  ;;  %5176 = vmatpush1.bf16.msra.mxu1 %v6242_v3  ;;  %v5564_v18 = vld [vmem:[%s9759_s4 + $0x38] sm:$0xff]   ;;  %v6255_v35 = vld [vmem:[%s9759_s4 + $0xa8] sm:$0xff]  }
 0x19c   :  { %9875 = vst [vmem:[#allocation56_spill] sm:$0xff] %v6236_v7  ;;  %5161 = vmatprep.subr.bf16.mxu1 %v9852_v0  ;;  %2843 = vmatpush1.bf16.msra.mxu0 %v5564_v18 }
 0x19d   :  { %v934_v1 = vadd.f32 %v933_v13, %v871_v25  ;;  %2844 = vmatprep.subr.bf16.mxu0 %v9852_v0 }
 0x19f   :  { %5177 = vmatpush1.bf16.msra.mxu1 %v6255_v35 }
 0x1a0   :  { %v6250_v51 = vpop.f32.mrb[88].mxu0  ;;  %5162 = vmatprep.subr.bf16.mxu1 %v9852_v0  ;;  %2845 = vmatpush1.bf16.msra.mxu0 %v5566_v59 }
 0x1a1   :  { %9876 = vst [vmem:[#allocation57_spill] sm:$0xff] %v6250_v51  ;;  %v802_v13 = vadd.f32 %v801_v34, %v6250_v51  ;;  %v872_v24 = vmul.f32 %v6250_v51, %v6250_v51  ;;  %v6260_v25 = vpop.f32.mrb[89].mxu0  ;;  %2846 = vmatprep.subr.bf16.mxu0 %v9852_v0 }
 0x1a2   :  { %9877 = vst [vmem:[#allocation58_spill] sm:$0xff] %v6260_v25  ;;  %v6263_v7 = vpop.f32.mrb[90].mxu0  ;;  %v6278_v25 = vld [vmem:[%s9759_s4 + $0xb0] sm:$0xff]  }
 0x1a3   :  { %9878 = vst [vmem:[#allocation59_spill] sm:$0xff] %v6263_v7  ;;  %v935_v54 = vadd.f32 %v934_v1, %v872_v24  ;;  %v803_v18 = vadd.f32 %v802_v13, %v6263_v7  ;;  %v873_v34 = vmul.f32 %v6263_v7, %v6263_v7  ;;  %v6272_v48 = vpop.f32.mrb[91].mxu0  ;;  %5178 = vmatpush1.bf16.msra.mxu1 %v6278_v25  ;;  %v5568_v1 = vld [vmem:[%s9759_s4 + $0x48] sm:$0xff]   ;;  %v6291_v24 = vld [vmem:[%s9759_s4 + $0xb8] sm:$0xff]  }
 0x1a4   :  { %9879 = vst [vmem:[#allocation60_spill] sm:$0xff] %v6272_v48  ;;  %5163 = vmatprep.subr.bf16.mxu1 %v9852_v0  ;;  %2847 = vmatpush1.bf16.msra.mxu0 %v5568_v1 }
 0x1a5   :  { %v936_v43 = vadd.f32 %v935_v54, %v873_v34  ;;  %2848 = vmatprep.subr.bf16.mxu0 %v9852_v0 }
 0x1a7   :  { %5179 = vmatpush1.bf16.msra.mxu1 %v6291_v24 }
 0x1a8   :  { %v6286_v13 = vpop.f32.mrb[92].mxu0  ;;  %5164 = vmatprep.subr.bf16.mxu1 %v9852_v0  ;;  %2849 = vmatpush1.bf16.msra.mxu0 %v5570_v37 }
 0x1a9   :  { %9880 = vst [vmem:[#allocation61_spill] sm:$0xff] %v6286_v13  ;;  %v804_v54 = vadd.f32 %v803_v18, %v6286_v13  ;;  %v874_v59 = vmul.f32 %v6286_v13, %v6286_v13  ;;  %v6296_v34 = vpop.f32.mrb[93].mxu0  ;;  %2850 = vmatprep.subr.bf16.mxu0 %v9852_v0 }
 0x1aa   :  { %9881 = vst [vmem:[#allocation62_spill] sm:$0xff] %v6296_v34  ;;  %v6299_v48 = vpop.f32.mrb[94].mxu0  ;;  %v6314_v34 = vld [vmem:[%s9759_s4 + $0xc0] sm:$0xff]  }
 0x1ab   :  { %9882 = vst [vmem:[#allocation63_spill] sm:$0xff] %v6299_v48  ;;  %v937_v7 = vadd.f32 %v936_v43, %v874_v59  ;;  %v805_v1 = vadd.f32 %v804_v54, %v6299_v48  ;;  %v875_v18 = vmul.f32 %v6299_v48, %v6299_v48  ;;  %v6308_v51 = vpop.f32.mrb[95].mxu0  ;;  %5180 = vmatpush1.bf16.msra.mxu1 %v6314_v34  ;;  %v5572_v43 = vld [vmem:[%s9759_s4 + $0x58] sm:$0xff]   ;;  %v6327_v59 = vld [vmem:[%s9759_s4 + $0xc8] sm:$0xff]   ;;  %v5574_v48 = vld [vmem:[%s9759_s4 + $0x60] sm:$0xff]  }
 0x1ac   :  { %9883 = vst [vmem:[#allocation64_spill] sm:$0xff] %v6308_v51  ;;  %5165 = vmatprep.subr.bf16.mxu1 %v9852_v0  ;;  %2851 = vmatpush1.bf16.msra.mxu0 %v5572_v43 }
 0x1ad   :  { %v938_v13 = vadd.f32 %v937_v7, %v875_v18  ;;  %2852 = vmatprep.subr.bf16.mxu0 %v9852_v0 }
 0x1af   :  { %5181 = vmatpush1.bf16.msra.mxu1 %v6327_v59 }
 0x1b0   :  { %v6322_v54 = vpop.f32.mrb[96].mxu0  ;;  %5166 = vmatprep.subr.bf16.mxu1 %v9852_v0  ;;  %2853 = vmatpush1.bf16.msra.mxu0 %v5574_v48  ;;  %v5644_v48 = vmov 0.0  }
 0x1b1   :  { %9884 = vst [vmem:[#allocation65_spill] sm:$0xff] %v6322_v54  ;;  %v806_v37 = vadd.f32 %v805_v1, %v6322_v54  ;;  %v876_v7 = vmul.f32 %v6322_v54, %v6322_v54  ;;  %v6332_v18 = vpop.f32.mrb[97].mxu0  ;;  %2854 = vmatprep.subr.bf16.mxu0 %v9852_v0  ;;  %1310 = vst [vmem:[#allocation2] sm:$0xff] %v5644_v48 }
 0x1b2   :  { %9885 = vst [vmem:[#allocation66_spill] sm:$0xff] %v6332_v18  ;;  %v6335_v51 = vpop.f32.mrb[98].mxu0  ;;  %v6352_v18 = vld [vmem:[%s9759_s4 + $0xd0] sm:$0xff]   ;;  %1311 = vst [vmem:[#allocation2 + $0x8] sm:$0xff] %v5644_v48 }
 0x1b3   :  { %9886 = vst [vmem:[#allocation67_spill] sm:$0xff] %v6335_v51  ;;  %v939_v17 = vadd.f32 %v938_v13, %v876_v7  ;;  %v6342_v43 = vadd.f32 %v806_v37, %v6335_v51  ;;  %v877_v1 = vmul.f32 %v6335_v51, %v6335_v51  ;;  %v6346_v54 = vpop.f32.mrb[99].mxu0  ;;  %5182 = vmatpush1.bf16.msra.mxu1 %v6352_v18  ;;  %v5576_v13 = vld [vmem:[%s9759_s4 + $0x68] sm:$0xff]   ;;  %v6367_v7 = vld [vmem:[%s9759_s4 + $0xd8] sm:$0xff]   ;;  %1312 = vst [vmem:[#allocation2 + $0x10] sm:$0x3] %v5644_v48 }
 0x1b4   :  { %9887 = vst [vmem:[#allocation68_spill] sm:$0xff] %v6346_v54  ;;  %5167 = vmatprep.subr.bf16.mxu1 %v9852_v0  ;;  %2855 = vmatpush1.bf16.msra.mxu0 %v5576_v13  ;;  %1313 = vst [vmem:[#allocation2 + $0x1b0] sm:$0xff] %v5644_v48  ;;  %v5578_v51 = vld [vmem:[%s9759_s4 + $0x70] sm:$0xff]  }
 0x1b5   :  { %v6354_v49 = vadd.f32 %v939_v17, %v877_v1  ;;  %1314 = vst [vmem:[#allocation2 + $0x1b8] sm:$0xff] %v5644_v48  ;;  %1315 = vst [vmem:[#allocation2 + $0x1c0] sm:$0x3] %v5644_v48  ;;  %2856 = vmatprep.subr.bf16.mxu0 %v9852_v0 }
 0x1b6   :  { %1317 = vst [vmem:[#allocation2 + $0x198] sm:$0xff] %v5644_v48  ;;  %1318 = vst [vmem:[#allocation2 + $0x1a0] sm:$0xff] %v5644_v48 }
 0x1b7   :  { %1319 = vst [vmem:[#allocation2 + $0x1a8] sm:$0x3] %v5644_v48  ;;  %1320 = vst [vmem:[#allocation2 + $0x348] sm:$0xff] %v5644_v48  ;;  %5183 = vmatpush1.bf16.msra.mxu1 %v6367_v7 }
 0x1b8   :  { %v6362_v37 = vpop.f32.mrb[100].mxu0  ;;  %1321 = vst [vmem:[#allocation2 + $0x350] sm:$0xff] %v5644_v48  ;;  %1322 = vst [vmem:[#allocation2 + $0x358] sm:$0x3] %v5644_v48  ;;  %5168 = vmatprep.subr.bf16.mxu1 %v9852_v0  ;;  %2857 = vmatpush1.bf16.msra.mxu0 %v5578_v51 }
 0x1b9   :  { %9888 = vst [vmem:[#allocation69_spill] sm:$0xff] %v6362_v37  ;;  %1323 = vst [vmem:[#allocation2 + $0x18] sm:$0x1] %v5644_v48  ;;  %v808_v17 = vadd.f32 %v6342_v43, %v6362_v37  ;;  %v878_v1 = vmul.f32 %v6362_v37, %v6362_v37  ;;  %v6449_v13 = vpop.f32.mrb[101].mxu0  ;;  %2858 = vmatprep.subr.bf16.mxu0 %v9852_v0 }
 0x1ba   :  { %1324 = vst [vmem:[#allocation2 + $0x30] sm:$0x1] %v5644_v48  ;;  %1325 = vst [vmem:[#allocation2 + $0x48] sm:$0x1] %v5644_v48  ;;  %v6452_v54 = vpop.f32.mrb[102].mxu0 }
 0x1bb   :  { %1326 = vst [vmem:[#allocation2 + $0x60] sm:$0x1] %v5644_v48  ;;  %1327 = vst [vmem:[#allocation2 + $0x78] sm:$0x1] %v5644_v48  ;;  %v809_v29 = vadd.f32 %v808_v17, %v6452_v54  ;;  %v879_v43 = vmul.f32 %v6452_v54, %v6452_v54  ;;  %v6462_v37 = vpop.f32.mrb[103].mxu0  ;;  %v1483_v17 = vld [vmem:[#allocation2 + $0x1] sm:$0xff] }
 0x1bc   :  { %1328 = vst [vmem:[#allocation2 + $0x90] sm:$0x1] %v5644_v48  ;;  %1329 = vst [vmem:[#allocation2 + $0xa8] sm:$0x1] %v5644_v48 }
 0x1bd   :  { %1330 = vst [vmem:[#allocation2 + $0xc0] sm:$0x1] %v5644_v48  ;;  %1331 = vst [vmem:[#allocation2 + $0xd8] sm:$0x1] %v5644_v48 }
 0x1be   :  { %1332 = vst [vmem:[#allocation2 + $0xf0] sm:$0x1] %v5644_v48  ;;  %1333 = vst [vmem:[#allocation2 + $0x108] sm:$0x1] %v5644_v48 }
 0x1bf   :  { %1334 = vst [vmem:[#allocation2 + $0x120] sm:$0x1] %v5644_v48  ;;  %1335 = vst [vmem:[#allocation2 + $0x138] sm:$0x1] %v5644_v48 }
 0x1c0   :  { %1336 = vst [vmem:[#allocation2 + $0x150] sm:$0x1] %v5644_v48  ;;  %1337 = vst [vmem:[#allocation2 + $0x168] sm:$0x1] %v5644_v48 }
 0x1c1   :  { %1338 = vst [vmem:[#allocation2 + $0x180] sm:$0x1] %v5644_v48  ;;  %1339 = vst [vmem:[#allocation2 + $0x1c8] sm:$0x1] %v5644_v48 }
 0x1c2   :  { %1340 = vst [vmem:[#allocation2 + $0x1e0] sm:$0x1] %v5644_v48  ;;  %1341 = vst [vmem:[#allocation2 + $0x1f8] sm:$0x1] %v5644_v48 }
 0x1c3   :  { %1342 = vst [vmem:[#allocation2 + $0x210] sm:$0x1] %v5644_v48  ;;  %1343 = vst [vmem:[#allocation2 + $0x228] sm:$0x1] %v5644_v48 }
 0x1c4   :  { %1344 = vst [vmem:[#allocation2 + $0x240] sm:$0x1] %v5644_v48  ;;  %1345 = vst [vmem:[#allocation2 + $0x258] sm:$0x1] %v5644_v48 }
 0x1c5   :  { %1346 = vst [vmem:[#allocation2 + $0x270] sm:$0x1] %v5644_v48  ;;  %1347 = vst [vmem:[#allocation2 + $0x288] sm:$0x1] %v5644_v48 }
 0x1c6   :  { %1348 = vst [vmem:[#allocation2 + $0x2a0] sm:$0x1] %v5644_v48  ;;  %1349 = vst [vmem:[#allocation2 + $0x2b8] sm:$0x1] %v5644_v48 }
 0x1c7   :  { %1350 = vst [vmem:[#allocation2 + $0x2d0] sm:$0x1] %v5644_v48  ;;  %1351 = vst [vmem:[#allocation2 + $0x2e8] sm:$0x1] %v5644_v48 }
 0x1c8   :  { %1352 = vst [vmem:[#allocation2 + $0x300] sm:$0x1] %v5644_v48  ;;  %1353 = vst [vmem:[#allocation2 + $0x318] sm:$0x1] %v5644_v48 }
 0x1c9   :  { %1354 = vst [vmem:[#allocation2 + $0x330] sm:$0x1] %v5644_v48  ;;  %1355 = vst [vmem:[#allocation2 + $0x29] sm:$0x1] %v5644_v48 }
 0x1ca   :  { %1356 = vst [vmem:[#allocation2 + $0x41] sm:$0x1] %v5644_v48  ;;  %1357 = vst [vmem:[#allocation2 + $0x59] sm:$0x1] %v5644_v48 }
 0x1cb   :  { %1358 = vst [vmem:[#allocation2 + $0x71] sm:$0x1] %v5644_v48  ;;  %1359 = vst [vmem:[#allocation2 + $0x89] sm:$0x1] %v5644_v48 }
 0x1cc   :  { %1360 = vst [vmem:[#allocation2 + $0xa1] sm:$0x1] %v5644_v48  ;;  %1361 = vst [vmem:[#allocation2 + $0xb9] sm:$0x1] %v5644_v48 }
 0x1cd   :  { %1362 = vst [vmem:[#allocation2 + $0xd1] sm:$0x1] %v5644_v48  ;;  %1363 = vst [vmem:[#allocation2 + $0xe9] sm:$0x1] %v5644_v48 }
 0x1ce   :  { %1364 = vst [vmem:[#allocation2 + $0x101] sm:$0x1] %v5644_v48  ;;  %1365 = vst [vmem:[#allocation2 + $0x119] sm:$0x1] %v5644_v48 }
 0x1cf   :  { %1366 = vst [vmem:[#allocation2 + $0x131] sm:$0x1] %v5644_v48  ;;  %1367 = vst [vmem:[#allocation2 + $0x149] sm:$0x1] %v5644_v48 }
 0x1d0   :  { %1368 = vst [vmem:[#allocation2 + $0x161] sm:$0x1] %v5644_v48  ;;  %1369 = vst [vmem:[#allocation2 + $0x179] sm:$0x1] %v5644_v48 }
 0x1d1   :  { %1370 = vst [vmem:[#allocation2 + $0x191] sm:$0x1] %v5644_v48  ;;  %1371 = vst [vmem:[#allocation2 + $0x1d9] sm:$0x1] %v5644_v48 }
 0x1d2   :  { %1372 = vst [vmem:[#allocation2 + $0x1f1] sm:$0x1] %v5644_v48  ;;  %1373 = vst [vmem:[#allocation2 + $0x209] sm:$0x1] %v5644_v48 }
 0x1d3   :  { %1374 = vst [vmem:[#allocation2 + $0x221] sm:$0x1] %v5644_v48  ;;  %1375 = vst [vmem:[#allocation2 + $0x239] sm:$0x1] %v5644_v48 }
 0x1d4   :  { %1376 = vst [vmem:[#allocation2 + $0x251] sm:$0x1] %v5644_v48  ;;  %1377 = vst [vmem:[#allocation2 + $0x269] sm:$0x1] %v5644_v48 }
 0x1d5   :  { %1378 = vst [vmem:[#allocation2 + $0x281] sm:$0x1] %v5644_v48  ;;  %1379 = vst [vmem:[#allocation2 + $0x299] sm:$0x1] %v5644_v48 }
 0x1d6   :  { %1380 = vst [vmem:[#allocation2 + $0x2b1] sm:$0x1] %v5644_v48  ;;  %1381 = vst [vmem:[#allocation2 + $0x2c9] sm:$0x1] %v5644_v48 }
 0x1d7   :  { %1382 = vst [vmem:[#allocation2 + $0x2e1] sm:$0x1] %v5644_v48  ;;  %1383 = vst [vmem:[#allocation2 + $0x2f9] sm:$0x1] %v5644_v48 }
 0x1d8   :  { %1384 = vst [vmem:[#allocation2 + $0x311] sm:$0x1] %v5644_v48  ;;  %1385 = vst [vmem:[#allocation2 + $0x329] sm:$0x1] %v5644_v48 }
 0x1d9   :  { %1386 = vst [vmem:[#allocation2 + $0x341] sm:$0x1] %v5644_v48  ;;  %9889 = vst [vmem:[#allocation70_spill] sm:$0xff] %v6449_v13  ;;  %v941_v48 = vadd.f32 %v6354_v49, %v878_v1  ;;  %v6468_v13 = vld [vmem:[%s9759_s4 + $0xe0] sm:$0xff]   ;;  %v5580_v49 = vld [vmem:[%s9759_s4 + $0x78] sm:$0xff]  }
 0x1da   :  { %9890 = vst [vmem:[#allocation71_spill] sm:$0xff] %v6452_v54  ;;  %9891 = vst [vmem:[#allocation72_spill] sm:$0xff] %v6462_v37  ;;  %5184 = vmatpush1.bf16.msra.mxu1 %v6468_v13  ;;  %v1484_v1 = vld [vmem:[#allocation2 + $0x9] sm:$0xff]  ;;  %v6476_v37 = vpop.f32.mrb[104].mxu0  ;;  %2859 = vmatpush1.bf16.msra.mxu0 %v5580_v49 }
 0x1db   :  { %v942_v23 = vadd.f32 %v941_v48, %v879_v43  ;;  %5169 = vmatprep.subr.bf16.mxu1 %v9852_v0  ;;  %v6481_v54 = vld [vmem:[%s9759_s4 + $0xe8] sm:$0xff]   ;;  %v1547_v51 = vpack.c.bf16 %v1484_v1, %v1483_v17  ;;  %v810_v48 = vadd.f32 %v809_v29, %v6476_v37  ;;  %v880_v43 = vmul.f32 %v6476_v37, %v6476_v37  ;;  %v6486_v42 = vpop.f32.mrb[105].mxu0 }
 0x1dc   :  { %9892 = vst [vmem:[#allocation73_spill] sm:$0xff] %v6486_v42  ;;  %3117 = vmatprep.subr.bf16.mxu0 %v9852_v0  ;;  %v6489_v57 = vpop.f32.mrb[106].mxu0  ;;  %v9782_v42 = vmov 0.0|0.0  }
 0x1dd   :  { %9893 = vst [vmem:[#allocation74_spill] sm:$0xff] %v6489_v57  ;;  %2860 = vmatprep.mubr.bf16.mxu0 %v1547_v51  ;;  %v943_v49 = vadd.f32 %v942_v23, %v880_v43  ;;  %v811_v29 = vadd.f32 %v810_v48, %v6489_v57  ;;  %v881_v17 = vmul.f32 %v6489_v57, %v6489_v57  ;;  %v6500_v1 = vpop.f32.mrb[107].mxu0  ;;  %v6510_v23 = vld [vmem:[%s9759_s4 + $0xf8] sm:$0xff]  }
 0x1de   :  { %5185 = vmatpush1.bf16.msra.mxu1 %v6481_v54  ;;  %9894 = vst [vmem:[#allocation75_spill] sm:$0xff] %v6500_v1  ;;  %2861 = vmatmul.mubr.bf16.vlgmr.msra.gmra.mrb[128].mxu0 %v9782_v42  ;;  %v6513_v48 = vpop.f32.mrb[108].mxu0 }
 0x1df   :  { %5170 = vmatprep.subr.bf16.mxu1 %v9852_v0  ;;  %3118 = vmatpush1.bf16.msra.mxu0 %v6095_v40  ;;  %v944_v51 = vadd.f32 %v943_v49, %v881_v17  ;;  %v812_v43 = vadd.f32 %v811_v29, %v6513_v48  ;;  %v882_v40 = vmul.f32 %v6513_v48, %v6513_v48  ;;  %v6519_v49 = vpop.f32.mrb[109].mxu0 }
 0x1e0   :  { %3119 = vmatprep.subr.bf16.mxu0 %v9852_v0  ;;  %9895 = vst [vmem:[#allocation76_spill] sm:$0xff] %v6519_v49  ;;  %v6522_v17 = vpop.f32.mrb[110].mxu0 }
 0x1e1   :  { %9896 = vst [vmem:[#allocation77_spill] sm:$0xff] %v6522_v17  ;;  %v945_v42 = vadd.f32 %v944_v51, %v882_v40  ;;  %v813_v1 = vadd.f32 %v812_v43, %v6522_v17  ;;  %v883_v57 = vmul.f32 %v6522_v17, %v6522_v17 }
 0x1e2   :  { %5186 = vmatpush1.bf16.msra.mxu1 %v6495_v58 }
 0x1e3   :  { %5171 = vmatprep.subr.bf16.mxu1 %v9852_v0  ;;  %3120 = vmatpush1.bf16.msra.mxu0 %v6111_v46  ;;  %v6528_v46 = vpop.f32.mrb[111].mxu0  ;;  %v946_v29 = vadd.f32 %v945_v42, %v883_v57 }
 0x1e4   :  { %3121 = vmatprep.subr.bf16.mxu0 %v9852_v0  ;;  %9897 = vst [vmem:[#allocation78_spill] sm:$0xff] %v6528_v46  ;;  %v6533_v49 = vpop.f32.mrb[112].mxu0 }
 0x1e5   :  { %v814_v51 = vadd.f32 %v813_v1, %v6533_v49  ;;  %v884_v43 = vmul.f32 %v6533_v49, %v6533_v49  ;;  %v6539_v40 = vpop.f32.mrb[113].mxu0 }
 0x1e6   :  { %5187 = vmatpush1.bf16.msra.mxu1 %v6510_v23  ;;  %9898 = vst [vmem:[#allocation79_spill] sm:$0xff] %v6539_v40  ;;  %v6542_v46 = vpop.f32.mrb[114].mxu0 }
 0x1e7   :  { %3406 = vmatprep.subr.bf16.mxu1 %v9852_v0  ;;  %3122 = vmatpush1.bf16.msra.mxu0 %v6206_v14  ;;  %v947_v17 = vadd.f32 %v946_v29, %v884_v43  ;;  %v815_v42 = vadd.f32 %v814_v51, %v6542_v46  ;;  %v885_v57 = vmul.f32 %v6542_v46, %v6542_v46  ;;  %v6547_v14 = vpop.f32.mrb[115].mxu0 }
 0x1e8   :  { %3123 = vmatprep.subr.bf16.mxu0 %v9852_v0  ;;  %9899 = vst [vmem:[#allocation80_spill] sm:$0xff] %v6547_v14  ;;  %v6551_v1 = vpop.f32.mrb[116].mxu0 }
 0x1e9   :  { %v816_v40 = vadd.f32 %v815_v42, %v6551_v1  ;;  %v886_v29 = vmul.f32 %v6551_v1, %v6551_v1  ;;  %v6557_v51 = vpop.f32.mrb[117].mxu0 }
 0x1ea   :  { %9900 = vst [vmem:[#allocation81_spill] sm:$0xff] %v6557_v51  ;;  %v6560_v43 = vpop.f32.mrb[118].mxu0 }
 0x1eb   :  { %3124 = vmatpush1.bf16.msra.mxu0 %v6219_v63  ;;  %v948_v63 = vadd.f32 %v947_v17, %v885_v57  ;;  %9901 = vst [vmem:[#allocation82_spill] sm:$0xff] %v6560_v43  ;;  %v887_v17 = vmul.f32 %v6560_v43, %v6560_v43  ;;  %v6565_v57 = vpop.f32.mrb[119].mxu0 }
 0x1ec   :  { %3125 = vmatprep.subr.bf16.mxu0 %v9852_v0  ;;  %9902 = vst [vmem:[#allocation83_spill] sm:$0xff] %v6565_v57  ;;  %v6569_v42 = vpop.f32.mrb[120].mxu0 }
 0x1ed   :  { %v949_v14 = vadd.f32 %v948_v63, %v886_v29  ;;  %9903 = vst [vmem:[#allocation84_spill] sm:$0xff] %v6569_v42  ;;  %v888_v63 = vmul.f32 %v6569_v42, %v6569_v42 }
 0x1ef   :  { %3126 = vmatpush1.bf16.msra.mxu0 %v6242_v3  ;;  %v817_v3 = vadd.f32 %v816_v40, %v6560_v43  ;;  %v6575_v40 = vpop.f32.mrb[121].mxu0 }
 0x1f0   :  { %3127 = vmatprep.subr.bf16.mxu0 %v9852_v0  ;;  %9904 = vst [vmem:[#allocation85_spill] sm:$0xff] %v6575_v40  ;;  %v6578_v29 = vpop.f32.mrb[122].mxu0 }
 0x1f1   :  { %v818_v51 = vadd.f32 %v817_v3, %v6569_v42  ;;  %9905 = vst [vmem:[#allocation86_spill] sm:$0xff] %v6578_v29 }
 0x1f3   :  { %3128 = vmatpush1.bf16.msra.mxu0 %v6255_v35  ;;  %v950_v35 = vadd.f32 %v949_v14, %v887_v17  ;;  %v889_v14 = vmul.f32 %v6578_v29, %v6578_v29  ;;  %v6583_v17 = vpop.f32.mrb[123].mxu0 }
 0x1f4   :  { %3129 = vmatprep.subr.bf16.mxu0 %v9852_v0  ;;  %9906 = vst [vmem:[#allocation87_spill] sm:$0xff] %v6583_v17  ;;  %v6587_v3 = vpop.f32.mrb[124].mxu0 }
 0x1f5   :  { %v951_v57 = vadd.f32 %v950_v35, %v888_v63  ;;  %9907 = vst [vmem:[#allocation88_spill] sm:$0xff] %v6587_v3  ;;  %v890_v35 = vmul.f32 %v6587_v3, %v6587_v3 }
 0x1f7   :  { %3130 = vmatpush1.bf16.msra.mxu0 %v6278_v25  ;;  %v819_v25 = vadd.f32 %v818_v51, %v6578_v29  ;;  %v6593_v51 = vpop.f32.mrb[125].mxu0 }
 0x1f8   :  { %3131 = vmatprep.subr.bf16.mxu0 %v9852_v0  ;;  %9908 = vst [vmem:[#allocation89_spill] sm:$0xff] %v6593_v51  ;;  %v752_v63 = vpop.f32.mrb[126].mxu0 }
 0x1f9   :  { %v820_v40 = vadd.f32 %v819_v25, %v6587_v3 }
 0x1fb   :  { %3132 = vmatpush1.bf16.msra.mxu0 %v6291_v24  ;;  %v952_v24 = vadd.f32 %v951_v57, %v889_v14  ;;  %v821_v29 = vadd.f32 %v820_v40, %v752_v63  ;;  %v6596_v57 = vpop.f32.mrb[127].mxu0 }
 0x1fc   :  { %3133 = vmatprep.subr.bf16.mxu0 %v9852_v0  ;;  %9909 = vst [vmem:[#allocation90_spill] sm:$0xff] %v6596_v57  ;;  %v9924_v57 = vld [vmem:[#allocation67_spill] sm:$0xff] }
 0x1fd   :  { %v953_v17 = vadd.f32 %v952_v24, %v890_v35  ;;  %v822_v14 = vrot.slane %v821_v29, 4 }
 0x1ff   :  { %3134 = vmatpush1.bf16.msra.mxu0 %v6314_v34  ;;  %v891_v34 = vmul.f32 %v752_v63, %v752_v63 }
 0x200   :  { %3135 = vmatprep.subr.bf16.mxu0 %v9852_v0 }
 0x201   :  { %v954_v42 = vadd.f32 %v953_v17, %v891_v34 }
 0x203   :  { %3136 = vmatpush1.bf16.msra.mxu0 %v6327_v59  ;;  %v823_v59 = vadd.f32 %v822_v14, %v821_v29  ;;  %v955_v25 = vrot.slane %v954_v42, 4 }
 0x204   :  { %3137 = vmatprep.subr.bf16.mxu0 %v9852_v0 }
 0x205   :  { %v824_v3 = vrot.slane %v823_v59, 2  ;;  %v956_v51 = vadd.f32 %v955_v25, %v954_v42 }
 0x207   :  { %3138 = vmatpush1.bf16.msra.mxu0 %v6352_v18  ;;  %v825_v43 = vadd.f32 %v824_v3, %v823_v59  ;;  %v957_v24 = vrot.slane %v956_v51, 2 }
 0x208   :  { %3139 = vmatprep.subr.bf16.mxu0 %v9852_v0 }
 0x209   :  { %v826_v40 = vrot.slane %v825_v43, 1  ;;  %v958_v35 = vadd.f32 %v957_v24, %v956_v51  ;;  %v971_v51 = vlaneseq }
 0x20b   :  { %3140 = vmatpush1.bf16.msra.mxu0 %v6367_v7  ;;  %v827_v18 = vadd.f32 %v826_v40, %v825_v43  ;;  %v959_v17 = vrot.slane %v958_v35, 1  ;;  %v972_v43 = vshrl.u32 %v971_v51, 7  ;;  %v9912_v51 = vld [vmem:[#allocation45_spill] sm:$0xff] }
 0x20c   :  { %3141 = vmatprep.subr.bf16.mxu0 %v9852_v0 }
 0x20d   :  { %v960_v29 = vadd.f32 %v959_v17, %v958_v35  ;;  %v961_v34 = vmul.f32 0.001953125, %v827_v18  ;;  %v6612_v14 = vsub.s32 0, %v972_v43  ;;  %v9913_v43 = vld [vmem:[#allocation47_spill] sm:$0xff] }
 0x20f   :  { %3142 = vmatpush1.bf16.msra.mxu0 %v6468_v13  ;;  %v962_v7 = vmul.f32 0.001953125, %v960_v29  ;;  %v963_v42 = vmul.f32 %v961_v34, %v961_v34  ;;  %9910 = vst [vmem:[#allocation91_spill] sm:$0xff] %v6612_v14 }
 0x210   :  { %3143 = vmatprep.subr.bf16.mxu0 %v9852_v0 }
 0x211   :  { %v964_v3 = vsub.f32 %v962_v7, %v963_v42 }
 0x213   :  { %3144 = vmatpush1.bf16.msra.mxu0 %v6481_v54  ;;  %v965_v13 = vadd.f32 1e-05, %v964_v3  ;;  %v757_v54 = vld [vmem:[%s9757_s2] sm:$0x1] }
 0x214   :  { %3145 = vmatprep.subr.bf16.mxu0 %v9852_v0 }
 0x215   :  { %5623 = vrsqrt.f32 %v965_v13  ;;  %v9911_v13 = vld [vmem:[#allocation43_spill] sm:$0xff] }
 0x217   :  { %3146 = vmatpush1.bf16.msra.mxu0 %v6495_v58  ;;  %v758_v58 = vld [vmem:[%s9758_s3] sm:$0x1] }
 0x218   :  { %3147 = vmatprep.subr.bf16.mxu0 %v9852_v0  ;;  %v9927_v0 = vld [vmem:[#allocation71_spill] sm:$0xff] }
 0x21b   :  { %3148 = vmatpush1.bf16.msra.mxu0 %v6510_v23 }
 0x21f   :  { %v5624_v59 = vpop.eup %5623 }
 0x220   :  { %v967_v25 = vmul.f32 %v5624_v59, %v757_v54  ;;  %v9914_v54 = vld [vmem:[#allocation49_spill] sm:$0xff]  ;;  %v9915_v59 = vld [vmem:[#allocation51_spill] sm:$0xff] }
 0x222   :  { %v968_v24 = vmul.f32 %v967_v25, %v961_v34  ;;  %v6618_v40 = vrot.slane %v967_v25, %v6612_v14  ;;  %v9916_v25 = vld [vmem:[#allocation53_spill] sm:$0xff] }
 0x224   :  { %v969_v23 = vsub.f32 %v758_v58, %v968_v24  ;;  %v1039_v35 = vmul.f32 %v6618_v40, %v752_v63  ;;  %v6623_v18 = vmul.f32 %v6618_v40, %v5852_v36  ;;  %v6627_v17 = vmul.f32 %v6618_v40, %v5859_v39  ;;  %v9917_v24 = vld [vmem:[#allocation55_spill] sm:$0xff] }
 0x225   :  { %v6631_v29 = vmul.f32 %v6618_v40, %v5871_v45  ;;  %v6635_v34 = vmul.f32 %v6618_v40, %v5881_v50  ;;  %v6639_v7 = vmul.f32 %v6618_v40, %v5890_v56  ;;  %v6643_v36 = vmul.f32 %v6618_v40, %v5900_v61 }
 0x226   :  { %v6646_v63 = vrot.slane %v969_v23, %v6612_v14  ;;  %v6650_v39 = vmul.f32 %v6618_v40, %v5909_v4  ;;  %v6654_v45 = vmul.f32 %v6618_v40, %v5919_v9  ;;  %v6658_v50 = vmul.f32 %v6618_v40, %v5928_v15  ;;  %v9926_v14 = vld [vmem:[#allocation69_spill] sm:$0xff] }
 0x227   :  { %v6662_v56 = vmul.f32 %v6618_v40, %v5938_v20  ;;  %v6666_v61 = vmul.f32 %v6618_v40, %v5946_v26  ;;  %v6670_v4 = vmul.f32 %v6618_v40, %v5953_v30  ;;  %v6674_v9 = vmul.f32 %v6618_v40, %v5960_v38 }
 0x228   :  { %v1109_v42 = vadd.f32 %v6646_v63, %v1039_v35  ;;  %v6679_v15 = vmul.f32 %v6618_v40, %v5967_v44  ;;  %v6683_v20 = vmul.f32 %v6618_v40, %v5974_v53  ;;  %v6687_v26 = vmul.f32 %v6618_v40, %v5981_v60  ;;  %v9918_v35 = vld [vmem:[#allocation57_spill] sm:$0xff] }
 0x229   :  { %v6691_v30 = vmul.f32 %v6618_v40, %v5988_v6  ;;  %v6695_v38 = vmul.f32 %v6618_v40, %v5995_v12  ;;  %v6699_v44 = vmul.f32 %v6618_v40, %v6002_v22  ;;  %v6703_v53 = vmul.f32 %v6618_v40, %v6009_v28 }
 0x22a   :  { %v1173_v3 = vmax.f32 %v1109_v42, 0.0  ;;  %v6707_v60 = vmul.f32 %v6618_v40, %v6016_v41  ;;  %v6711_v6 = vmul.f32 %v6618_v40, %v6023_v52  ;;  %v6715_v12 = vmul.f32 %v6618_v40, %v6030_v5 }
 0x22b   :  { %v6719_v22 = vmul.f32 %v6618_v40, %v6037_v16  ;;  %v6723_v28 = vmul.f32 %v6618_v40, %v6044_v32  ;;  %v6727_v41 = vmul.f32 %v6618_v40, %v6051_v47  ;;  %v6731_v52 = vmul.f32 %v6618_v40, %v6058_v10 }
 0x22c   :  { %1309 = vst [vmem:[#allocation2 + $0x339] sm:$0xff] %v1173_v3  ;;  %v6735_v5 = vmul.f32 %v6618_v40, %v6068_v33  ;;  %v6739_v16 = vmul.f32 %v6618_v40, %v6080_v31  ;;  %v6743_v32 = vmul.f32 %v6618_v40, %v6090_v62  ;;  %v6747_v47 = vmul.f32 %v6618_v40, %v6114_v8  ;;  %v9919_v3 = vld [vmem:[#allocation59_spill] sm:$0xff] }
 0x22d   :  { %v6751_v10 = vmul.f32 %v6618_v40, %v6123_v55  ;;  %v6755_v33 = vmul.f32 %v6618_v40, %v6130_v27  ;;  %v6759_v31 = vmul.f32 %v6618_v40, %v6137_v11  ;;  %v6763_v62 = vmul.f32 %v6618_v40, %v6144_v2 }
 0x22e   :  { %v6767_v8 = vmul.f32 %v6618_v40, %v6151_v19  ;;  %v6771_v55 = vmul.f32 %v6618_v40, %v6158_v21  ;;  %v6775_v27 = vmul.f32 %v6618_v40, %v9911_v13  ;;  %v6779_v11 = vmul.f32 %v6618_v40, %v9912_v51  ;;  %v9920_v51 = vld [vmem:[#allocation61_spill] sm:$0xff] }
 0x22f   :  { %v6783_v2 = vmul.f32 %v6618_v40, %v9913_v43  ;;  %v6787_v19 = vmul.f32 %v6618_v40, %v9914_v54  ;;  %v6791_v21 = vmul.f32 %v6618_v40, %v9915_v59  ;;  %v6795_v58 = vmul.f32 %v6618_v40, %v9916_v25  ;;  %v9921_v54 = vld [vmem:[#allocation63_spill] sm:$0xff]  ;;  %v9923_v25 = vld [vmem:[#allocation65_spill] sm:$0xff] }
 0x230   :  { %v6799_v23 = vmul.f32 %v6618_v40, %v9917_v24  ;;  %v6803_v42 = vmul.f32 %v6618_v40, %v9918_v35  ;;  %v6807_v13 = vmul.f32 %v6618_v40, %v9919_v3  ;;  %v6811_v43 = vmul.f32 %v6618_v40, %v9920_v51 }
 0x231   :  { %v6815_v59 = vmul.f32 %v6618_v40, %v9921_v54  ;;  %v6819_v24 = vmul.f32 %v6618_v40, %v9923_v25  ;;  %v6823_v35 = vmul.f32 %v6618_v40, %v9924_v57  ;;  %v6827_v3 = vmul.f32 %v6618_v40, %v9926_v14 }
 0x232   :  { %v6831_v51 = vmul.f32 %v6618_v40, %v9927_v0  ;;  %v6835_v54 = vmul.f32 %v6618_v40, %v6476_v37  ;;  %v6843_v57 = vmul.f32 %v6618_v40, %v6513_v48  ;;  %v6851_v0 = vmul.f32 %v6618_v40, %v6533_v49 }
 0x233   :  { %9922 = vst [vmem:[#allocation43_spill] sm:$0xff] %v6815_v59  ;;  %9925 = vst [vmem:[#allocation45_spill] sm:$0xff] %v6823_v35  ;;  %v9928_v59 = vld [vmem:[#allocation74_spill] sm:$0xff]  ;;  %v9931_v35 = vld [vmem:[#allocation77_spill] sm:$0xff]  ;;  %v6855_v37 = vmul.f32 %v6618_v40, %v6542_v46 }
 0x234   :  { %v6839_v25 = vmul.f32 %v6618_v40, %v9928_v59  ;;  %9930 = vst [vmem:[#allocation49_spill] sm:$0xff] %v6843_v57  ;;  %v6847_v14 = vmul.f32 %v6618_v40, %v9931_v35  ;;  %9933 = vst [vmem:[#allocation53_spill] sm:$0xff] %v6851_v0  ;;  %v6859_v59 = vmul.f32 %v6618_v40, %v6551_v1  ;;  %v9935_v57 = vld [vmem:[#allocation84_spill] sm:$0xff] }
 0x235   :  { %v6867_v35 = vmul.f32 %v6618_v40, %v9935_v57  ;;  %v9937_v0 = vld [vmem:[#allocation88_spill] sm:$0xff]  ;;  %v6879_v1 = vadd.f32 %v6646_v63, %v6623_v18  ;;  %v6887_v57 = vadd.f32 %v6646_v63, %v6631_v29  ;;  %v6899_v18 = vadd.f32 %v6646_v63, %v6643_v36 }
 0x236   :  { %9929 = vst [vmem:[#allocation47_spill] sm:$0xff] %v6839_v25  ;;  %9932 = vst [vmem:[#allocation51_spill] sm:$0xff] %v6847_v14  ;;  %v9934_v25 = vld [vmem:[#allocation82_spill] sm:$0xff]  ;;  %v6875_v46 = vmul.f32 %v6618_v40, %v9937_v0  ;;  %v6907_v29 = vadd.f32 %v6646_v63, %v6654_v45  ;;  %v6919_v36 = vadd.f32 %v6646_v63, %v6666_v61 }
 0x237   :  { %v6863_v48 = vmul.f32 %v6618_v40, %v9934_v25  ;;  %v9936_v14 = vld [vmem:[#allocation86_spill] sm:$0xff]  ;;  %v6883_v25 = vadd.f32 %v6646_v63, %v6627_v17  ;;  %v6903_v17 = vadd.f32 %v6646_v63, %v6650_v39  ;;  %v6923_v39 = vadd.f32 %v6646_v63, %v6670_v4 }
 0x238   :  { %v6871_v49 = vmul.f32 %v6618_v40, %v9936_v14  ;;  %v6891_v14 = vadd.f32 %v6646_v63, %v6635_v34  ;;  %v6895_v40 = vadd.f32 %v6646_v63, %v6639_v7  ;;  %v6911_v34 = vadd.f32 %v6646_v63, %v6658_v50 }
 0x239   :  { %v6915_v7 = vadd.f32 %v6646_v63, %v6662_v56  ;;  %v6927_v45 = vadd.f32 %v6646_v63, %v6674_v9  ;;  %v6931_v50 = vadd.f32 %v6646_v63, %v6679_v15  ;;  %v6935_v56 = vadd.f32 %v6646_v63, %v6683_v20 }
 0x23a   :  { %v6939_v61 = vadd.f32 %v6646_v63, %v6687_v26  ;;  %v6943_v4 = vadd.f32 %v6646_v63, %v6691_v30  ;;  %v6947_v9 = vadd.f32 %v6646_v63, %v6695_v38  ;;  %v6951_v15 = vadd.f32 %v6646_v63, %v6699_v44  ;;  %v9939_v0 = vld [vmem:[#allocation43_spill] sm:$0xff] }
 0x23b   :  { %v6955_v20 = vadd.f32 %v6646_v63, %v6703_v53  ;;  %v6959_v26 = vadd.f32 %v6646_v63, %v6707_v60  ;;  %v6963_v30 = vadd.f32 %v6646_v63, %v6711_v6  ;;  %v6967_v38 = vadd.f32 %v6646_v63, %v6715_v12 }
 0x23c   :  { %v6971_v44 = vadd.f32 %v6646_v63, %v6719_v22  ;;  %v6975_v53 = vadd.f32 %v6646_v63, %v6723_v28  ;;  %v6979_v60 = vadd.f32 %v6646_v63, %v6727_v41  ;;  %v6983_v6 = vadd.f32 %v6646_v63, %v6731_v52 }
 0x23d   :  { %v6987_v12 = vadd.f32 %v6646_v63, %v6735_v5  ;;  %v6991_v22 = vadd.f32 %v6646_v63, %v6739_v16  ;;  %v6995_v28 = vadd.f32 %v6646_v63, %v6743_v32  ;;  %v6999_v41 = vadd.f32 %v6646_v63, %v6747_v47 }
 0x23e   :  { %v7003_v52 = vadd.f32 %v6646_v63, %v6751_v10  ;;  %v7007_v5 = vadd.f32 %v6646_v63, %v6755_v33  ;;  %v7011_v16 = vadd.f32 %v6646_v63, %v6759_v31  ;;  %v7015_v32 = vadd.f32 %v6646_v63, %v6763_v62 }
 0x23f   :  { %v7019_v47 = vadd.f32 %v6646_v63, %v6767_v8  ;;  %v7023_v10 = vadd.f32 %v6646_v63, %v6771_v55  ;;  %v7027_v33 = vadd.f32 %v6646_v63, %v6775_v27  ;;  %v7031_v31 = vadd.f32 %v6646_v63, %v6779_v11 }
 0x240   :  { %v7035_v62 = vadd.f32 %v6646_v63, %v6783_v2  ;;  %v7039_v8 = vadd.f32 %v6646_v63, %v6787_v19  ;;  %v7043_v55 = vadd.f32 %v6646_v63, %v6791_v21  ;;  %v7047_v27 = vadd.f32 %v6646_v63, %v6795_v58 }
 0x241   :  { %v7051_v11 = vadd.f32 %v6646_v63, %v6799_v23  ;;  %v7055_v2 = vadd.f32 %v6646_v63, %v6803_v42  ;;  %v7059_v19 = vadd.f32 %v6646_v63, %v6807_v13  ;;  %v7063_v21 = vadd.f32 %v6646_v63, %v6811_v43 }
 0x242   :  { %v7067_v58 = vadd.f32 %v6646_v63, %v9939_v0  ;;  %v7071_v23 = vadd.f32 %v6646_v63, %v6819_v24  ;;  %v7079_v13 = vadd.f32 %v6646_v63, %v6827_v3  ;;  %v7083_v43 = vadd.f32 %v6646_v63, %v6831_v51 }
 0x243   :  { %9938 = vst [vmem:[#allocation55_spill] sm:$0xff] %v7051_v11  ;;  %v9942_v11 = vld [vmem:[#allocation45_spill] sm:$0xff]  ;;  %v7087_v0 = vadd.f32 %v6646_v63, %v6835_v54  ;;  %v7107_v54 = vadd.f32 %v6646_v63, %v6855_v37  ;;  %v7127_v37 = vadd.f32 %v6646_v63, %v6875_v46  ;;  %v9799_v46 = vmax.f32 %v6935_v56, 0.0 }
 0x244   :  { %9940 = vst [vmem:[#allocation57_spill] sm:$0xff] %v7067_v58  ;;  %9941 = vst [vmem:[#allocation59_spill] sm:$0xff] %v7071_v23  ;;  %v7075_v42 = vadd.f32 %v6646_v63, %v9942_v11  ;;  %v9945_v58 = vld [vmem:[#allocation47_spill] sm:$0xff]  ;;  %v9946_v23 = vld [vmem:[#allocation49_spill] sm:$0xff] }
 0x245   :  { %9944 = vst [vmem:[#allocation63_spill] sm:$0xff] %v7079_v13  ;;  %v7091_v24 = vadd.f32 %v6646_v63, %v9945_v58  ;;  %v7095_v11 = vadd.f32 %v6646_v63, %v9946_v23  ;;  %v9948_v13 = vld [vmem:[#allocation53_spill] sm:$0xff]  ;;  %9949 = vst [vmem:[#allocation65_spill] sm:$0xff] %v7107_v54  ;;  %v7111_v58 = vadd.f32 %v6646_v63, %v6859_v59  ;;  %v9792_v54 = vmax.f32 %v6879_v1, 0.0 }
 0x246   :  { %9943 = vst [vmem:[#allocation61_spill] sm:$0xff] %v7075_v42  ;;  %v9947_v42 = vld [vmem:[#allocation51_spill] sm:$0xff]  ;;  %v7103_v51 = vadd.f32 %v6646_v63, %v9948_v13  ;;  %v7115_v23 = vadd.f32 %v6646_v63, %v6863_v48  ;;  %v7123_v13 = vadd.f32 %v6646_v63, %v6871_v49  ;;  %v9793_v59 = vmax.f32 %v6883_v25, 0.0  ;;  %1260 = vst [vmem:[#allocation2 + $0xc1] sm:$0xff] %v9799_v46 }
 0x247   :  { %v7099_v3 = vadd.f32 %v6646_v63, %v9947_v42  ;;  %9950 = vst [vmem:[#allocation67_spill] sm:$0xff] %v7111_v58  ;;  %v7119_v42 = vadd.f32 %v6646_v63, %v6867_v35  ;;  %v9795_v35 = vmax.f32 %v6899_v18, 0.0  ;;  %1246 = vst [vmem:[#allocation2 + $0x19] sm:$0xff] %v9792_v54  ;;  %v9797_v63 = vmax.f32 %v6915_v7, 0.0 }
 0x248   :  { %9951 = vst [vmem:[#allocation69_spill] sm:$0xff] %v7115_v23  ;;  %9953 = vst [vmem:[#allocation74_spill] sm:$0xff] %v7123_v13  ;;  %v9794_v23 = vmax.f32 %v6895_v40, 0.0  ;;  %v9796_v13 = vmax.f32 %v6911_v34, 0.0  ;;  %v9955_v49 = vmax.f32 %v6891_v14, 0.0  ;;  %v9798_v54 = vmax.f32 %v6931_v50, 0.0 }
 0x249   :  { %9952 = vst [vmem:[#allocation71_spill] sm:$0xff] %v7119_v42  ;;  %1247 = vst [vmem:[#allocation2 + $0x21] sm:$0xff] %v9793_v59  ;;  %v9954_v42 = vmax.f32 %v6887_v57, 0.0  ;;  %v9956_v59 = vmax.f32 %v6903_v17, 0.0  ;;  %v1138_v48 = vmax.f32 %v6991_v22, 0.0  ;;  %v9964_v46 = vmax.f32 %v6955_v20, 0.0 }
 0x24a   :  { %1249 = vst [vmem:[#allocation2 + $0x39] sm:$0xff] %v9955_v49  ;;  %1250 = vst [vmem:[#allocation2 + $0x49] sm:$0xff] %v9794_v23  ;;  %v1127_v49 = vmax.f32 %v6947_v9, 0.0  ;;  %v9800_v23 = vmax.f32 %v6967_v38, 0.0  ;;  %v1141_v58 = vmax.f32 %v7003_v52, 0.0  ;;  %v1142_v22 = vmax.f32 %v7007_v5, 0.0 }
 0x24b   :  { %1248 = vst [vmem:[#allocation2 + $0x31] sm:$0xff] %v9954_v42  ;;  %1251 = vst [vmem:[#allocation2 + $0x51] sm:$0xff] %v9795_v35  ;;  %v9957_v42 = vmax.f32 %v6907_v29, 0.0  ;;  %v9958_v35 = vmax.f32 %v6919_v36, 0.0  ;;  %v1145_v52 = vmax.f32 %v7019_v47, 0.0  ;;  %v1146_v5 = vmax.f32 %v7023_v10, 0.0 }
 0x24c   :  { %1252 = vst [vmem:[#allocation2 + $0x61] sm:$0xff] %v9956_v59  ;;  %1254 = vst [vmem:[#allocation2 + $0x79] sm:$0xff] %v9796_v13  ;;  %v9959_v59 = vmax.f32 %v6923_v39, 0.0  ;;  %v1131_v13 = vmax.f32 %v6963_v30, 0.0  ;;  %v1150_v47 = vmax.f32 %v7039_v8, 0.0  ;;  %v1151_v10 = vmax.f32 %v7043_v55, 0.0 }
 0x24d   :  { %1253 = vst [vmem:[#allocation2 + $0x69] sm:$0xff] %v9957_v42  ;;  %1255 = vst [vmem:[#allocation2 + $0x81] sm:$0xff] %v9797_v63  ;;  %v9960_v42 = vmax.f32 %v6927_v45, 0.0  ;;  %v1140_v63 = vmax.f32 %v6999_v41, 0.0  ;;  %v1144_v41 = vmax.f32 %v7015_v32, 0.0  ;;  %v1149_v32 = vmax.f32 %v7035_v62, 0.0 }
 0x24e   :  { %1256 = vst [vmem:[#allocation2 + $0x91] sm:$0xff] %v9958_v35  ;;  %1257 = vst [vmem:[#allocation2 + $0x99] sm:$0xff] %v9959_v59  ;;  %v9961_v35 = vmax.f32 %v6939_v61, 0.0  ;;  %v9962_v59 = vmax.f32 %v6943_v4, 0.0  ;;  %v9971_v62 = vld [vmem:[#allocation57_spill] sm:$0xff] }
 0x24f   :  { %1258 = vst [vmem:[#allocation2 + $0xa9] sm:$0xff] %v9960_v42  ;;  %1259 = vst [vmem:[#allocation2 + $0xb1] sm:$0xff] %v9798_v54  ;;  %v9801_v42 = vmax.f32 %v6979_v60, 0.0  ;;  %v9963_v54 = vmax.f32 %v6951_v15, 0.0  ;;  %v1157_v8 = vmax.f32 %v9971_v62, 0.0  ;;  %v9973_v55 = vld [vmem:[#allocation61_spill] sm:$0xff] }
 0x250   :  { %1261 = vst [vmem:[#allocation2 + $0xc9] sm:$0xff] %v9961_v35  ;;  %1262 = vst [vmem:[#allocation2 + $0xd9] sm:$0xff] %v9962_v59  ;;  %v9965_v35 = vmax.f32 %v6959_v26, 0.0  ;;  %v1139_v59 = vmax.f32 %v6995_v28, 0.0  ;;  %v1143_v28 = vmax.f32 %v7011_v16, 0.0  ;;  %v1148_v16 = vmax.f32 %v7031_v31, 0.0 }
 0x251   :  { %1263 = vst [vmem:[#allocation2 + $0xe1] sm:$0xff] %v1127_v49  ;;  %1264 = vst [vmem:[#allocation2 + $0xf1] sm:$0xff] %v9963_v54  ;;  %v9966_v54 = vmax.f32 %v6971_v44, 0.0  ;;  %v1156_v31 = vmax.f32 %v7063_v21, 0.0  ;;  %v1164_v21 = vmax.f32 %v7095_v11, 0.0 }
 0x252   :  { %1265 = vst [vmem:[#allocation2 + $0xf9] sm:$0xff] %v9964_v46  ;;  %1266 = vst [vmem:[#allocation2 + $0x109] sm:$0xff] %v9965_v35  ;;  %v9967_v46 = vmax.f32 %v6975_v53, 0.0  ;;  %v9968_v35 = vmax.f32 %v6983_v6, 0.0 }
 0x253   :  { %1267 = vst [vmem:[#allocation2 + $0x111] sm:$0xff] %v1131_v13  ;;  %1268 = vst [vmem:[#allocation2 + $0x121] sm:$0xff] %v9800_v23  ;;  %v9969_v23 = vmax.f32 %v6987_v12, 0.0 }
 0x254   :  { %1269 = vst [vmem:[#allocation2 + $0x129] sm:$0xff] %v9966_v54  ;;  %1270 = vst [vmem:[#allocation2 + $0x139] sm:$0xff] %v9967_v46  ;;  %v1147_v54 = vmax.f32 %v7027_v33, 0.0  ;;  %v1152_v46 = vmax.f32 %v7047_v27, 0.0  ;;  %v1155_v33 = vmax.f32 %v7059_v19, 0.0  ;;  %v1159_v27 = vmax.f32 %v9973_v55, 0.0 }
 0x255   :  { %1271 = vst [vmem:[#allocation2 + $0x141] sm:$0xff] %v9801_v42  ;;  %1272 = vst [vmem:[#allocation2 + $0x151] sm:$0xff] %v9968_v35  ;;  %v9970_v35 = vld [vmem:[#allocation55_spill] sm:$0xff]  ;;  %v1163_v19 = vmax.f32 %v7091_v24, 0.0 }
 0x256   :  { %1273 = vst [vmem:[#allocation2 + $0x159] sm:$0xff] %v9969_v23  ;;  %1274 = vst [vmem:[#allocation2 + $0x169] sm:$0xff] %v1138_v48  ;;  %v1153_v42 = vmax.f32 %v9970_v35, 0.0  ;;  %v1154_v23 = vmax.f32 %v7055_v2, 0.0  ;;  %v1172_v35 = vmax.f32 %v7127_v37, 0.0 }
 0x257   :  { %1275 = vst [vmem:[#allocation2 + $0x171] sm:$0xff] %v1139_v59  ;;  %1276 = vst [vmem:[#allocation2 + $0x181] sm:$0xff] %v1140_v63  ;;  %v9974_v63 = vld [vmem:[#allocation63_spill] sm:$0xff]  ;;  %v1161_v59 = vmax.f32 %v7083_v43, 0.0  ;;  %v1390_v43 = vld [vmem:[#allocation2 + $0x20] sm:$0xff] }
 0x258   :  { %1277 = vst [vmem:[#allocation2 + $0x189] sm:$0xff] %v1141_v58  ;;  %1278 = vst [vmem:[#allocation2 + $0x1c9] sm:$0xff] %v1142_v22  ;;  %v9972_v58 = vld [vmem:[#allocation59_spill] sm:$0xff]  ;;  %v1160_v2 = vmax.f32 %v9974_v63, 0.0  ;;  %v1162_v22 = vmax.f32 %v7087_v0, 0.0  ;;  %v5583_v0 = vld [vmem:[%s9759_s4 + $0x100] sm:$0xff]  }
 0x259   :  { %1279 = vst [vmem:[#allocation2 + $0x1d1] sm:$0xff] %v1143_v28  ;;  %1280 = vst [vmem:[#allocation2 + $0x1e1] sm:$0xff] %v1144_v41  ;;  %v1158_v48 = vmax.f32 %v9972_v58, 0.0  ;;  %v1165_v28 = vmax.f32 %v7099_v3, 0.0  ;;  %v1166_v41 = vmax.f32 %v7103_v51, 0.0  ;;  %v9983_v63 = vmax.f32 %v6891_v14, 0.0 }
 0x25a   :  { %1281 = vst [vmem:[#allocation2 + $0x1e9] sm:$0xff] %v1145_v52  ;;  %1282 = vst [vmem:[#allocation2 + $0x1f9] sm:$0xff] %v1146_v5  ;;  %v1389_v52 = vld [vmem:[#allocation2 + $0x18] sm:$0xff]  ;;  %v1697_v51 = vld [vmem:[#allocation2 + $0x120] sm:$0xff]  ;;  %v9987_v14 = vmax.f32 %v6907_v29, 0.0 }
 0x25b   :  { %1283 = vst [vmem:[#allocation2 + $0x201] sm:$0xff] %v1147_v54  ;;  %1284 = vst [vmem:[#allocation2 + $0x211] sm:$0xff] %v1148_v16  ;;  %v9976_v54 = vld [vmem:[#allocation67_spill] sm:$0xff]  ;;  %v9977_v16 = vld [vmem:[#allocation69_spill] sm:$0xff]  ;;  %v1452_v55 = vpack.c.bf16 %v1390_v43, %v1389_v52  ;;  %v9990_v52 = vmax.f32 %v6915_v7, 0.0  ;;  %v9995_v7 = vmax.f32 %v6935_v56, 0.0 }
 0x25c   :  { %1285 = vst [vmem:[#allocation2 + $0x219] sm:$0xff] %v1149_v32  ;;  %1286 = vst [vmem:[#allocation2 + $0x229] sm:$0xff] %v1150_v47  ;;  %v1168_v24 = vmax.f32 %v9976_v54, 0.0  ;;  %v1169_v11 = vmax.f32 %v9977_v16, 0.0  ;;  %v9978_v32 = vld [vmem:[#allocation71_spill] sm:$0xff]  ;;  %v1602_v58 = vld [vmem:[#allocation2 + $0x112] sm:$0xff] }
 0x25d   :  { %1287 = vst [vmem:[#allocation2 + $0x231] sm:$0xff] %v1151_v10  ;;  %1288 = vst [vmem:[#allocation2 + $0x241] sm:$0xff] %v1152_v46  ;;  %v1170_v3 = vmax.f32 %v9978_v32, 0.0  ;;  %v1698_v47 = vld [vmem:[#allocation2 + $0x128] sm:$0xff]  ;;  %v9979_v10 = vld [vmem:[#allocation74_spill] sm:$0xff]  ;;  %v9994_v16 = vmax.f32 %v6931_v50, 0.0 }
 0x25e   :  { %1289 = vst [vmem:[#allocation2 + $0x249] sm:$0xff] %v1153_v42  ;;  %1290 = vst [vmem:[#allocation2 + $0x259] sm:$0xff] %v1154_v23  ;;  %v9975_v42 = vld [vmem:[#allocation65_spill] sm:$0xff]  ;;  %v1171_v46 = vmax.f32 %v9979_v10, 0.0  ;;  %v9980_v23 = vmax.f32 %v6879_v1, 0.0  ;;  %v7255_v62 = vpack.c.bf16 %v1698_v47, %v1697_v51  ;;  %v1700_v1 = vld [vmem:[#allocation2 + $0x140] sm:$0xff] }
 0x25f   :  { %1291 = vst [vmem:[#allocation2 + $0x261] sm:$0xff] %v1155_v33  ;;  %1292 = vst [vmem:[#allocation2 + $0x271] sm:$0xff] %v1156_v31  ;;  %v1167_v5 = vmax.f32 %v9975_v42, 0.0  ;;  %v9981_v33 = vmax.f32 %v6883_v25, 0.0  ;;  %v9984_v25 = vmax.f32 %v6895_v40, 0.0  ;;  %v1391_v40 = vld [vmem:[#allocation2 + $0x30] sm:$0xff] }
 0x260   :  { %1293 = vst [vmem:[#allocation2 + $0x279] sm:$0xff] %v1157_v8  ;;  %1294 = vst [vmem:[#allocation2 + $0x289] sm:$0xff] %v1158_v48  ;;  %v1601_v8 = vld [vmem:[#allocation2 + $0x10a] sm:$0xff]  ;;  %v1699_v48 = vld [vmem:[#allocation2 + $0x138] sm:$0xff]  ;;  %3237 = vmatprep.mubr.bf16.mxu1 %v7255_v62  ;;  %v9999_v50 = vmax.f32 %v6955_v20, 0.0  ;;  %v10000_v10 = vmax.f32 %v6959_v26, 0.0 }
 0x261   :  { %1295 = vst [vmem:[#allocation2 + $0x291] sm:$0xff] %v1159_v27  ;;  %1296 = vst [vmem:[#allocation2 + $0x2a1] sm:$0xff] %v1160_v2  ;;  %v1548_v31 = vpack.c.bf16 %v9981_v33, %v9980_v23  ;;  %v1654_v37 = vpack.c.bf16 %v1602_v58, %v1601_v8  ;;  %v9982_v27 = vmax.f32 %v6887_v57, 0.0  ;;  %v9986_v57 = vmax.f32 %v6903_v17, 0.0  ;;  %v1392_v17 = vld [vmem:[#allocation2 + $0x38] sm:$0xff]  ;;  %v1603_v42 = vld [vmem:[#allocation2 + $0x122] sm:$0xff] }
 0x262   :  { %1297 = vst [vmem:[#allocation2 + $0x2a9] sm:$0xff] %v1161_v59  ;;  %1298 = vst [vmem:[#allocation2 + $0x2b9] sm:$0xff] %v1162_v22  ;;  %v9985_v59 = vmax.f32 %v6899_v18, 0.0  ;;  %v9988_v18 = vmov 0   ;;  %v1604_v29 = vld [vmem:[#allocation2 + $0x12a] sm:$0xff]  ;;  %v7315_v56 = vpack.c.bf16 %v1131_v13, %v10000_v10  ;;  %v10003_v20 = vmax.f32 %v6975_v53, 0.0 }
 0x263   :  { %1299 = vst [vmem:[#allocation2 + $0x2c1] sm:$0xff] %v1163_v19  ;;  %1300 = vst [vmem:[#allocation2 + $0x2d1] sm:$0xff] %v1164_v21  ;;  %v1549_v2 = vpack.c.bf16 %v9983_v63, %v9982_v27  ;;  %2868 = vmatprep.mubr.bf16.mxu0 %v1548_v31  ;;  %3238 = vmatmul.mubr.bf16.vlgmr.msra.gmra.mrb[0].mxu1 %v1654_v37  ;;  %v7266_v19 = vpack.c.bf16 %v1700_v1, %v1699_v48  ;;  %v1701_v32 = vld [vmem:[#allocation2 + $0x150] sm:$0xff]  ;;  %v10004_v26 = vmax.f32 %v6979_v60, 0.0  ;;  %v1393_v23 = vld [vmem:[#allocation2 + $0x48] sm:$0xff] }
 0x264   :  { %1301 = vst [vmem:[#allocation2 + $0x2d9] sm:$0xff] %v1165_v28  ;;  %1302 = vst [vmem:[#allocation2 + $0x2e9] sm:$0xff] %v1166_v41  ;;  %v1550_v22 = vpack.c.bf16 %v9985_v59, %v9984_v25  ;;  %2869 = vmatmul.mubr.bf16.gmra.mrb[132].mxu0 %v1452_v55  ;;  %v1551_v21 = vpack.c.bf16 %v9987_v14, %v9986_v57  ;;  %3407 = vmatpush1.bf16.msra.mxu1 %v5583_v0  ;;  %v5584_v28 = vld [vmem:[%s9759_s4 + $0x108] sm:$0xff]   ;;  %v9989_v41 = vmax.f32 %v6911_v34, 0.0  ;;  %v1702_v34 = vld [vmem:[#allocation2 + $0x158] sm:$0xff] }
 0x265   :  { %1303 = vst [vmem:[#allocation2 + $0x2f1] sm:$0xff] %v1167_v5  ;;  %1304 = vst [vmem:[#allocation2 + $0x301] sm:$0xff] %v1168_v24  ;;  %2876 = vmatprep.mubr.bf16.mxu0 %v1549_v2  ;;  %3245 = vmatprep.mubr.bf16.mxu1 %v7266_v19  ;;  %v9991_v0 = vmax.f32 %v6919_v36, 0.0  ;;  %v9992_v5 = vmax.f32 %v6923_v39, 0.0  ;;  %v9993_v24 = vmax.f32 %v6927_v45, 0.0  ;;  %v9997_v36 = vmax.f32 %v6943_v4, 0.0 }
 0x266   :  { %1305 = vst [vmem:[#allocation2 + $0x309] sm:$0xff] %v1169_v11  ;;  %1306 = vst [vmem:[#allocation2 + $0x319] sm:$0xff] %v1170_v3  ;;  %3408 = vmatprep.subr.bf16.mxu1 %v9988_v18  ;;  %v1552_v43 = vpack.c.bf16 %v9990_v52, %v9989_v41  ;;  %v9996_v3 = vmax.f32 %v6939_v61, 0.0  ;;  %v9998_v45 = vmax.f32 %v6951_v15, 0.0  ;;  %v10001_v61 = vmax.f32 %v6967_v38, 0.0  ;;  %v5585_v15 = vld [vmem:[%s9759_s4 + $0x110] sm:$0xff]  }
 0x267   :  { %1307 = vst [vmem:[#allocation2 + $0x321] sm:$0xff] %v1171_v46  ;;  %1308 = vst [vmem:[#allocation2 + $0x331] sm:$0xff] %v1172_v35  ;;  %v7285_v54 = vpack.c.bf16 %v9992_v5, %v9991_v0  ;;  %v7291_v11 = vpack.c.bf16 %v9994_v16, %v9993_v24  ;;  %v7303_v39 = vpack.c.bf16 %v1127_v49, %v9997_v36  ;;  %v10002_v4 = vmax.f32 %v6971_v44, 0.0  ;;  %v5586_v53 = vld [vmem:[%s9759_s4 + $0x118] sm:$0xff]   ;;  %v1394_v60 = vld [vmem:[#allocation2 + $0x50] sm:$0xff] }
 0x268   :  { %v7297_v51 = vpack.c.bf16 %v9996_v3, %v9995_v7  ;;  %3409 = vmatpush1.bf16.msra.mxu1 %v5584_v28  ;;  %v7309_v47 = vpack.c.bf16 %v9999_v50, %v9998_v45  ;;  %v1453_v49 = vpack.c.bf16 %v1392_v17, %v1391_v40  ;;  %v1655_v46 = vpack.c.bf16 %v1604_v29, %v1603_v42  ;;  %v1605_v33 = vld [vmem:[#allocation2 + $0x13a] sm:$0xff]  ;;  %v1704_v31 = vld [vmem:[#allocation2 + $0x170] sm:$0xff]  ;;  %v5588_v27 = vld [vmem:[%s9759_s4 + $0x128] sm:$0xff]  }
 0x269   :  { %v7321_v9 = vpack.c.bf16 %v10002_v4, %v10001_v61  ;;  %3410 = vmatprep.subr.bf16.mxu1 %v9988_v18  ;;  %v7331_v30 = vpack.c.bf16 %v10004_v26, %v10003_v20  ;;  %v10005_v38 = vmax.f32 %v6983_v6, 0.0  ;;  %v10006_v44 = vmax.f32 %v6987_v12, 0.0  ;;  %v1606_v6 = vld [vmem:[#allocation2 + $0x142] sm:$0xff]  ;;  %v1607_v2 = vld [vmem:[#allocation2 + $0x152] sm:$0xff]  ;;  %v1608_v1 = vld [vmem:[#allocation2 + $0x15a] sm:$0xff] }
 0x26a   :  { %v7339_v35 = vpack.c.bf16 %v1702_v34, %v1701_v32  ;;  %v1703_v12 = vld [vmem:[#allocation2 + $0x168] sm:$0xff]  ;;  %v1454_v8 = vpack.c.bf16 %v1394_v60, %v1393_v23  ;;  %v1656_v58 = vpack.c.bf16 %v1606_v6, %v1605_v33  ;;  %v5587_v48 = vld [vmem:[%s9759_s4 + $0x120] sm:$0xff]   ;;  %v1657_v57 = vpack.c.bf16 %v1608_v1, %v1607_v2  ;;  %v5589_v14 = vld [vmem:[%s9759_s4 + $0x130] sm:$0xff]  }
 0x26b   :  { %v7337_v13 = vpack.c.bf16 %v10006_v44, %v10005_v38  ;;  %3246 = vmatmul.mubr.bf16.gmra.mrb[4].mxu1 %v1655_v46  ;;  %v7349_v55 = vpack.c.bf16 %v1704_v31, %v1703_v12  ;;  %v1395_v37 = vld [vmem:[#allocation2 + $0x60] sm:$0xff]  ;;  %v1396_v63 = vld [vmem:[#allocation2 + $0x68] sm:$0xff]  ;;  %v1397_v28 = vld [vmem:[#allocation2 + $0x78] sm:$0xff] }
 0x26c   :  { %2877 = vmatmul.mubr.bf16.gmra.mrb[136].mxu0 %v1453_v49  ;;  %3253 = vmatprep.mubr.bf16.mxu1 %v7339_v35  ;;  %v1705_v25 = vld [vmem:[#allocation2 + $0x180] sm:$0xff]  ;;  %v1706_v59 = vld [vmem:[#allocation2 + $0x188] sm:$0xff]  ;;  %v5590_v40 = vld [vmem:[%s9759_s4 + $0x138] sm:$0xff]  }
 0x26d   :  { %2884 = vmatprep.mubr.bf16.mxu0 %v1550_v22  ;;  %3411 = vmatpush1.bf16.msra.mxu1 %v5585_v15  ;;  %v1455_v22 = vpack.c.bf16 %v1396_v63, %v1395_v37  ;;  %v1398_v41 = vld [vmem:[#allocation2 + $0x80] sm:$0xff]  ;;  %v1609_v52 = vld [vmem:[#allocation2 + $0x16a] sm:$0xff]  ;;  %v1610_v17 = vld [vmem:[#allocation2 + $0x172] sm:$0xff] }
 0x26e   :  { %3412 = vmatprep.subr.bf16.mxu1 %v9988_v18  ;;  %v1707_v42 = vld [vmem:[#allocation2 + $0x1c8] sm:$0xff]  ;;  %v1708_v29 = vld [vmem:[#allocation2 + $0x1d0] sm:$0xff]  ;;  %v1456_v0 = vpack.c.bf16 %v1398_v41, %v1397_v28  ;;  %v1658_v5 = vpack.c.bf16 %v1610_v17, %v1609_v52  ;;  %v1612_v32 = vld [vmem:[#allocation2 + $0x1ba] sm:$0xff] }
 0x26f   :  { %v7368_v24 = vpack.c.bf16 %v1708_v29, %v1707_v42  ;;  %v1611_v16 = vld [vmem:[#allocation2 + $0x1b2] sm:$0xff]  ;;  %v5592_v34 = vld [vmem:[%s9759_s4 + $0x148] sm:$0xff]   ;;  %v1709_v45 = vld [vmem:[#allocation2 + $0x1e0] sm:$0xff] }
 0x270   :  { %v1399_v7 = vld [vmem:[#allocation2 + $0x90] sm:$0xff]  ;;  %v1400_v3 = vld [vmem:[#allocation2 + $0x98] sm:$0xff]  ;;  %v1659_v36 = vpack.c.bf16 %v1612_v32, %v1611_v16  ;;  %v1710_v50 = vld [vmem:[#allocation2 + $0x1e8] sm:$0xff] }
 0x271   :  { %3413 = vmatpush1.bf16.msra.mxu1 %v5586_v53  ;;  %v1457_v10 = vpack.c.bf16 %v1400_v3, %v1399_v7  ;;  %v7380_v61 = vpack.c.bf16 %v1710_v50, %v1709_v45  ;;  %v1401_v4 = vld [vmem:[#allocation2 + $0xa8] sm:$0xff]  ;;  %v5594_v49 = vld [vmem:[%s9759_s4 + $0x158] sm:$0xff]   ;;  %v1402_v46 = vld [vmem:[#allocation2 + $0xb0] sm:$0xff] }
 0x272   :  { %3414 = vmatprep.subr.bf16.mxu1 %v9988_v18  ;;  %v1613_v15 = vld [vmem:[#allocation2 + $0x1ca] sm:$0xff]  ;;  %v1614_v20 = vld [vmem:[#allocation2 + $0x1d2] sm:$0xff]  ;;  %v1712_v38 = vld [vmem:[#allocation2 + $0x200] sm:$0xff]  ;;  %v1458_v44 = vpack.c.bf16 %v1402_v46, %v1401_v4 }
 0x273   :  { %3254 = vmatmul.mubr.bf16.gmra.mrb[8].mxu1 %v1656_v58  ;;  %v1711_v26 = vld [vmem:[#allocation2 + $0x1f8] sm:$0xff]  ;;  %v1660_v23 = vpack.c.bf16 %v1614_v20, %v1613_v15  ;;  %v1403_v60 = vld [vmem:[#allocation2 + $0xc0] sm:$0xff]  ;;  %v5596_v33 = vld [vmem:[%s9759_s4 + $0x168] sm:$0xff]  }
 0x274   :  { %2885 = vmatmul.mubr.bf16.gmra.mrb[140].mxu0 %v1454_v8  ;;  %3261 = vmatprep.mubr.bf16.mxu1 %v7349_v55  ;;  %v7392_v53 = vpack.c.bf16 %v1712_v38, %v1711_v26  ;;  %v1404_v6 = vld [vmem:[#allocation2 + $0xc8] sm:$0xff]  ;;  %v1713_v8 = vld [vmem:[#allocation2 + $0x210] sm:$0xff]  ;;  %v1714_v58 = vld [vmem:[#allocation2 + $0x218] sm:$0xff] }
 0x275   :  { %2892 = vmatprep.mubr.bf16.mxu0 %v1551_v21  ;;  %3415 = vmatpush1.bf16.msra.mxu1 %v5587_v48  ;;  %v1754_v21 = vpack.c.bf16 %v1706_v59, %v1705_v25  ;;  %v1615_v12 = vld [vmem:[#allocation2 + $0x1e2] sm:$0xff]  ;;  %v1616_v31 = vld [vmem:[#allocation2 + $0x1ea] sm:$0xff]  ;;  %v1459_v48 = vpack.c.bf16 %v1404_v6, %v1403_v60  ;;  %v1405_v63 = vld [vmem:[#allocation2 + $0xd8] sm:$0xff] }
 0x276   :  { %3416 = vmatprep.subr.bf16.mxu1 %v9988_v18  ;;  %v1661_v37 = vpack.c.bf16 %v1616_v31, %v1615_v12  ;;  %v5598_v2 = vld [vmem:[%s9759_s4 + $0x178] sm:$0xff]   ;;  %v1406_v1 = vld [vmem:[#allocation2 + $0xe0] sm:$0xff]  ;;  %v1718_v42 = vld [vmem:[#allocation2 + $0x248] sm:$0xff] }
 0x277   :  { %v1617_v25 = vld [vmem:[#allocation2 + $0x1fa] sm:$0xff]  ;;  %v1618_v59 = vld [vmem:[#allocation2 + $0x202] sm:$0xff]  ;;  %v1619_v41 = vld [vmem:[#allocation2 + $0x212] sm:$0xff] }
 0x278   :  { %v1620_v52 = vld [vmem:[#allocation2 + $0x21a] sm:$0xff]  ;;  %v1621_v16 = vld [vmem:[#allocation2 + $0x22a] sm:$0xff]  ;;  %v1622_v32 = vld [vmem:[#allocation2 + $0x232] sm:$0xff] }
 0x279   :  { %3417 = vmatpush1.bf16.msra.mxu1 %v5588_v27  ;;  %v7404_v27 = vpack.c.bf16 %v1714_v58, %v1713_v8  ;;  %v1717_v17 = vld [vmem:[#allocation2 + $0x240] sm:$0xff]  ;;  %v1723_v20 = vld [vmem:[#allocation2 + $0x288] sm:$0xff]  ;;  %v1630_v8 = vld [vmem:[#allocation2 + $0x292] sm:$0xff] }
 0x27a   :  { %3418 = vmatprep.subr.bf16.mxu1 %v9988_v18  ;;  %v1720_v7 = vld [vmem:[#allocation2 + $0x260] sm:$0xff]  ;;  %v1726_v60 = vld [vmem:[#allocation2 + $0x2a8] sm:$0xff]  ;;  %v1727_v58 = vld [vmem:[#allocation2 + $0x2b8] sm:$0xff] }
 0x27b   :  { %3262 = vmatmul.mubr.bf16.gmra.mrb[12].mxu1 %v1657_v57  ;;  %v1716_v57 = vld [vmem:[#allocation2 + $0x230] sm:$0xff]  ;;  %v1623_v50 = vld [vmem:[#allocation2 + $0x242] sm:$0xff]  ;;  %v1625_v46 = vld [vmem:[#allocation2 + $0x25a] sm:$0xff] }
 0x27c   :  { %2893 = vmatmul.mubr.bf16.gmra.mrb[144].mxu0 %v1455_v22  ;;  %3269 = vmatprep.mubr.bf16.mxu1 %v1754_v21  ;;  %v1715_v22 = vld [vmem:[#allocation2 + $0x228] sm:$0xff]  ;;  %v1662_v21 = vpack.c.bf16 %v1618_v59, %v1617_v25  ;;  %v1518_v25 = vld [vmem:[#allocation2 + $0x1d1] sm:$0xff] }
 0x27d   :  { %2900 = vmatprep.mubr.bf16.mxu0 %v1552_v43  ;;  %3419 = vmatpush1.bf16.msra.mxu1 %v5589_v14  ;;  %v5591_v43 = vld [vmem:[%s9759_s4 + $0x140] sm:$0xff]   ;;  %v1460_v14 = vpack.c.bf16 %v1406_v1, %v1405_v63  ;;  %v7413_v28 = vpack.c.bf16 %v1716_v57, %v1715_v22  ;;  %v1629_v31 = vld [vmem:[#allocation2 + $0x28a] sm:$0xff]  ;;  %v1730_v22 = vld [vmem:[#allocation2 + $0x2d8] sm:$0xff] }
 0x27e   :  { %3420 = vmatprep.subr.bf16.mxu1 %v9988_v18  ;;  %v1626_v15 = vld [vmem:[#allocation2 + $0x262] sm:$0xff]  ;;  %v1729_v59 = vld [vmem:[#allocation2 + $0x2d0] sm:$0xff] }
 0x27f   :  { %v1666_v26 = vpack.c.bf16 %v1626_v15, %v1625_v46  ;;  %v1517_v1 = vld [vmem:[#allocation2 + $0x1c9] sm:$0xff]  ;;  %v1735_v46 = vld [vmem:[#allocation2 + $0x318] sm:$0xff]  ;;  %v1736_v15 = vld [vmem:[#allocation2 + $0x320] sm:$0xff] }
 0x281   :  { %3421 = vmatpush1.bf16.msra.mxu1 %v5590_v40  ;;  %v1408_v40 = vld [vmem:[#allocation2 + $0xf8] sm:$0xff] }
 0x282   :  { %3422 = vmatprep.subr.bf16.mxu1 %v9988_v18 }
 0x283   :  { %3270 = vmatmul.mubr.bf16.gmra.mrb[16].mxu1 %v1658_v5  ;;  %v7418_v5 = vpack.c.bf16 %v1718_v42, %v1717_v17  ;;  %v1731_v17 = vld [vmem:[#allocation2 + $0x2e8] sm:$0xff]  ;;  %v1732_v42 = vld [vmem:[#allocation2 + $0x2f0] sm:$0xff] }
 0x284   :  { %2901 = vmatmul.mubr.bf16.gmra.mrb[148].mxu0 %v1456_v0  ;;  %3277 = vmatprep.mubr.bf16.mxu1 %v7368_v24  ;;  %v1663_v0 = vpack.c.bf16 %v1620_v52, %v1619_v41  ;;  %v1519_v41 = vld [vmem:[#allocation2 + $0x1e1] sm:$0xff]  ;;  %v1520_v52 = vld [vmem:[#allocation2 + $0x1e9] sm:$0xff] }
 0x285   :  { %2908 = vmatprep.mubr.bf16.mxu0 %v7285_v54  ;;  %3423 = vmatpush1.bf16.msra.mxu1 %v5591_v43  ;;  %v5593_v54 = vld [vmem:[%s9759_s4 + $0x150] sm:$0xff]   ;;  %v1409_v43 = vld [vmem:[#allocation2 + $0x108] sm:$0xff] }
 0x286   :  { %3424 = vmatprep.subr.bf16.mxu1 %v9988_v18 }
 0x289   :  { %3425 = vmatpush1.bf16.msra.mxu1 %v5592_v34  ;;  %v1719_v34 = vld [vmem:[#allocation2 + $0x258] sm:$0xff] }
 0x28a   :  { %3426 = vmatprep.subr.bf16.mxu1 %v9988_v18  ;;  %v7422_v45 = vpack.c.bf16 %v1720_v7, %v1719_v34  ;;  %v1522_v34 = vld [vmem:[#allocation2 + $0x201] sm:$0xff] }
 0x28b   :  { %3278 = vmatmul.mubr.bf16.gmra.mrb[20].mxu1 %v1659_v36  ;;  %v1664_v36 = vpack.c.bf16 %v1622_v32, %v1621_v16  ;;  %v1636_v16 = vld [vmem:[#allocation2 + $0x2da] sm:$0xff] }
 0x28c   :  { %2909 = vmatmul.mubr.bf16.gmra.mrb[152].mxu0 %v1457_v10  ;;  %3285 = vmatprep.mubr.bf16.mxu1 %v7380_v61  ;;  %v1721_v10 = vld [vmem:[#allocation2 + $0x270] sm:$0xff]  ;;  %v1521_v32 = vld [vmem:[#allocation2 + $0x1f9] sm:$0xff] }
 0x28d   :  { %2916 = vmatprep.mubr.bf16.mxu0 %v7291_v11  ;;  %3427 = vmatpush1.bf16.msra.mxu1 %v5593_v54  ;;  %v5595_v11 = vld [vmem:[%s9759_s4 + $0x160] sm:$0xff]   ;;  %v1722_v54 = vld [vmem:[#allocation2 + $0x278] sm:$0xff] }
 0x28e   :  { %3428 = vmatprep.subr.bf16.mxu1 %v9988_v18  ;;  %v1733_v7 = vld [vmem:[#allocation2 + $0x300] sm:$0xff] }
 0x291   :  { %3429 = vmatpush1.bf16.msra.mxu1 %v5594_v49  ;;  %v7426_v49 = vpack.c.bf16 %v1722_v54, %v1721_v10  ;;  %v1638_v10 = vld [vmem:[#allocation2 + $0x2f2] sm:$0xff] }
 0x292   :  { %3430 = vmatprep.subr.bf16.mxu1 %v9988_v18  ;;  %v1523_v54 = vld [vmem:[#allocation2 + $0x211] sm:$0xff] }
 0x293   :  { %3286 = vmatmul.mubr.bf16.gmra.mrb[24].mxu1 %v1660_v23  ;;  %v1513_v23 = vld [vmem:[#allocation2 + $0x169] sm:$0xff] }
 0x294   :  { %2917 = vmatmul.mubr.bf16.gmra.mrb[156].mxu0 %v1458_v44  ;;  %3293 = vmatprep.mubr.bf16.mxu1 %v7392_v53  ;;  %v1628_v44 = vld [vmem:[#allocation2 + $0x27a] sm:$0xff] }
 0x295   :  { %2924 = vmatprep.mubr.bf16.mxu0 %v7297_v51  ;;  %3431 = vmatpush1.bf16.msra.mxu1 %v5595_v11  ;;  %v5597_v51 = vld [vmem:[%s9759_s4 + $0x170] sm:$0xff]   ;;  %v1725_v11 = vld [vmem:[#allocation2 + $0x2a0] sm:$0xff] }
 0x296   :  { %3432 = vmatprep.subr.bf16.mxu1 %v9988_v18  ;;  %v7438_v12 = vpack.c.bf16 %v1726_v60, %v1725_v11  ;;  %v1738_v11 = vld [vmem:[#allocation2 + $0x338] sm:$0xff] }
 0x299   :  { %3433 = vmatpush1.bf16.msra.mxu1 %v5596_v33 }
 0x29a   :  { %3434 = vmatprep.subr.bf16.mxu1 %v9988_v18 }
 0x29b   :  { %3294 = vmatmul.mubr.bf16.gmra.mrb[28].mxu1 %v1661_v37 }
 0x29c   :  { %2925 = vmatmul.mubr.bf16.gmra.mrb[160].mxu0 %v1459_v48  ;;  %3301 = vmatprep.mubr.bf16.mxu1 %v7404_v27  ;;  %v1728_v48 = vld [vmem:[#allocation2 + $0x2c0] sm:$0xff] }
 0x29d   :  { %2932 = vmatprep.mubr.bf16.mxu0 %v7303_v39  ;;  %3435 = vmatpush1.bf16.msra.mxu1 %v5597_v51  ;;  %v1407_v39 = vld [vmem:[#allocation2 + $0xf0] sm:$0xff]  ;;  %v1668_v51 = vpack.c.bf16 %v1630_v8, %v1629_v31  ;;  %v7443_v63 = vpack.c.bf16 %v1728_v48, %v1727_v58  ;;  %v1527_v31 = vld [vmem:[#allocation2 + $0x241] sm:$0xff] }
 0x29e   :  { %3436 = vmatprep.subr.bf16.mxu1 %v9988_v18  ;;  %v1461_v29 = vpack.c.bf16 %v1408_v40, %v1407_v39  ;;  %v10007_v39 = vmov 0.0|0.0   ;;  %v1634_v40 = vld [vmem:[#allocation2 + $0x2c2] sm:$0xff]  ;;  %v1867_v58 = vld [vmem:[#allocation2 + $0x1a] sm:$0xff] }
 0x29f   :  { %v1528_v8 = vld [vmem:[#allocation2 + $0x249] sm:$0xff] }
 0x2a0   :  { %v1868_v48 = vld [vmem:[#allocation2 + $0x22] sm:$0xff] }
 0x2a1   :  { %3437 = vmatpush1.bf16.msra.mxu1 %v5598_v2  ;;  %v1632_v2 = vld [vmem:[#allocation2 + $0x2aa] sm:$0xff] }
 0x2a2   :  { %3695 = vmatprep.subr.bf16.mxu1 %v9988_v18 }
 0x2a3   :  { %3302 = vmatmul.mubr.bf16.gmra.mrb[32].mxu1 %v1662_v21  ;;  %v7449_v21 = vpack.c.bf16 %v1730_v22, %v1729_v59  ;;  %v5599_v59 = vld [vmem:[%s9759_s4 + $0x180] sm:$0xff]   ;;  %v1869_v22 = vld [vmem:[#allocation2 + $0x32] sm:$0xff] }
 0x2a4   :  { %2933 = vmatmul.mubr.bf16.gmra.mrb[164].mxu0 %v1460_v14  ;;  %3309 = vmatprep.mubr.bf16.mxu1 %v7413_v28  ;;  %v7447_v14 = vpack.c.bf16 %v1518_v25, %v1517_v1  ;;  %v1529_v1 = vld [vmem:[#allocation2 + $0x259] sm:$0xff]  ;;  %v1530_v25 = vld [vmem:[#allocation2 + $0x261] sm:$0xff] }
 0x2a5   :  { %2940 = vmatprep.mubr.bf16.mxu0 %v7309_v47  ;;  %v1410_v47 = vld [vmem:[#allocation2 + $0x110] sm:$0xff] }
 0x2a6   :  { %v1462_v3 = vpack.c.bf16 %v1410_v47, %v1409_v43  ;;  %v7456_v43 = vpack.c.bf16 %v1732_v42, %v1731_v17  ;;  %v1635_v47 = vld [vmem:[#allocation2 + $0x2d2] sm:$0xff] }
 0x2a7   :  { %v1531_v17 = vld [vmem:[#allocation2 + $0x271] sm:$0xff]  ;;  %v1532_v42 = vld [vmem:[#allocation2 + $0x279] sm:$0xff] }
 0x2ab   :  { %3310 = vmatmul.mubr.bf16.gmra.mrb[36].mxu1 %v1663_v0  ;;  %v7454_v0 = vpack.c.bf16 %v1520_v52, %v1519_v41  ;;  %v1773_v41 = vld [vmem:[#allocation2 + $0x31] sm:$0xff]  ;;  %v1774_v52 = vld [vmem:[#allocation2 + $0x39] sm:$0xff] }
 0x2ac   :  { %2941 = vmatmul.mubr.bf16.gmra.mrb[168].mxu0 %v1461_v29  ;;  %3317 = vmatprep.mubr.bf16.mxu1 %v7418_v5 }
 0x2ad   :  { %2948 = vmatprep.mubr.bf16.mxu0 %v7315_v56  ;;  %v1624_v56 = vld [vmem:[#allocation2 + $0x24a] sm:$0xff] }
 0x2ae   :  { %v1665_v4 = vpack.c.bf16 %v1624_v56, %v1623_v50  ;;  %v7461_v50 = vpack.c.bf16 %v1522_v34, %v1521_v32  ;;  %v7504_v32 = vpack.c.bf16 %v1532_v42, %v1531_v17  ;;  %v1879_v17 = vld [vmem:[#allocation2 + $0xaa] sm:$0xff]  ;;  %v1880_v42 = vld [vmem:[#allocation2 + $0xb2] sm:$0xff] }
 0x2b3   :  { %3318 = vmatmul.mubr.bf16.gmra.mrb[40].mxu1 %v1664_v36  ;;  %v1671_v36 = vpack.c.bf16 %v1636_v16, %v1635_v47  ;;  %v1836_v47 = vpack.c.bf16 %v1774_v52, %v1773_v41  ;;  %v5601_v16 = vld [vmem:[%s9759_s4 + $0x190] sm:$0xff]   ;;  %v1540_v52 = vld [vmem:[#allocation2 + $0x2d9] sm:$0xff] }
 0x2b4   :  { %2949 = vmatmul.mubr.bf16.gmra.mrb[172].mxu0 %v1462_v3  ;;  %3325 = vmatprep.mubr.bf16.mxu1 %v7422_v45  ;;  %v1734_v3 = vld [vmem:[#allocation2 + $0x308] sm:$0xff]  ;;  %v1539_v41 = vld [vmem:[#allocation2 + $0x2d1] sm:$0xff] }
 0x2b5   :  { %2956 = vmatprep.mubr.bf16.mxu0 %v7321_v9  ;;  %v1724_v9 = vld [vmem:[#allocation2 + $0x290] sm:$0xff]  ;;  %v7463_v56 = vpack.c.bf16 %v1734_v3, %v1733_v7  ;;  %v7512_v7 = vld [vmem:[%s9759_s4 + $0x200] sm:$0xff]   ;;  %v5602_v3 = vld [vmem:[%s9759_s4 + $0x198] sm:$0xff]  }
 0x2b6   :  { %v7431_v38 = vpack.c.bf16 %v1724_v9, %v1723_v20  ;;  %5076 = vmatprep.subr.bf16.mxu0 %v7512_v7 }
 0x2bb   :  { %3326 = vmatmul.mubr.bf16.gmra.mrb[44].mxu1 %v1665_v4  ;;  %v1524_v4 = vld [vmem:[#allocation2 + $0x219] sm:$0xff] }
 0x2bc   :  { %2957 = vmatmul.mubr.bf16.gmra.mrb[176].mxu0 %v7255_v62  ;;  %3333 = vmatprep.mubr.bf16.mxu1 %v7426_v49  ;;  %v1627_v62 = vld [vmem:[#allocation2 + $0x272] sm:$0xff]  ;;  %v7468_v9 = vpack.c.bf16 %v1524_v4, %v1523_v54  ;;  %v1873_v54 = vld [vmem:[#allocation2 + $0x62] sm:$0xff]  ;;  %v1874_v4 = vld [vmem:[#allocation2 + $0x6a] sm:$0xff] }
 0x2bd   :  { %2964 = vmatprep.mubr.bf16.mxu0 %v7331_v30  ;;  %v1514_v30 = vld [vmem:[#allocation2 + $0x171] sm:$0xff]  ;;  %v1667_v33 = vpack.c.bf16 %v1628_v44, %v1627_v62  ;;  %v1525_v44 = vld [vmem:[#allocation2 + $0x229] sm:$0xff] }
 0x2be   :  { %v7436_v6 = vpack.c.bf16 %v1514_v30, %v1513_v23  ;;  %v1640_v62 = vld [vmem:[#allocation2 + $0x30a] sm:$0xff] }
 0x2bf   :  { %v1526_v23 = vld [vmem:[#allocation2 + $0x231] sm:$0xff] }
 0x2c0   :  { %v1737_v30 = vld [vmem:[#allocation2 + $0x330] sm:$0xff] }
 0x2c3   :  { %3334 = vmatmul.mubr.bf16.gmra.mrb[48].mxu1 %v1666_v26  ;;  %v7470_v26 = vpack.c.bf16 %v1736_v15, %v1735_v46  ;;  %v5603_v15 = vld [vmem:[%s9759_s4 + $0x1a0] sm:$0xff]  }
 0x2c4   :  { %2965 = vmatmul.mubr.bf16.gmra.mrb[180].mxu0 %v7266_v19  ;;  %3341 = vmatprep.mubr.bf16.mxu1 %v7431_v38  ;;  %v1515_v19 = vld [vmem:[#allocation2 + $0x1b1] sm:$0xff] }
 0x2c5   :  { %2972 = vmatprep.mubr.bf16.mxu0 %v7337_v13  ;;  %v1516_v13 = vld [vmem:[#allocation2 + $0x1b9] sm:$0xff] }
 0x2c6   :  { %v1563_v37 = vpack.c.bf16 %v1516_v13, %v1515_v19  ;;  %v1770_v19 = vpack.c.bf16 %v1738_v11, %v1737_v30  ;;  %v1642_v13 = vld [vmem:[#allocation2 + $0x322] sm:$0xff] }
 0x2c7   :  { %v1535_v30 = vld [vmem:[#allocation2 + $0x2a1] sm:$0xff]  ;;  %v1536_v11 = vld [vmem:[#allocation2 + $0x2a9] sm:$0xff] }
 0x2cb   :  { %3342 = vmatmul.mubr.bf16.gmra.mrb[52].mxu1 %v1667_v33  ;;  %v7475_v33 = vpack.c.bf16 %v1526_v23, %v1525_v44  ;;  %v1777_v44 = vld [vmem:[#allocation2 + $0x61] sm:$0xff]  ;;  %v1778_v23 = vld [vmem:[#allocation2 + $0x69] sm:$0xff] }
 0x2cc   :  { %2973 = vmatmul.mubr.bf16.gmra.mrb[184].mxu0 %v7339_v35  ;;  %3349 = vmatprep.mubr.bf16.mxu1 %v7438_v12  ;;  %v1631_v35 = vld [vmem:[#allocation2 + $0x2a2] sm:$0xff] }
 0x2cd   :  { %2980 = vmatprep.mubr.bf16.mxu0 %v7436_v6  ;;  %v1669_v57 = vpack.c.bf16 %v1632_v2, %v1631_v35  ;;  %v7481_v35 = vpack.c.bf16 %v1868_v48, %v1867_v58  ;;  %v1772_v2 = vld [vmem:[#allocation2 + $0x21] sm:$0xff]  ;;  %v1779_v58 = vld [vmem:[#allocation2 + $0x79] sm:$0xff] }
 0x2ce   :  { %v1780_v48 = vld [vmem:[#allocation2 + $0x81] sm:$0xff] }
 0x2d3   :  { %3350 = vmatmul.mubr.bf16.gmra.mrb[56].mxu1 %v1668_v51  ;;  %v7479_v51 = vpack.c.bf16 %v1528_v8, %v1527_v31  ;;  %v5606_v8 = vld [vmem:[%s9759_s4 + $0x1b8] sm:$0xff]  }
 0x2d4   :  { %2981 = vmatmul.mubr.bf16.gmra.mrb[188].mxu0 %v7349_v55  ;;  %3357 = vmatprep.mubr.bf16.mxu1 %v7443_v63  ;;  %v1633_v55 = vld [vmem:[#allocation2 + $0x2ba] sm:$0xff] }
 0x2d5   :  { %2988 = vmatprep.mubr.bf16.mxu0 %v1563_v37  ;;  %v1670_v29 = vpack.c.bf16 %v1634_v40, %v1633_v55  ;;  %v7489_v55 = vpack.c.bf16 %v1530_v25, %v1529_v1  ;;  %v5600_v40 = vld [vmem:[%s9759_s4 + $0x188] sm:$0xff]   ;;  %v1878_v1 = vld [vmem:[#allocation2 + $0x9a] sm:$0xff]  ;;  %v1839_v25 = vpack.c.bf16 %v1780_v48, %v1779_v58  ;;  %v1885_v48 = vld [vmem:[#allocation2 + $0xf2] sm:$0xff] }
 0x2d6   :  { %v1546_v58 = vld [vmem:[#allocation2 + $0x321] sm:$0xff] }
 0x2db   :  { %3358 = vmatmul.mubr.bf16.gmra.mrb[60].mxu1 %v1669_v57  ;;  %v1870_v57 = vld [vmem:[#allocation2 + $0x3a] sm:$0xff] }
 0x2dc   :  { %2989 = vmatmul.mubr.bf16.gmra.mrb[192].mxu0 %v10007_v39  ;;  %3365 = vmatprep.mubr.bf16.mxu1 %v7449_v21 }
 0x2dd   :  { %2996 = vmatprep.mubr.bf16.mxu0 %v7447_v14 }
 0x2e3   :  { %3366 = vmatmul.mubr.bf16.gmra.mrb[64].mxu1 %v1670_v29  ;;  %v1871_v29 = vld [vmem:[#allocation2 + $0x4a] sm:$0xff] }
 0x2e4   :  { %2997 = vmatmul.mubr.bf16.gmra.mrb[196].mxu0 %v7368_v24  ;;  %3373 = vmatprep.mubr.bf16.mxu1 %v7456_v43  ;;  %v1637_v24 = vld [vmem:[#allocation2 + $0x2ea] sm:$0xff] }
 0x2e5   :  { %3004 = vmatprep.mubr.bf16.mxu0 %v7454_v0  ;;  %v1672_v20 = vpack.c.bf16 %v1638_v10, %v1637_v24  ;;  %v1776_v24 = vld [vmem:[#allocation2 + $0x51] sm:$0xff] }
 0x2e6   :  { %v1534_v10 = vld [vmem:[#allocation2 + $0x291] sm:$0xff] }
 0x2eb   :  { %3374 = vmatmul.mubr.bf16.gmra.mrb[68].mxu1 %v1671_v36  ;;  %v1775_v36 = vld [vmem:[#allocation2 + $0x49] sm:$0xff] }
 0x2ec   :  { %3005 = vmatmul.mubr.bf16.gmra.mrb[200].mxu0 %v7380_v61  ;;  %3381 = vmatprep.mubr.bf16.mxu1 %v7463_v56  ;;  %v1639_v61 = vld [vmem:[#allocation2 + $0x302] sm:$0xff]  ;;  %v1837_v46 = vpack.c.bf16 %v1776_v24, %v1775_v36  ;;  %v1542_v24 = vld [vmem:[#allocation2 + $0x2f1] sm:$0xff] }
 0x2ed   :  { %3012 = vmatprep.mubr.bf16.mxu0 %v7461_v50  ;;  %v1673_v60 = vpack.c.bf16 %v1640_v62, %v1639_v61  ;;  %v7526_v61 = vpack.c.bf16 %v1874_v4, %v1873_v54  ;;  %v5604_v62 = vld [vmem:[%s9759_s4 + $0x1a8] sm:$0xff]  }
 0x2ee   :  { %v1541_v36 = vld [vmem:[#allocation2 + $0x2e9] sm:$0xff] }
 0x2ef   :  { %v7578_v4 = vpack.c.bf16 %v1542_v24, %v1541_v36  ;;  %v1678_v24 = vld [vmem:[#allocation2 + $0x38] sm:$0xff] }
 0x2f3   :  { %3382 = vmatmul.mubr.bf16.gmra.mrb[72].mxu1 %v1672_v20 }
 0x2f4   :  { %3013 = vmatmul.mubr.bf16.gmra.mrb[204].mxu0 %v7392_v53  ;;  %3389 = vmatprep.mubr.bf16.mxu1 %v7470_v26  ;;  %v1641_v53 = vld [vmem:[#allocation2 + $0x31a] sm:$0xff] }
 0x2f5   :  { %3020 = vmatprep.mubr.bf16.mxu0 %v7468_v9  ;;  %v1674_v37 = vpack.c.bf16 %v1642_v13, %v1641_v53  ;;  %v1838_v53 = vpack.c.bf16 %v1778_v23, %v1777_v44  ;;  %v7539_v13 = vpack.c.bf16 %v1536_v11, %v1535_v30  ;;  %v1543_v44 = vld [vmem:[#allocation2 + $0x301] sm:$0xff]  ;;  %v1544_v23 = vld [vmem:[#allocation2 + $0x309] sm:$0xff] }
 0x2f6   :  { %v1883_v30 = vld [vmem:[#allocation2 + $0xda] sm:$0xff]  ;;  %v1884_v11 = vld [vmem:[#allocation2 + $0xe2] sm:$0xff] }
 0x2fb   :  { %3390 = vmatmul.mubr.bf16.gmra.mrb[76].mxu1 %v1673_v60  ;;  %v1875_v60 = vld [vmem:[#allocation2 + $0x7a] sm:$0xff] }
 0x2fc   :  { %3021 = vmatmul.mubr.bf16.gmra.mrb[208].mxu0 %v7404_v27  ;;  %3397 = vmatprep.mubr.bf16.mxu1 %v1770_v19  ;;  %v1771_v27 = vld [vmem:[#allocation2 + $0x19] sm:$0xff]  ;;  %v1876_v19 = vld [vmem:[#allocation2 + $0x82] sm:$0xff] }
 0x2fd   :  { %3028 = vmatprep.mubr.bf16.mxu0 %v7475_v33  ;;  %v1835_v39 = vpack.c.bf16 %v1772_v2, %v1771_v27  ;;  %v7541_v31 = vpack.c.bf16 %v1876_v19, %v1875_v60  ;;  %v1538_v27 = vld [vmem:[#allocation2 + $0x2c1] sm:$0xff]  ;;  %v1877_v2 = vld [vmem:[#allocation2 + $0x92] sm:$0xff]  ;;  %v7591_v19 = vpack.c.bf16 %v1884_v11, %v1883_v30 }
 0x2fe   :  { %v1679_v30 = vld [vmem:[#allocation2 + $0x48] sm:$0xff]  ;;  %v5611_v11 = vld [vmem:[%s9759_s4 + $0x210] sm:$0xff]  }
 0x303   :  { %3398 = vmatmul.mubr.bf16.gmra.mrb[80].mxu1 %v1674_v37  ;;  %v1537_v37 = vld [vmem:[#allocation2 + $0x2b9] sm:$0xff] }
 0x304   :  { %3029 = vmatmul.mubr.bf16.gmra.mrb[212].mxu0 %v7413_v28  ;;  %3438 = vmatprep.mubr.bf16.mxu1 %v7481_v35  ;;  %v7492_v28 = vpack.c.bf16 %v1870_v57, %v1869_v22  ;;  %v7556_v22 = vpack.c.bf16 %v1878_v1, %v1877_v2  ;;  %v5610_v57 = vld [vmem:[%s9759_s4 + $0x1c8] sm:$0xff]  }
 0x305   :  { %3036 = vmatprep.mubr.bf16.mxu0 %v7479_v51 }
 0x30b   :  { %3439 = vmatmul.mubr.bf16.vlgmr.msra.gmra.mrb[84].mxu1 %v1835_v39  ;;  %v1781_v39 = vld [vmem:[#allocation2 + $0x91] sm:$0xff] }
 0x30c   :  { %3037 = vmatmul.mubr.bf16.gmra.mrb[216].mxu0 %v7418_v5  ;;  %3696 = vmatpush1.bf16.msra.mxu1 %v5599_v59  ;;  %v1872_v5 = vld [vmem:[#allocation2 + $0x52] sm:$0xff]  ;;  %v7554_v59 = vpack.c.bf16 %v1538_v27, %v1537_v37  ;;  %v1886_v37 = vld [vmem:[#allocation2 + $0xfa] sm:$0xff] }
 0x30d   :  { %3044 = vmatprep.mubr.bf16.mxu0 %v7489_v55  ;;  %3446 = vmatprep.mubr.bf16.mxu1 %v7492_v28  ;;  %v7506_v34 = vpack.c.bf16 %v1872_v5, %v1871_v29  ;;  %v7569_v5 = vpack.c.bf16 %v1540_v52, %v1539_v41  ;;  %v7598_v1 = vpack.c.bf16 %v1886_v37, %v1885_v48  ;;  %v1888_v41 = vld [vmem:[#allocation2 + $0x112] sm:$0xff] }
 0x30e   :  { %3697 = vmatprep.subr.bf16.mxu1 %v9988_v18  ;;  %v1795_v37 = vld [vmem:[#allocation2 + $0x139] sm:$0xff] }
 0x310   :  { %3698 = vmatpush1.bf16.msra.mxu1 %v5600_v40  ;;  %v1782_v40 = vld [vmem:[#allocation2 + $0x99] sm:$0xff] }
 0x311   :  { %3699 = vmatprep.subr.bf16.mxu1 %v9988_v18  ;;  %v1840_v29 = vpack.c.bf16 %v1782_v40, %v1781_v39  ;;  %v1676_v39 = vld [vmem:[#allocation2 + $0x20] sm:$0xff]  ;;  %v1887_v40 = vld [vmem:[#allocation2 + $0x10a] sm:$0xff] }
 0x313   :  { %3447 = vmatmul.mubr.bf16.gmra.mrb[88].mxu1 %v1836_v47  ;;  %v7571_v47 = vpack.c.bf16 %v1880_v42, %v1879_v17  ;;  %v7607_v17 = vpack.c.bf16 %v1888_v41, %v1887_v40  ;;  %v1579_v42 = vld [vmem:[#allocation2 + $0x2] sm:$0xff] }
 0x314   :  { %3045 = vmatmul.mubr.bf16.gmra.mrb[220].mxu0 %v7422_v45  ;;  %3454 = vmatprep.mubr.bf16.mxu1 %v7506_v34  ;;  %v1533_v45 = vld [vmem:[#allocation2 + $0x289] sm:$0xff] }
 0x315   :  { %3052 = vmatprep.mubr.bf16.mxu0 %v7504_v32  ;;  %3700 = vmatpush1.bf16.msra.mxu1 %v5601_v16  ;;  %v7524_v20 = vpack.c.bf16 %v1534_v10, %v1533_v45  ;;  %v1783_v16 = vld [vmem:[#allocation2 + $0xa9] sm:$0xff] }
 0x316   :  { %3701 = vmatprep.subr.bf16.mxu1 %v9988_v18  ;;  %v1881_v45 = vld [vmem:[#allocation2 + $0xc2] sm:$0xff]  ;;  %v1882_v10 = vld [vmem:[#allocation2 + $0xca] sm:$0xff] }
 0x319   :  { %3702 = vmatpush1.bf16.msra.mxu1 %v5602_v3  ;;  %v1784_v3 = vld [vmem:[#allocation2 + $0xb1] sm:$0xff] }
 0x31a   :  { %3703 = vmatprep.subr.bf16.mxu1 %v9988_v18  ;;  %v1841_v54 = vpack.c.bf16 %v1784_v3, %v1783_v16  ;;  %v1792_v16 = vld [vmem:[#allocation2 + $0x111] sm:$0xff] }
 0x31b   :  { %3455 = vmatmul.mubr.bf16.gmra.mrb[92].mxu1 %v1837_v46  ;;  %v7580_v46 = vpack.c.bf16 %v1882_v10, %v1881_v45  ;;  %v1677_v3 = vld [vmem:[#allocation2 + $0x30] sm:$0xff]  ;;  %v1889_v45 = vld [vmem:[#allocation2 + $0x122] sm:$0xff] }
 0x31c   :  { %3053 = vmatmul.mubr.bf16.gmra.mrb[224].mxu0 %v7426_v49  ;;  %3462 = vmatprep.mubr.bf16.mxu1 %v7526_v61  ;;  %v5605_v49 = vld [vmem:[%s9759_s4 + $0x1b0] sm:$0xff]  }
 0x31d   :  { %3060 = vmatprep.mubr.bf16.mxu0 %v7524_v20  ;;  %3704 = vmatpush1.bf16.msra.mxu1 %v5603_v15  ;;  %v1785_v15 = vld [vmem:[#allocation2 + $0xc1] sm:$0xff]  ;;  %v1890_v10 = vld [vmem:[#allocation2 + $0x12a] sm:$0xff] }
 0x31e   :  { %3705 = vmatprep.subr.bf16.mxu1 %v9988_v18 }
 0x321   :  { %3706 = vmatpush1.bf16.msra.mxu1 %v5604_v62  ;;  %v1786_v62 = vld [vmem:[#allocation2 + $0xc9] sm:$0xff] }
 0x322   :  { %3707 = vmatprep.subr.bf16.mxu1 %v9988_v18  ;;  %v1842_v60 = vpack.c.bf16 %v1786_v62, %v1785_v15  ;;  %v7613_v15 = vpack.c.bf16 %v1890_v10, %v1889_v45  ;;  %v5620_v62 = vld [vmem:[%s9759_s4 + $0x1e8] sm:$0xff]  }
 0x323   :  { %3463 = vmatmul.mubr.bf16.gmra.mrb[96].mxu1 %v1838_v53  ;;  %v1787_v53 = vld [vmem:[#allocation2 + $0xd9] sm:$0xff] }
 0x324   :  { %3061 = vmatmul.mubr.bf16.gmra.mrb[228].mxu0 %v7431_v38  ;;  %3470 = vmatprep.mubr.bf16.mxu1 %v7541_v31  ;;  %v5607_v38 = vld [vmem:[%s9759_s4 + $0x1c0] sm:$0xff]  }
 0x325   :  { %3068 = vmatprep.mubr.bf16.mxu0 %v7539_v13  ;;  %3708 = vmatpush1.bf16.msra.mxu1 %v5605_v49  ;;  %v1788_v49 = vld [vmem:[#allocation2 + $0xe1] sm:$0xff] }
 0x326   :  { %3709 = vmatprep.subr.bf16.mxu1 %v9988_v18  ;;  %v1843_v27 = vpack.c.bf16 %v1788_v49, %v1787_v53  ;;  %v1891_v53 = vld [vmem:[#allocation2 + $0x13a] sm:$0xff]  ;;  %v1892_v49 = vld [vmem:[#allocation2 + $0x142] sm:$0xff] }
 0x327   :  { %v7630_v48 = vpack.c.bf16 %v1892_v49, %v1891_v53  ;;  %v1801_v53 = vld [vmem:[#allocation2 + $0x181] sm:$0xff]  ;;  %v1802_v49 = vld [vmem:[#allocation2 + $0x189] sm:$0xff] }
 0x329   :  { %3710 = vmatpush1.bf16.msra.mxu1 %v5606_v8  ;;  %v1545_v8 = vld [vmem:[#allocation2 + $0x319] sm:$0xff] }
 0x32a   :  { %3711 = vmatprep.subr.bf16.mxu1 %v9988_v18  ;;  %v7596_v2 = vpack.c.bf16 %v1546_v58, %v1545_v8 }
 0x32b   :  { %3471 = vmatmul.mubr.bf16.gmra.mrb[100].mxu1 %v1839_v25  ;;  %v1789_v25 = vld [vmem:[#allocation2 + $0xf1] sm:$0xff] }
 0x32c   :  { %3069 = vmatmul.mubr.bf16.gmra.mrb[232].mxu0 %v7438_v12  ;;  %3478 = vmatprep.mubr.bf16.mxu1 %v7556_v22  ;;  %v5615_v12 = vld [vmem:[%s9759_s4 + $0x1d0] sm:$0xff]  }
 0x32d   :  { %3076 = vmatprep.mubr.bf16.mxu0 %v7554_v59  ;;  %3712 = vmatpush1.bf16.msra.mxu1 %v5607_v38  ;;  %v1790_v38 = vld [vmem:[#allocation2 + $0xf9] sm:$0xff] }
 0x32e   :  { %3713 = vmatprep.subr.bf16.mxu1 %v9988_v18  ;;  %v1844_v52 = vpack.c.bf16 %v1790_v38, %v1789_v25  ;;  %v5613_v25 = vld [vmem:[%s9759_s4 + $0x220] sm:$0xff]   ;;  %v1682_v38 = vld [vmem:[#allocation2 + $0x68] sm:$0xff] }
 0x331   :  { %3714 = vmatpush1.bf16.msra.mxu1 %v5610_v57  ;;  %v1675_v57 = vld [vmem:[#allocation2 + $0x18] sm:$0xff] }
 0x332   :  { %3715 = vmatprep.subr.bf16.mxu1 %v9988_v18 }
 0x333   :  { %3479 = vmatmul.mubr.bf16.gmra.mrb[104].mxu1 %v1840_v29  ;;  %v1580_v29 = vld [vmem:[#allocation2 + $0xa] sm:$0xff] }
 0x334   :  { %3077 = vmatmul.mubr.bf16.gmra.mrb[236].mxu0 %v7443_v63  ;;  %3486 = vmatprep.mubr.bf16.mxu1 %v7571_v47  ;;  %v5618_v63 = vld [vmem:[%s9759_s4 + $0x1d8] sm:$0xff]   ;;  %v1643_v36 = vpack.c.bf16 %v1580_v29, %v1579_v42 }
 0x335   :  { %3084 = vmatprep.mubr.bf16.mxu0 %v7569_v5  ;;  %3716 = vmatpush1.bf16.msra.mxu1 %v5615_v12  ;;  %v1791_v12 = vld [vmem:[#allocation2 + $0x109] sm:$0xff]  ;;  %v1797_v42 = vld [vmem:[#allocation2 + $0x151] sm:$0xff]  ;;  %v1798_v29 = vld [vmem:[#allocation2 + $0x159] sm:$0xff] }
 0x336   :  { %3717 = vmatprep.subr.bf16.mxu1 %v9988_v18  ;;  %v1848_v45 = vpack.c.bf16 %v1798_v29, %v1797_v42 }
 0x339   :  { %3718 = vmatpush1.bf16.msra.mxu1 %v5618_v63  ;;  %v7611_v63 = vpack.c.bf16 %v1678_v24, %v1677_v3  ;;  %v1684_v3 = vld [vmem:[#allocation2 + $0x80] sm:$0xff]  ;;  %v1896_v24 = vld [vmem:[#allocation2 + $0x172] sm:$0xff] }
 0x33a   :  { %3719 = vmatprep.subr.bf16.mxu1 %v9988_v18 }
 0x33b   :  { %3487 = vmatmul.mubr.bf16.gmra.mrb[108].mxu1 %v1841_v54  ;;  %v1845_v54 = vpack.c.bf16 %v1792_v16, %v1791_v12  ;;  %v1683_v12 = vld [vmem:[#allocation2 + $0x78] sm:$0xff]  ;;  %v5616_v16 = vld [vmem:[%s9759_s4 + $0x230] sm:$0xff]  }
 0x33c   :  { %3085 = vmatmul.mubr.bf16.gmra.mrb[240].mxu0 %v7449_v21  ;;  %3494 = vmatprep.mubr.bf16.mxu1 %v7580_v46  ;;  %v7589_v21 = vpack.c.bf16 %v1544_v23, %v1543_v44  ;;  %v1793_v44 = vld [vmem:[#allocation2 + $0x121] sm:$0xff]  ;;  %v1794_v23 = vld [vmem:[#allocation2 + $0x129] sm:$0xff]  ;;  %v7658_v10 = vpack.c.bf16 %v1684_v3, %v1683_v12 }
 0x33d   :  { %3092 = vmatprep.mubr.bf16.mxu0 %v7578_v4  ;;  %v1846_v8 = vpack.c.bf16 %v1794_v23, %v1793_v44  ;;  %v1897_v44 = vld [vmem:[#allocation2 + $0x182] sm:$0xff]  ;;  %v1898_v23 = vld [vmem:[#allocation2 + $0x18a] sm:$0xff] }
 0x343   :  { %3495 = vmatmul.mubr.bf16.gmra.mrb[112].mxu1 %v1842_v60  ;;  %v1680_v60 = vld [vmem:[#allocation2 + $0x50] sm:$0xff] }
 0x344   :  { %3093 = vmatmul.mubr.bf16.gmra.mrb[244].mxu0 %v7456_v43  ;;  %3502 = vmatprep.mubr.bf16.mxu1 %v7591_v19  ;;  %v5619_v43 = vld [vmem:[%s9759_s4 + $0x1e0] sm:$0xff]   ;;  %v7628_v58 = vpack.c.bf16 %v1680_v60, %v1679_v30  ;;  %v5622_v60 = vld [vmem:[%s9759_s4 + $0x1f8] sm:$0xff]  }
 0x345   :  { %3100 = vmatprep.mubr.bf16.mxu0 %v7589_v21  ;;  %3720 = vmatpush1.bf16.msra.mxu1 %v5619_v43  ;;  %v1681_v43 = vld [vmem:[#allocation2 + $0x60] sm:$0xff] }
 0x346   :  { %3721 = vmatprep.subr.bf16.mxu1 %v9988_v18 }
 0x349   :  { %3722 = vmatpush1.bf16.msra.mxu1 %v5620_v62  ;;  %v1686_v62 = vld [vmem:[#allocation2 + $0x98] sm:$0xff] }
 0x34a   :  { %3723 = vmatprep.subr.bf16.mxu1 %v9988_v18 }
 0x34b   :  { %3503 = vmatmul.mubr.bf16.gmra.mrb[116].mxu1 %v1843_v27  ;;  %v1796_v27 = vld [vmem:[#allocation2 + $0x141] sm:$0xff] }
 0x34c   :  { %3101 = vmatmul.mubr.bf16.gmra.mrb[248].mxu0 %v7463_v56  ;;  %3510 = vmatprep.mubr.bf16.mxu1 %v7598_v1  ;;  %v1739_v56 = vpack.c.bf16 %v1676_v39, %v1675_v57  ;;  %v1893_v57 = vld [vmem:[#allocation2 + $0x152] sm:$0xff]  ;;  %v1894_v39 = vld [vmem:[#allocation2 + $0x15a] sm:$0xff]  ;;  %v1847_v40 = vpack.c.bf16 %v1796_v27, %v1795_v37  ;;  %v1899_v37 = vld [vmem:[#allocation2 + $0x1ca] sm:$0xff] }
 0x34d   :  { %3108 = vmatprep.mubr.bf16.mxu0 %v7596_v2  ;;  %v7643_v41 = vpack.c.bf16 %v1894_v39, %v1893_v57  ;;  %v1900_v27 = vld [vmem:[#allocation2 + $0x1d2] sm:$0xff]  ;;  %v1689_v57 = vld [vmem:[#allocation2 + $0xc0] sm:$0xff] }
 0x353   :  { %3511 = vmatmul.mubr.bf16.gmra.mrb[120].mxu1 %v1844_v52  ;;  %v5614_v52 = vld [vmem:[%s9759_s4 + $0x228] sm:$0xff]  }
 0x354   :  { %3109 = vmatmul.mubr.bf16.gmra.mrb[252].mxu0 %v7470_v26  ;;  %3518 = vmatprep.mubr.bf16.mxu1 %v7607_v17  ;;  %v5609_v26 = vld [vmem:[%s9759_s4 + $0x208] sm:$0xff]  }
 0x355   :  { %3149 = vmatprep.mubr.bf16.mxu0 %v1739_v56  ;;  %v5621_v56 = vld [vmem:[%s9759_s4 + $0x1f0] sm:$0xff]  }
 0x356   :  { %3724 = vmatpush1.bf16.msra.mxu1 %v5621_v56  ;;  %v1902_v56 = vld [vmem:[#allocation2 + $0x1ea] sm:$0xff] }
 0x357   :  { %3725 = vmatprep.subr.bf16.mxu1 %v9988_v18  ;;  %v1685_v18 = vld [vmem:[#allocation2 + $0x90] sm:$0xff] }
 0x358   :  { %v7668_v30 = vpack.c.bf16 %v1686_v62, %v1685_v18  ;;  %v1904_v18 = vld [vmem:[#allocation2 + $0x202] sm:$0xff] }
 0x35a   :  { %3726 = vmatpush1.bf16.msra.mxu1 %v5622_v60 }
 0x35b   :  { %3519 = vmatmul.mubr.bf16.gmra.mrb[124].mxu1 %v1845_v54 }
 0x35c   :  { %3150 = vmatmul.mubr.bf16.vlgmr.msra.gmra.mrb[128].mxu0 %v1643_v36  ;;  %3526 = vmatprep.mubr.bf16.mxu1 %v7613_v15  ;;  %v1895_v36 = vld [vmem:[#allocation2 + $0x16a] sm:$0xff] }
 0x35d   :  { %3157 = vmatprep.mubr.bf16.mxu0 %v7611_v63  ;;  %5077 = vmatpush3.bf16.msra.mxu0 %v7512_v7  ;;  %v5612_v7 = vld [vmem:[%s9759_s4 + $0x218] sm:$0xff]   ;;  %v7660_v54 = vpack.c.bf16 %v1896_v24, %v1895_v36 }
 0x35e   :  { %5078 = vmatprep.subr.bf16.mxu0 %v5609_v26  ;;  %v1691_v36 = vld [vmem:[#allocation2 + $0xd8] sm:$0xff] }
 0x361   :  { %5079 = vmatpush3.bf16.msra.mxu0 %v5609_v26  ;;  %v5617_v26 = vld [vmem:[%s9759_s4 + $0x238] sm:$0xff]  }
 0x362   :  { %5080 = vmatprep.subr.bf16.mxu0 %v5611_v11 }
 0x363   :  { %3527 = vmatmul.mubr.bf16.gmra.mrb[0].mxu1 %v1846_v8  ;;  %v1687_v8 = vld [vmem:[#allocation2 + $0xa8] sm:$0xff] }
 0x364   :  { %3158 = vmatmul.mubr.bf16.gmra.mrb[132].mxu0 %v7481_v35  ;;  %3534 = vmatprep.mubr.bf16.mxu1 %v7630_v48  ;;  %v7641_v35 = vpack.c.bf16 %v1682_v38, %v1681_v43  ;;  %v1850_v43 = vpack.c.bf16 %v1802_v49, %v1801_v53  ;;  %v1947_v38 = vpack.c.bf16 %v1900_v27, %v1899_v37  ;;  %v1693_v53 = vld [vmem:[#allocation2 + $0xf0] sm:$0xff]  ;;  %v1906_v37 = vld [vmem:[#allocation2 + $0x21a] sm:$0xff] }
 0x365   :  { %3165 = vmatprep.mubr.bf16.mxu0 %v7628_v58  ;;  %5081 = vmatpush3.bf16.msra.mxu0 %v5611_v11  ;;  %v7670_v11 = vpack.c.bf16 %v1898_v23, %v1897_v44 }
 0x366   :  { %5082 = vmatprep.subr.bf16.mxu0 %v5612_v7 }
 0x369   :  { %5083 = vmatpush3.bf16.msra.mxu0 %v5612_v7  ;;  %v1688_v7 = vld [vmem:[#allocation2 + $0xb0] sm:$0xff] }
 0x36a   :  { %5084 = vmatprep.subr.bf16.mxu0 %v5613_v25 }
 0x36b   :  { %3535 = vmatmul.mubr.bf16.gmra.mrb[4].mxu1 %v1847_v40  ;;  %v1690_v40 = vld [vmem:[#allocation2 + $0xc8] sm:$0xff] }
 0x36c   :  { %3166 = vmatmul.mubr.bf16.gmra.mrb[136].mxu0 %v7492_v28  ;;  %3542 = vmatprep.mubr.bf16.mxu1 %v7643_v41  ;;  %v7687_v12 = vpack.c.bf16 %v1690_v40, %v1689_v57 }
 0x36d   :  { %3173 = vmatprep.mubr.bf16.mxu0 %v7641_v35  ;;  %5085 = vmatpush3.bf16.msra.mxu0 %v5613_v25  ;;  %v7679_v25 = vpack.c.bf16 %v1688_v7, %v1687_v8  ;;  %v1694_v8 = vld [vmem:[#allocation2 + $0xf8] sm:$0xff] }
 0x36e   :  { %5086 = vmatprep.subr.bf16.mxu0 %v5614_v52  ;;  %v1905_v7 = vld [vmem:[#allocation2 + $0x212] sm:$0xff] }
 0x36f   :  { %v7713_v57 = vpack.c.bf16 %v1906_v37, %v1905_v7 }
 0x371   :  { %5087 = vmatpush3.bf16.msra.mxu0 %v5614_v52  ;;  %v1901_v52 = vld [vmem:[#allocation2 + $0x1e2] sm:$0xff] }
 0x372   :  { %5088 = vmatprep.subr.bf16.mxu0 %v5616_v16 }
 0x373   :  { %3543 = vmatmul.mubr.bf16.gmra.mrb[8].mxu1 %v1848_v45  ;;  %v1692_v45 = vld [vmem:[#allocation2 + $0xe0] sm:$0xff] }
 0x374   :  { %3174 = vmatmul.mubr.bf16.gmra.mrb[140].mxu0 %v7506_v34  ;;  %3550 = vmatprep.mubr.bf16.mxu1 %v7660_v54  ;;  %v7699_v23 = vpack.c.bf16 %v1692_v45, %v1691_v36 }
 0x375   :  { %3181 = vmatprep.mubr.bf16.mxu0 %v7658_v10  ;;  %5089 = vmatpush3.bf16.msra.mxu0 %v5616_v16  ;;  %v7689_v16 = vpack.c.bf16 %v1902_v56, %v1901_v52  ;;  %v1696_v52 = vld [vmem:[#allocation2 + $0x110] sm:$0xff] }
 0x376   :  { %5090 = vmatprep.subr.bf16.mxu0 %v5617_v26  ;;  %v1907_v56 = vld [vmem:[#allocation2 + $0x22a] sm:$0xff] }
 0x379   :  { %5091 = vmatpush3.bf16.msra.mxu0 %v5617_v26  ;;  %v1903_v26 = vld [vmem:[#allocation2 + $0x1fa] sm:$0xff] }
 0x37a   :  { %v7701_v60 = vpack.c.bf16 %v1904_v18, %v1903_v26 }
 0x37b   :  { %3551 = vmatmul.mubr.bf16.gmra.mrb[12].mxu1 %v7436_v6 }
 0x37c   :  { %3182 = vmatmul.mubr.bf16.gmra.mrb[144].mxu0 %v7526_v61  ;;  %3558 = vmatprep.mubr.bf16.mxu1 %v7670_v11 }
 0x37d   :  { %3189 = vmatprep.mubr.bf16.mxu0 %v7668_v30 }
 0x383   :  { %3559 = vmatmul.mubr.bf16.gmra.mrb[16].mxu1 %v1850_v43 }
 0x384   :  { %3190 = vmatmul.mubr.bf16.gmra.mrb[148].mxu0 %v7541_v31  ;;  %3566 = vmatprep.mubr.bf16.mxu1 %v1947_v38  ;;  %v7711_v38 = vpack.c.bf16 %v1694_v8, %v1693_v53  ;;  %v1910_v53 = vld [vmem:[#allocation2 + $0x24a] sm:$0xff] }
 0x385   :  { %3197 = vmatprep.mubr.bf16.mxu0 %v7679_v25 }
 0x387   :  { %v7683_v6 = vpop.f32.mrb[172].mxu0 }
 0x388   :  { %10008 = vst [vmem:[#allocation77_spill] sm:$0xff] %v7683_v6  ;;  %v2952_v39 = vpop.f32.mrb[173].mxu0 }
 0x389   :  { %v7685_v42 = vpop.f32.mrb[174].mxu0  ;;  %v1695_v39 = vld [vmem:[#allocation2 + $0x108] sm:$0xff] }
 0x38a   :  { %10009 = vst [vmem:[#allocation82_spill] sm:$0xff] %v7685_v42  ;;  %v2955_v29 = vpop.f32.mrb[175].mxu0  ;;  %v7723_v45 = vpack.c.bf16 %v1696_v52, %v1695_v39  ;;  %v1912_v39 = vld [vmem:[#allocation2 + $0x262] sm:$0xff] }
 0x38b   :  { %3567 = vmatmul.mubr.bf16.gmra.mrb[20].mxu1 %v7447_v14  ;;  %v1908_v29 = vld [vmem:[#allocation2 + $0x232] sm:$0xff] }
 0x38c   :  { %3198 = vmatmul.mubr.bf16.gmra.mrb[152].mxu0 %v7556_v22  ;;  %3574 = vmatprep.mubr.bf16.mxu1 %v7689_v16  ;;  %v7725_v26 = vpack.c.bf16 %v1908_v29, %v1907_v56  ;;  %v1913_v29 = vld [vmem:[#allocation2 + $0x272] sm:$0xff] }
 0x38d   :  { %3205 = vmatprep.mubr.bf16.mxu0 %v7687_v12 }
 0x38f   :  { %v7695_v3 = vpop.f32.mrb[176].mxu0 }
 0x390   :  { %10010 = vst [vmem:[#allocation84_spill] sm:$0xff] %v7695_v3  ;;  %v2960_v24 = vpop.f32.mrb[177].mxu0 }
 0x391   :  { %v7697_v62 = vpop.f32.mrb[178].mxu0 }
 0x392   :  { %10011 = vst [vmem:[#allocation86_spill] sm:$0xff] %v7697_v62  ;;  %v2963_v44 = vpop.f32.mrb[179].mxu0 }
 0x393   :  { %3575 = vmatmul.mubr.bf16.gmra.mrb[24].mxu1 %v7454_v0  ;;  %v1909_v44 = vld [vmem:[#allocation2 + $0x242] sm:$0xff] }
 0x394   :  { %3206 = vmatmul.mubr.bf16.gmra.mrb[156].mxu0 %v7571_v47  ;;  %3582 = vmatprep.mubr.bf16.mxu1 %v7701_v60  ;;  %v7735_v7 = vpack.c.bf16 %v1910_v53, %v1909_v44 }
 0x395   :  { %3213 = vmatprep.mubr.bf16.mxu0 %v7699_v23 }
 0x397   :  { %v7707_v14 = vpop.f32.mrb[180].mxu0 }
 0x398   :  { %10012 = vst [vmem:[#allocation88_spill] sm:$0xff] %v7707_v14  ;;  %v2968_v49 = vpop.f32.mrb[181].mxu0 }
 0x399   :  { %v7709_v27 = vpop.f32.mrb[182].mxu0 }
 0x39a   :  { %10013 = vst [vmem:[#allocation43_spill] sm:$0xff] %v7709_v27  ;;  %v2971_v43 = vpop.f32.mrb[183].mxu0 }
 0x39b   :  { %3583 = vmatmul.mubr.bf16.gmra.mrb[28].mxu1 %v7461_v50  ;;  %v1911_v43 = vld [vmem:[#allocation2 + $0x25a] sm:$0xff] }
 0x39c   :  { %3214 = vmatmul.mubr.bf16.gmra.mrb[160].mxu0 %v7580_v46  ;;  %3590 = vmatprep.mubr.bf16.mxu1 %v7713_v57  ;;  %v7745_v56 = vpack.c.bf16 %v1912_v39, %v1911_v43 }
 0x39d   :  { %3221 = vmatprep.mubr.bf16.mxu0 %v7711_v38 }
 0x39f   :  { %v7719_v0 = vpop.f32.mrb[184].mxu0 }
 0x3a0   :  { %10014 = vst [vmem:[#allocation45_spill] sm:$0xff] %v7719_v0  ;;  %v2976_v40 = vpop.f32.mrb[185].mxu0 }
 0x3a1   :  { %v7721_v36 = vpop.f32.mrb[186].mxu0 }
 0x3a2   :  { %10015 = vst [vmem:[#allocation47_spill] sm:$0xff] %v7721_v36  ;;  %v2979_v24 = vpop.f32.mrb[187].mxu0 }
 0x3a3   :  { %3591 = vmatmul.mubr.bf16.gmra.mrb[32].mxu1 %v7468_v9  ;;  %v1914_v24 = vld [vmem:[#allocation2 + $0x27a] sm:$0xff] }
 0x3a4   :  { %3222 = vmatmul.mubr.bf16.gmra.mrb[164].mxu0 %v7591_v19  ;;  %3598 = vmatprep.mubr.bf16.mxu1 %v7725_v26  ;;  %v7755_v53 = vpack.c.bf16 %v1914_v24, %v1913_v29 }
 0x3a5   :  { %3229 = vmatprep.mubr.bf16.mxu0 %v7723_v45 }
 0x3a7   :  { %v7731_v50 = vpop.f32.mrb[188].mxu0 }
 0x3a8   :  { %10016 = vst [vmem:[#allocation49_spill] sm:$0xff] %v7731_v50  ;;  %v2984_v18 = vpop.f32.mrb[189].mxu0 }
 0x3a9   :  { %v7733_v49 = vpop.f32.mrb[190].mxu0 }
 0x3aa   :  { %10017 = vst [vmem:[#allocation51_spill] sm:$0xff] %v7733_v49  ;;  %v2987_v8 = vpop.f32.mrb[191].mxu0 }
 0x3ab   :  { %3599 = vmatmul.mubr.bf16.gmra.mrb[36].mxu1 %v7475_v33  ;;  %v1916_v8 = vld [vmem:[#allocation2 + $0x292] sm:$0xff] }
 0x3ac   :  { %3230 = vmatmul.mubr.bf16.gmra.mrb[168].mxu0 %v7598_v1  ;;  %3606 = vmatprep.mubr.bf16.mxu1 %v7735_v7 }
 0x3ad   :  { %5092 = vmatprep.mubr.bf16.mxu0 %v7492_v28 }
 0x3af   :  { %v7741_v9 = vpop.f32.mrb[192].mxu0 }
 0x3b0   :  { %10018 = vst [vmem:[#allocation53_spill] sm:$0xff] %v7741_v9  ;;  %v2992_v37 = vpop.f32.mrb[193].mxu0 }
 0x3b1   :  { %v7743_v40 = vpop.f32.mrb[194].mxu0 }
 0x3b2   :  { %10019 = vst [vmem:[#allocation55_spill] sm:$0xff] %v7743_v40  ;;  %v2995_v52 = vpop.f32.mrb[195].mxu0 }
 0x3b3   :  { %3607 = vmatmul.mubr.bf16.gmra.mrb[40].mxu1 %v7479_v51  ;;  %v1918_v52 = vld [vmem:[#allocation2 + $0x2aa] sm:$0xff] }
 0x3b4   :  { %5093 = vmatmul.mubr.bf16.vlgmr.msra.gmra.mrb[0].mxu0 %v7506_v34  ;;  %3614 = vmatprep.mubr.bf16.mxu1 %v7745_v56 }
 0x3b5   :  { %5096 = vmatprep.mubr.bf16.mxu0 %v7526_v61  ;;  %v1915_v61 = vld [vmem:[#allocation2 + $0x28a] sm:$0xff] }
 0x3b6   :  { %v7765_v39 = vpack.c.bf16 %v1916_v8, %v1915_v61 }
 0x3b7   :  { %v7751_v33 = vpop.f32.mrb[196].mxu0 }
 0x3b8   :  { %10020 = vst [vmem:[#allocation57_spill] sm:$0xff] %v7751_v33  ;;  %v3000_v28 = vpop.f32.mrb[197].mxu0 }
 0x3b9   :  { %v7753_v18 = vpop.f32.mrb[198].mxu0 }
 0x3ba   :  { %10021 = vst [vmem:[#allocation59_spill] sm:$0xff] %v7753_v18  ;;  %v3003_v44 = vpop.f32.mrb[199].mxu0 }
 0x3bb   :  { %3615 = vmatmul.mubr.bf16.gmra.mrb[44].mxu1 %v7489_v55  ;;  %v1920_v44 = vld [vmem:[#allocation2 + $0x2c2] sm:$0xff] }
 0x3bc   :  { %5097 = vmatmul.mubr.bf16.gmra.mrb[4].mxu0 %v7541_v31  ;;  %3622 = vmatprep.mubr.bf16.mxu1 %v7755_v53 }
 0x3bd   :  { %5100 = vmatprep.mubr.bf16.mxu0 %v7556_v22  ;;  %v1917_v22 = vld [vmem:[#allocation2 + $0x2a2] sm:$0xff] }
 0x3be   :  { %v7775_v24 = vpack.c.bf16 %v1918_v52, %v1917_v22 }
 0x3bf   :  { %v7761_v51 = vpop.f32.mrb[200].mxu0 }
 0x3c0   :  { %10022 = vst [vmem:[#allocation61_spill] sm:$0xff] %v7761_v51  ;;  %v3008_v34 = vpop.f32.mrb[201].mxu0 }
 0x3c1   :  { %v7763_v37 = vpop.f32.mrb[202].mxu0 }
 0x3c2   :  { %10023 = vst [vmem:[#allocation63_spill] sm:$0xff] %v7763_v37  ;;  %v3011_v43 = vpop.f32.mrb[203].mxu0 }
 0x3c3   :  { %3623 = vmatmul.mubr.bf16.gmra.mrb[48].mxu1 %v7504_v32  ;;  %v1922_v43 = vld [vmem:[#allocation2 + $0x2da] sm:$0xff] }
 0x3c4   :  { %5101 = vmatmul.mubr.bf16.gmra.mrb[8].mxu0 %v7571_v47  ;;  %3630 = vmatprep.mubr.bf16.mxu1 %v7765_v39 }
 0x3c5   :  { %5104 = vmatprep.mubr.bf16.mxu0 %v7580_v46  ;;  %v1919_v46 = vld [vmem:[#allocation2 + $0x2ba] sm:$0xff] }
 0x3c6   :  { %v7785_v8 = vpack.c.bf16 %v1920_v44, %v1919_v46 }
 0x3c7   :  { %v7771_v55 = vpop.f32.mrb[204].mxu0 }
 0x3c8   :  { %10024 = vst [vmem:[#allocation65_spill] sm:$0xff] %v7771_v55  ;;  %v3016_v31 = vpop.f32.mrb[205].mxu0 }
 0x3c9   :  { %v7773_v28 = vpop.f32.mrb[206].mxu0 }
 0x3ca   :  { %10025 = vst [vmem:[#allocation67_spill] sm:$0xff] %v7773_v28  ;;  %v3019_v29 = vpop.f32.mrb[207].mxu0 }
 0x3cb   :  { %3631 = vmatmul.mubr.bf16.gmra.mrb[52].mxu1 %v7524_v20  ;;  %v1924_v29 = vld [vmem:[#allocation2 + $0x2f2] sm:$0xff] }
 0x3cc   :  { %5105 = vmatmul.mubr.bf16.gmra.mrb[12].mxu0 %v7591_v19  ;;  %3638 = vmatprep.mubr.bf16.mxu1 %v7775_v24 }
 0x3cd   :  { %5108 = vmatprep.mubr.bf16.mxu0 %v7598_v1  ;;  %v1921_v1 = vld [vmem:[#allocation2 + $0x2d2] sm:$0xff] }
 0x3ce   :  { %v7795_v52 = vpack.c.bf16 %v1922_v43, %v1921_v1  ;;  %v1925_v1 = vld [vmem:[#allocation2 + $0x302] sm:$0xff]  ;;  %v1926_v43 = vld [vmem:[#allocation2 + $0x30a] sm:$0xff] }
 0x3cf   :  { %v7781_v32 = vpop.f32.mrb[208].mxu0 }
 0x3d0   :  { %10026 = vst [vmem:[#allocation69_spill] sm:$0xff] %v7781_v32  ;;  %v3024_v47 = vpop.f32.mrb[209].mxu0 }
 0x3d1   :  { %v7783_v34 = vpop.f32.mrb[210].mxu0 }
 0x3d2   :  { %10027 = vst [vmem:[#allocation71_spill] sm:$0xff] %v7783_v34  ;;  %v3027_v61 = vpop.f32.mrb[211].mxu0 }
 0x3d3   :  { %3639 = vmatmul.mubr.bf16.gmra.mrb[56].mxu1 %v7539_v13 }
 0x3d4   :  { %5109 = vmatmul.mubr.bf16.gmra.mrb[16].mxu0 %v7607_v17  ;;  %3646 = vmatprep.mubr.bf16.mxu1 %v7785_v8 }
 0x3d5   :  { %5112 = vmatprep.mubr.bf16.mxu0 %v7613_v15  ;;  %v1923_v15 = vld [vmem:[#allocation2 + $0x2ea] sm:$0xff] }
 0x3d6   :  { %v7805_v44 = vpack.c.bf16 %v1924_v29, %v1923_v15  ;;  %v7815_v15 = vpack.c.bf16 %v1926_v43, %v1925_v1  ;;  %v1928_v29 = vld [vmem:[#allocation2 + $0x322] sm:$0xff] }
 0x3d7   :  { %v7791_v20 = vpop.f32.mrb[212].mxu0 }
 0x3d8   :  { %10028 = vst [vmem:[#allocation74_spill] sm:$0xff] %v7791_v20  ;;  %v3032_v19 = vpop.f32.mrb[213].mxu0 }
 0x3d9   :  { %v7793_v31 = vpop.f32.mrb[214].mxu0 }
 0x3da   :  { %10029 = vst [vmem:[#allocation92_spill] sm:$0xff] %v7793_v31  ;;  %v3035_v22 = vpop.f32.mrb[215].mxu0 }
 0x3db   :  { %3647 = vmatmul.mubr.bf16.gmra.mrb[60].mxu1 %v7554_v59  ;;  %v2186_v59 = vld [vmem:[#allocation2 + $0x19a] sm:$0xff] }
 0x3dc   :  { %5113 = vmatmul.mubr.bf16.gmra.mrb[20].mxu0 %v7630_v48  ;;  %3654 = vmatprep.mubr.bf16.mxu1 %v7795_v52  ;;  %v2187_v48 = vld [vmem:[#allocation2 + $0x1a2] sm:$0xff] }
 0x3dd   :  { %5116 = vmatprep.mubr.bf16.mxu0 %v7643_v41  ;;  %v2235_v19 = vpack.c.bf16 %v2187_v48, %v2186_v59 }
 0x3df   :  { %v7801_v13 = vpop.f32.mrb[216].mxu0 }
 0x3e0   :  { %10030 = vst [vmem:[#allocation93_spill] sm:$0xff] %v7801_v13  ;;  %v3040_v17 = vpop.f32.mrb[217].mxu0 }
 0x3e1   :  { %v7803_v47 = vpop.f32.mrb[218].mxu0 }
 0x3e2   :  { %10031 = vst [vmem:[#allocation94_spill] sm:$0xff] %v7803_v47  ;;  %v3043_v46 = vpop.f32.mrb[219].mxu0 }
 0x3e3   :  { %3655 = vmatmul.mubr.bf16.gmra.mrb[64].mxu1 %v7569_v5 }
 0x3e4   :  { %5117 = vmatmul.mubr.bf16.gmra.mrb[24].mxu0 %v7660_v54  ;;  %3662 = vmatprep.mubr.bf16.mxu1 %v7805_v44 }
 0x3e5   :  { %5120 = vmatprep.mubr.bf16.mxu0 %v7670_v11  ;;  %v1927_v11 = vld [vmem:[#allocation2 + $0x31a] sm:$0xff] }
 0x3e6   :  { %v7824_v48 = vpack.c.bf16 %v1928_v29, %v1927_v11  ;;  %v2060_v11 = vld [vmem:[#allocation2 + $0x31] sm:$0xff]  ;;  %v2061_v29 = vld [vmem:[#allocation2 + $0x39] sm:$0xff] }
 0x3e7   :  { %v7811_v41 = vpop.f32.mrb[220].mxu0 }
 0x3e8   :  { %10032 = vst [vmem:[#allocation95_spill] sm:$0xff] %v7811_v41  ;;  %v3048_v61 = vpop.f32.mrb[221].mxu0 }
 0x3e9   :  { %v7813_v22 = vpop.f32.mrb[222].mxu0  ;;  %v1929_v61 = vld [vmem:[#allocation2 + $0x332] sm:$0xff] }
 0x3ea   :  { %10033 = vst [vmem:[#allocation96_spill] sm:$0xff] %v7813_v22  ;;  %v3051_v17 = vpop.f32.mrb[223].mxu0 }
 0x3eb   :  { %3663 = vmatmul.mubr.bf16.gmra.mrb[68].mxu1 %v7578_v4 }
 0x3ec   :  { %5121 = vmatmul.mubr.bf16.gmra.mrb[28].mxu0 %v2235_v19  ;;  %3670 = vmatprep.mubr.bf16.mxu1 %v7815_v15  ;;  %v1930_v19 = vld [vmem:[#allocation2 + $0x33a] sm:$0xff] }
 0x3ed   :  { %5124 = vmatprep.mubr.bf16.mxu0 %v7689_v16  ;;  %v1962_v17 = vpack.c.bf16 %v1930_v19, %v1929_v61  ;;  %v2124_v61 = vpack.c.bf16 %v2061_v29, %v2060_v11  ;;  %v2063_v19 = vld [vmem:[#allocation2 + $0x51] sm:$0xff] }
 0x3ef   :  { %v7820_v5 = vpop.f32.mrb[224].mxu0 }
 0x3f0   :  { %10034 = vst [vmem:[#allocation97_spill] sm:$0xff] %v7820_v5  ;;  %v3056_v54 = vpop.f32.mrb[225].mxu0 }
 0x3f1   :  { %v7822_v46 = vpop.f32.mrb[226].mxu0 }
 0x3f2   :  { %10035 = vst [vmem:[#allocation98_spill] sm:$0xff] %v7822_v46  ;;  %v3059_v59 = vpop.f32.mrb[227].mxu0 }
 0x3f3   :  { %3671 = vmatmul.mubr.bf16.gmra.mrb[72].mxu1 %v7589_v21 }
 0x3f4   :  { %5125 = vmatmul.mubr.bf16.gmra.mrb[32].mxu0 %v7701_v60  ;;  %3678 = vmatprep.mubr.bf16.mxu1 %v7824_v48  ;;  %v1833_v60 = vld [vmem:[#allocation2 + $0x331] sm:$0xff] }
 0x3f5   :  { %5128 = vmatprep.mubr.bf16.mxu0 %v7713_v57  ;;  %v1834_v57 = vld [vmem:[#allocation2 + $0x339] sm:$0xff] }
 0x3f7   :  { %v7830_v4 = vpop.f32.mrb[228].mxu0 }
 0x3f8   :  { %10036 = vst [vmem:[#allocation99_spill] sm:$0xff] %v7830_v4  ;;  %v3064_v16 = vpop.f32.mrb[229].mxu0 }
 0x3f9   :  { %v7832_v1 = vpop.f32.mrb[230].mxu0 }
 0x3fa   :  { %10037 = vst [vmem:[#allocation100_spill] sm:$0xff] %v7832_v1  ;;  %v3067_v43 = vpop.f32.mrb[231].mxu0  ;;  %v7841_v1 = vpack.c.bf16 %v1834_v57, %v1833_v60  ;;  %v2065_v57 = vld [vmem:[#allocation2 + $0x69] sm:$0xff] }
 0x3fb   :  { %3679 = vmatmul.mubr.bf16.gmra.mrb[76].mxu1 %v7596_v2 }
 0x3fc   :  { %5129 = vmatmul.mubr.bf16.gmra.mrb[36].mxu0 %v7725_v26  ;;  %3686 = vmatprep.mubr.bf16.mxu1 %v1962_v17 }
 0x3fd   :  { %5132 = vmatprep.mubr.bf16.mxu0 %v7735_v7  ;;  %v2062_v7 = vld [vmem:[#allocation2 + $0x49] sm:$0xff] }
 0x3ff   :  { %v7837_v21 = vpop.f32.mrb[232].mxu0 }
 0x400   :  { %10038 = vst [vmem:[#allocation101_spill] sm:$0xff] %v7837_v21  ;;  %v3072_v54 = vpop.f32.mrb[233].mxu0  ;;  %v2090_v21 = vld [vmem:[#allocation2 + $0x199] sm:$0xff] }
 0x401   :  { %v7839_v59 = vpop.f32.mrb[234].mxu0 }
 0x402   :  { %10039 = vst [vmem:[#allocation102_spill] sm:$0xff] %v7839_v59  ;;  %v3075_v16 = vpop.f32.mrb[235].mxu0  ;;  %v2125_v59 = vpack.c.bf16 %v2063_v19, %v2062_v7  ;;  %v2069_v19 = vld [vmem:[#allocation2 + $0x99] sm:$0xff] }
 0x403   :  { %3687 = vmatmul.mubr.bf16.gmra.mrb[80].mxu1 %v7841_v1 }
 0x404   :  { %5133 = vmatmul.mubr.bf16.gmra.mrb[40].mxu0 %v7745_v56  ;;  %3727 = vmatprep.mubr.bf16.mxu1 %v2124_v61 }
 0x405   :  { %5136 = vmatprep.mubr.bf16.mxu0 %v7755_v53  ;;  %v2064_v53 = vld [vmem:[#allocation2 + $0x61] sm:$0xff] }
 0x406   :  { %v2126_v16 = vpack.c.bf16 %v2065_v57, %v2064_v53  ;;  %v2070_v57 = vld [vmem:[#allocation2 + $0xa9] sm:$0xff] }
 0x407   :  { %v7846_v2 = vpop.f32.mrb[236].mxu0 }
 0x408   :  { %10040 = vst [vmem:[#allocation103_spill] sm:$0xff] %v7846_v2  ;;  %v3080_v26 = vpop.f32.mrb[237].mxu0 }
 0x409   :  { %v7848_v43 = vpop.f32.mrb[238].mxu0 }
 0x40a   :  { %10041 = vst [vmem:[#allocation104_spill] sm:$0xff] %v7848_v43  ;;  %v3083_v54 = vpop.f32.mrb[239].mxu0 }
 0x40b   :  { %3728 = vmatmul.mubr.bf16.vlgmr.msra.gmra.mrb[84].mxu1 %v7611_v63 }
 0x40c   :  { %5137 = vmatmul.mubr.bf16.gmra.mrb[44].mxu0 %v7765_v39  ;;  %3735 = vmatprep.mubr.bf16.mxu1 %v2125_v59  ;;  %v2067_v59 = vld [vmem:[#allocation2 + $0x81] sm:$0xff] }
 0x40d   :  { %5140 = vmatprep.mubr.bf16.mxu0 %v7775_v24  ;;  %v2066_v24 = vld [vmem:[#allocation2 + $0x79] sm:$0xff] }
 0x40e   :  { %v2127_v7 = vpack.c.bf16 %v2067_v59, %v2066_v24 }
 0x40f   :  { %v7853_v56 = vpop.f32.mrb[240].mxu0 }
 0x410   :  { %10042 = vst [vmem:[#allocation105_spill] sm:$0xff] %v7853_v56  ;;  %v3088_v60 = vpop.f32.mrb[241].mxu0 }
 0x411   :  { %v7855_v11 = vpop.f32.mrb[242].mxu0 }
 0x412   :  { %10043 = vst [vmem:[#allocation106_spill] sm:$0xff] %v7855_v11  ;;  %v3091_v29 = vpop.f32.mrb[243].mxu0 }
 0x413   :  { %3736 = vmatmul.mubr.bf16.gmra.mrb[88].mxu1 %v7628_v58 }
 0x414   :  { %5141 = vmatmul.mubr.bf16.gmra.mrb[48].mxu0 %v7785_v8  ;;  %3743 = vmatprep.mubr.bf16.mxu1 %v2126_v16 }
 0x415   :  { %5144 = vmatprep.mubr.bf16.mxu0 %v7795_v52  ;;  %v2068_v52 = vld [vmem:[#allocation2 + $0x91] sm:$0xff] }
 0x416   :  { %v2128_v53 = vpack.c.bf16 %v2069_v19, %v2068_v52  ;;  %v2074_v19 = vld [vmem:[#allocation2 + $0xd9] sm:$0xff] }
 0x417   :  { %v7860_v63 = vpop.f32.mrb[244].mxu0 }
 0x418   :  { %10044 = vst [vmem:[#allocation107_spill] sm:$0xff] %v7860_v63  ;;  %v3096_v39 = vpop.f32.mrb[245].mxu0 }
 0x419   :  { %v7862_v61 = vpop.f32.mrb[246].mxu0 }
 0x41a   :  { %10045 = vst [vmem:[#allocation108_spill] sm:$0xff] %v7862_v61  ;;  %v3099_v26 = vpop.f32.mrb[247].mxu0 }
 0x41b   :  { %3744 = vmatmul.mubr.bf16.gmra.mrb[92].mxu1 %v7641_v35  ;;  %v2073_v26 = vld [vmem:[#allocation2 + $0xc9] sm:$0xff] }
 0x41c   :  { %5145 = vmatmul.mubr.bf16.gmra.mrb[52].mxu0 %v7805_v44  ;;  %3751 = vmatprep.mubr.bf16.mxu1 %v2127_v7 }
 0x41d   :  { %5148 = vmatprep.mubr.bf16.mxu0 %v7815_v15  ;;  %v2071_v15 = vld [vmem:[#allocation2 + $0xb1] sm:$0xff] }
 0x41e   :  { %v2129_v39 = vpack.c.bf16 %v2071_v15, %v2070_v57 }
 0x41f   :  { %v7867_v58 = vpop.f32.mrb[248].mxu0 }
 0x420   :  { %10046 = vst [vmem:[#allocation109_spill] sm:$0xff] %v7867_v58  ;;  %v3104_v8 = vpop.f32.mrb[249].mxu0 }
 0x421   :  { %v7869_v54 = vpop.f32.mrb[250].mxu0 }
 0x422   :  { %10047 = vst [vmem:[#allocation110_spill] sm:$0xff] %v7869_v54  ;;  %v3107_v60 = vpop.f32.mrb[251].mxu0 }
 0x423   :  { %3752 = vmatmul.mubr.bf16.gmra.mrb[96].mxu1 %v7658_v10  ;;  %v2072_v10 = vld [vmem:[#allocation2 + $0xc1] sm:$0xff] }
 0x424   :  { %5149 = vmatmul.mubr.bf16.gmra.mrb[56].mxu0 %v7824_v48  ;;  %3759 = vmatprep.mubr.bf16.mxu1 %v2128_v53  ;;  %v2130_v7 = vpack.c.bf16 %v2073_v26, %v2072_v10  ;;  %v2075_v60 = vld [vmem:[#allocation2 + $0xe1] sm:$0xff] }
 0x425   :  { %5152 = vmatprep.mubr.bf16.mxu0 %v1962_v17 }
 0x427   :  { %v7873_v35 = vpop.f32.mrb[252].mxu0 }
 0x428   :  { %10048 = vst [vmem:[#allocation111_spill] sm:$0xff] %v7873_v35  ;;  %v3112_v44 = vpop.f32.mrb[253].mxu0 }
 0x429   :  { %v7875_v29 = vpop.f32.mrb[254].mxu0  ;;  %v2131_v44 = vpack.c.bf16 %v2075_v60, %v2074_v19 }
 0x42a   :  { %10049 = vst [vmem:[#allocation112_spill] sm:$0xff] %v7875_v29  ;;  %v3115_v16 = vpop.f32.mrb[255].mxu0 }
 0x42b   :  { %3760 = vmatmul.mubr.bf16.gmra.mrb[100].mxu1 %v7668_v30  ;;  %v2076_v16 = vld [vmem:[#allocation2 + $0xf1] sm:$0xff] }
 0x42c   :  { %3767 = vmatprep.mubr.bf16.mxu1 %v2129_v39  ;;  %v2077_v39 = vld [vmem:[#allocation2 + $0xf9] sm:$0xff] }
 0x42d   :  { %v2132_v10 = vpack.c.bf16 %v2077_v39, %v2076_v16  ;;  %v2081_v16 = vld [vmem:[#allocation2 + $0x129] sm:$0xff] }
 0x42f   :  { %v7878_v24 = vpop.f32.mrb[128].mxu0 }
 0x430   :  { %v3153_v59 = vpop.f32.mrb[129].mxu0 }
 0x431   :  { %v7880_v48 = vpop.f32.mrb[130].mxu0 }
 0x432   :  { %v3156_v17 = vpop.f32.mrb[131].mxu0 }
 0x433   :  { %3768 = vmatmul.mubr.bf16.gmra.mrb[104].mxu1 %v7679_v25 }
 0x434   :  { %3775 = vmatprep.mubr.bf16.mxu1 %v2130_v7  ;;  %v2078_v7 = vld [vmem:[#allocation2 + $0x109] sm:$0xff] }
 0x437   :  { %v7883_v8 = vpop.f32.mrb[132].mxu0 }
 0x438   :  { %v3161_v52 = vpop.f32.mrb[133].mxu0 }
 0x439   :  { %v7885_v53 = vpop.f32.mrb[134].mxu0  ;;  %v2079_v52 = vld [vmem:[#allocation2 + $0x111] sm:$0xff] }
 0x43a   :  { %v3164_v30 = vpop.f32.mrb[135].mxu0  ;;  %v2133_v60 = vpack.c.bf16 %v2079_v52, %v2078_v7  ;;  %v2082_v52 = vld [vmem:[#allocation2 + $0x139] sm:$0xff] }
 0x43b   :  { %3776 = vmatmul.mubr.bf16.gmra.mrb[108].mxu1 %v7687_v12 }
 0x43c   :  { %3783 = vmatprep.mubr.bf16.mxu1 %v2131_v44 }
 0x43f   :  { %v7888_v57 = vpop.f32.mrb[136].mxu0 }
 0x440   :  { %v3169_v15 = vpop.f32.mrb[137].mxu0 }
 0x441   :  { %v7890_v59 = vpop.f32.mrb[138].mxu0  ;;  %v2080_v15 = vld [vmem:[#allocation2 + $0x121] sm:$0xff] }
 0x442   :  { %v3172_v25 = vpop.f32.mrb[139].mxu0 }
 0x443   :  { %3784 = vmatmul.mubr.bf16.gmra.mrb[112].mxu1 %v7699_v23  ;;  %v2134_v25 = vpack.c.bf16 %v2081_v16, %v2080_v15  ;;  %v1986_v15 = vld [vmem:[#allocation2 + $0x138] sm:$0xff]  ;;  %v1987_v16 = vld [vmem:[#allocation2 + $0x140] sm:$0xff] }
 0x444   :  { %3791 = vmatprep.mubr.bf16.mxu1 %v2132_v10 }
 0x447   :  { %v7893_v26 = vpop.f32.mrb[140].mxu0 }
 0x448   :  { %v3177_v17 = vpop.f32.mrb[141].mxu0 }
 0x449   :  { %v7895_v19 = vpop.f32.mrb[142].mxu0  ;;  %v1984_v17 = vld [vmem:[#allocation2 + $0x120] sm:$0xff] }
 0x44a   :  { %v3180_v12 = vpop.f32.mrb[143].mxu0 }
 0x44b   :  { %3792 = vmatmul.mubr.bf16.gmra.mrb[116].mxu1 %v7711_v38  ;;  %v1985_v12 = vld [vmem:[#allocation2 + $0x128] sm:$0xff] }
 0x44c   :  { %3799 = vmatprep.mubr.bf16.mxu1 %v2133_v60  ;;  %v2083_v38 = vld [vmem:[#allocation2 + $0x141] sm:$0xff] }
 0x44d   :  { %v2135_v35 = vpack.c.bf16 %v2083_v38, %v2082_v52  ;;  %v2087_v52 = vld [vmem:[#allocation2 + $0x171] sm:$0xff] }
 0x44f   :  { %v7898_v30 = vpop.f32.mrb[144].mxu0 }
 0x450   :  { %v3185_v44 = vpop.f32.mrb[145].mxu0 }
 0x451   :  { %v7900_v39 = vpop.f32.mrb[146].mxu0  ;;  %v2038_v44 = vpack.c.bf16 %v1985_v12, %v1984_v17  ;;  %v1989_v17 = vld [vmem:[#allocation2 + $0x158] sm:$0xff] }
 0x452   :  { %v3188_v23 = vpop.f32.mrb[147].mxu0 }
 0x453   :  { %3800 = vmatmul.mubr.bf16.gmra.mrb[120].mxu1 %v7723_v45  ;;  %v2084_v23 = vld [vmem:[#allocation2 + $0x151] sm:$0xff] }
 0x454   :  { %3807 = vmatprep.mubr.bf16.mxu1 %v2134_v25  ;;  %v2085_v25 = vld [vmem:[#allocation2 + $0x159] sm:$0xff] }
 0x455   :  { %v2136_v63 = vpack.c.bf16 %v2085_v25, %v2084_v23  ;;  %v2089_v23 = vld [vmem:[#allocation2 + $0x189] sm:$0xff] }
 0x457   :  { %v7903_v10 = vpop.f32.mrb[148].mxu0 }
 0x458   :  { %v3193_v7 = vpop.f32.mrb[149].mxu0 }
 0x459   :  { %v7905_v60 = vpop.f32.mrb[150].mxu0  ;;  %v2039_v7 = vpack.c.bf16 %v1987_v16, %v1986_v15  ;;  %v1991_v15 = vld [vmem:[#allocation2 + $0x170] sm:$0xff] }
 0x45a   :  { %v3196_v29 = vpop.f32.mrb[151].mxu0 }
 0x45b   :  { %3808 = vmatmul.mubr.bf16.gmra.mrb[124].mxu1 %v2038_v44  ;;  %v1988_v29 = vld [vmem:[#allocation2 + $0x150] sm:$0xff] }
 0x45c   :  { %3815 = vmatprep.mubr.bf16.mxu1 %v2135_v35  ;;  %v2086_v35 = vld [vmem:[#allocation2 + $0x169] sm:$0xff] }
 0x45d   :  { %v2137_v56 = vpack.c.bf16 %v2087_v52, %v2086_v35 }
 0x45f   :  { %v7907_v54 = vpop.f32.mrb[152].mxu0 }
 0x460   :  { %v3201_v45 = vpop.f32.mrb[153].mxu0 }
 0x461   :  { %v7909_v58 = vpop.f32.mrb[154].mxu0  ;;  %v2040_v45 = vpack.c.bf16 %v1989_v17, %v1988_v29  ;;  %v1992_v17 = vld [vmem:[#allocation2 + $0x180] sm:$0xff] }
 0x462   :  { %v3204_v61 = vpop.f32.mrb[155].mxu0 }
 0x463   :  { %3816 = vmatmul.mubr.bf16.gmra.mrb[0].mxu1 %v2039_v7  ;;  %v1990_v61 = vld [vmem:[#allocation2 + $0x168] sm:$0xff] }
 0x464   :  { %3823 = vmatprep.mubr.bf16.mxu1 %v2136_v63  ;;  %v2088_v63 = vld [vmem:[#allocation2 + $0x181] sm:$0xff] }
 0x465   :  { %v2138_v2 = vpack.c.bf16 %v2089_v23, %v2088_v63  ;;  %v5627_v63 = vld [vmem:[#allocation2] sm:$0xff]  ;;  %v2093_v23 = vld [vmem:[#allocation2 + $0x1e9] sm:$0xff] }
 0x467   :  { %v7911_v11 = vpop.f32.mrb[156].mxu0 }
 0x468   :  { %v3209_v12 = vpop.f32.mrb[157].mxu0 }
 0x469   :  { %v7913_v38 = vpop.f32.mrb[158].mxu0  ;;  %v2041_v12 = vpack.c.bf16 %v1991_v15, %v1990_v61  ;;  %v2092_v61 = vld [vmem:[#allocation2 + $0x1e1] sm:$0xff] }
 0x46a   :  { %v3212_v44 = vpop.f32.mrb[159].mxu0  ;;  %v2140_v41 = vpack.c.bf16 %v2093_v23, %v2092_v61  ;;  %v1998_v61 = vld [vmem:[#allocation2 + $0x1f8] sm:$0xff] }
 0x46b   :  { %3824 = vmatmul.mubr.bf16.gmra.mrb[4].mxu1 %v2040_v45  ;;  %v2091_v44 = vld [vmem:[#allocation2 + $0x1a1] sm:$0xff] }
 0x46c   :  { %3831 = vmatprep.mubr.bf16.mxu1 %v2137_v56  ;;  %v1993_v56 = vld [vmem:[#allocation2 + $0x188] sm:$0xff]  ;;  %v2139_v45 = vpack.c.bf16 %v2091_v44, %v2090_v21  ;;  %v1996_v21 = vld [vmem:[#allocation2 + $0x1e0] sm:$0xff] }
 0x46d   :  { %v2042_v4 = vpack.c.bf16 %v1993_v56, %v1992_v17  ;;  %v1997_v44 = vld [vmem:[#allocation2 + $0x1e8] sm:$0xff]  ;;  %v2094_v56 = vld [vmem:[#allocation2 + $0x1f9] sm:$0xff] }
 0x46f   :  { %v7915_v43 = vpop.f32.mrb[160].mxu0 }
 0x470   :  { %v3217_v16 = vpop.f32.mrb[161].mxu0 }
 0x471   :  { %v7917_v25 = vpop.f32.mrb[162].mxu0 }
 0x472   :  { %v3220_v7 = vpop.f32.mrb[163].mxu0 }
 0x473   :  { %3832 = vmatmul.mubr.bf16.gmra.mrb[8].mxu1 %v2041_v12  ;;  %v2218_v7 = vld [vmem:[#allocation2 + $0x34a] sm:$0xff]  ;;  %v2219_v12 = vld [vmem:[#allocation2 + $0x352] sm:$0xff] }
 0x474   :  { %3839 = vmatprep.mubr.bf16.mxu1 %v2138_v2  ;;  %v7925_v2 = vpack.c.bf16 %v5627_v63, %v5627_v63  ;;  %v2044_v63 = vpack.c.bf16 %v1997_v44, %v1996_v21  ;;  %v2000_v44 = vld [vmem:[#allocation2 + $0x210] sm:$0xff] }
 0x477   :  { %v7919_v29 = vpop.f32.mrb[164].mxu0 }
 0x478   :  { %v3225_v35 = vpop.f32.mrb[165].mxu0 }
 0x479   :  { %v7921_v52 = vpop.f32.mrb[166].mxu0  ;;  %v2251_v35 = vpack.c.bf16 %v2219_v12, %v2218_v7  ;;  %v2096_v12 = vld [vmem:[#allocation2 + $0x211] sm:$0xff] }
 0x47a   :  { %v3228_v16 = vpop.f32.mrb[167].mxu0 }
 0x47b   :  { %3840 = vmatmul.mubr.bf16.gmra.mrb[12].mxu1 %v2042_v4  ;;  %5153 = vmatmul.mubr.bf16.gmra.mrb[60].mxu0 %v2251_v35  ;;  %v2097_v35 = vld [vmem:[#allocation2 + $0x219] sm:$0xff] }
 0x47c   :  { %3847 = vmatprep.mubr.bf16.mxu1 %v2139_v45  ;;  %v2095_v45 = vld [vmem:[#allocation2 + $0x201] sm:$0xff]  ;;  %v2142_v20 = vpack.c.bf16 %v2097_v35, %v2096_v12  ;;  %v2101_v35 = vld [vmem:[#allocation2 + $0x249] sm:$0xff] }
 0x47d   :  { %v2141_v7 = vpack.c.bf16 %v2095_v45, %v2094_v56  ;;  %v2001_v56 = vld [vmem:[#allocation2 + $0x218] sm:$0xff]  ;;  %v2100_v12 = vld [vmem:[#allocation2 + $0x241] sm:$0xff] }
 0x47e   :  { %v2046_v28 = vpack.c.bf16 %v2001_v56, %v2000_v44  ;;  %v2144_v33 = vpack.c.bf16 %v2101_v35, %v2100_v12  ;;  %v2104_v12 = vld [vmem:[#allocation2 + $0x271] sm:$0xff]  ;;  %v2105_v35 = vld [vmem:[#allocation2 + $0x279] sm:$0xff] }
 0x47f   :  { %v7923_v46 = vpop.f32.mrb[168].mxu0  ;;  %v2146_v14 = vpack.c.bf16 %v2105_v35, %v2104_v12  ;;  %v2108_v12 = vld [vmem:[#allocation2 + $0x2a1] sm:$0xff]  ;;  %v2109_v35 = vld [vmem:[#allocation2 + $0x2a9] sm:$0xff] }
 0x480   :  { %v3233_v15 = vpop.f32.mrb[169].mxu0 }
 0x481   :  { %v7927_v5 = vpop.f32.mrb[170].mxu0 }
 0x482   :  { %v3236_v22 = vpop.f32.mrb[171].mxu0 }
 0x483   :  { %3848 = vmatmul.mubr.bf16.gmra.mrb[16].mxu1 %v7925_v2 }
 0x484   :  { %3855 = vmatprep.mubr.bf16.mxu1 %v2140_v41  ;;  %v1999_v41 = vld [vmem:[#allocation2 + $0x200] sm:$0xff] }
 0x485   :  { %v2045_v31 = vpack.c.bf16 %v1999_v41, %v1998_v61 }
 0x487   :  { %v7930_v4 = vpop.f32.mrb[0].mxu0 }
 0x488   :  { %v7932_v17 = vpop.f32.mrb[1].mxu0 }
 0x489   :  { %v7934_v16 = vpop.f32.mrb[2].mxu0 }
 0x48a   :  { %v7936_v15 = vpop.f32.mrb[3].mxu0 }
 0x48b   :  { %3856 = vmatmul.mubr.bf16.gmra.mrb[20].mxu1 %v2044_v63  ;;  %v2098_v63 = vld [vmem:[#allocation2 + $0x229] sm:$0xff] }
 0x48c   :  { %3863 = vmatprep.mubr.bf16.mxu1 %v2141_v7  ;;  %v2099_v7 = vld [vmem:[#allocation2 + $0x231] sm:$0xff] }
 0x48d   :  { %v2143_v55 = vpack.c.bf16 %v2099_v7, %v2098_v63  ;;  %v2102_v63 = vld [vmem:[#allocation2 + $0x259] sm:$0xff]  ;;  %v2103_v7 = vld [vmem:[#allocation2 + $0x261] sm:$0xff] }
 0x48e   :  { %v2145_v50 = vpack.c.bf16 %v2103_v7, %v2102_v63  ;;  %v2106_v63 = vld [vmem:[#allocation2 + $0x289] sm:$0xff]  ;;  %v2107_v7 = vld [vmem:[#allocation2 + $0x291] sm:$0xff] }
 0x48f   :  { %v7938_v22 = vpop.f32.mrb[4].mxu0 }
 0x490   :  { %v7940_v23 = vpop.f32.mrb[5].mxu0 }
 0x491   :  { %v7942_v47 = vpop.f32.mrb[6].mxu0 }
 0x492   :  { %v7944_v13 = vpop.f32.mrb[7].mxu0 }
 0x493   :  { %3864 = vmatmul.mubr.bf16.gmra.mrb[24].mxu1 %v2045_v31  ;;  %v2002_v31 = vld [vmem:[#allocation2 + $0x228] sm:$0xff] }
 0x494   :  { %3871 = vmatprep.mubr.bf16.mxu1 %v2142_v20  ;;  %v2003_v20 = vld [vmem:[#allocation2 + $0x230] sm:$0xff] }
 0x495   :  { %v2047_v18 = vpack.c.bf16 %v2003_v20, %v2002_v31 }
 0x497   :  { %v7946_v21 = vpop.f32.mrb[8].mxu0 }
 0x498   :  { %v7948_v45 = vpop.f32.mrb[9].mxu0 }
 0x499   :  { %v7950_v34 = vpop.f32.mrb[10].mxu0 }
 0x49a   :  { %v7952_v32 = vpop.f32.mrb[11].mxu0 }
 0x49b   :  { %3872 = vmatmul.mubr.bf16.gmra.mrb[28].mxu1 %v2046_v28  ;;  %v2004_v28 = vld [vmem:[#allocation2 + $0x240] sm:$0xff] }
 0x49c   :  { %3879 = vmatprep.mubr.bf16.mxu1 %v2143_v55  ;;  %v2005_v55 = vld [vmem:[#allocation2 + $0x248] sm:$0xff] }
 0x49d   :  { %v2048_v49 = vpack.c.bf16 %v2005_v55, %v2004_v28 }
 0x49f   :  { %v7954_v61 = vpop.f32.mrb[12].mxu0 }
 0x4a0   :  { %v7956_v41 = vpop.f32.mrb[13].mxu0 }
 0x4a1   :  { %v7958_v37 = vpop.f32.mrb[14].mxu0 }
 0x4a2   :  { %v7960_v51 = vpop.f32.mrb[15].mxu0 }
 0x4a3   :  { %3880 = vmatmul.mubr.bf16.gmra.mrb[32].mxu1 %v2047_v18  ;;  %v2006_v18 = vld [vmem:[#allocation2 + $0x258] sm:$0xff] }
 0x4a4   :  { %3887 = vmatprep.mubr.bf16.mxu1 %v2144_v33  ;;  %v2007_v33 = vld [vmem:[#allocation2 + $0x260] sm:$0xff] }
 0x4a5   :  { %v2049_v27 = vpack.c.bf16 %v2007_v33, %v2006_v18 }
 0x4a7   :  { %v7962_v44 = vpop.f32.mrb[16].mxu0 }
 0x4a8   :  { %v7964_v56 = vpop.f32.mrb[17].mxu0 }
 0x4a9   :  { %v7966_v40 = vpop.f32.mrb[18].mxu0 }
 0x4aa   :  { %v7968_v9 = vpop.f32.mrb[19].mxu0 }
 0x4ab   :  { %3888 = vmatmul.mubr.bf16.gmra.mrb[36].mxu1 %v2048_v49  ;;  %v2008_v49 = vld [vmem:[#allocation2 + $0x270] sm:$0xff] }
 0x4ac   :  { %3895 = vmatprep.mubr.bf16.mxu1 %v2145_v50  ;;  %v2009_v50 = vld [vmem:[#allocation2 + $0x278] sm:$0xff] }
 0x4ad   :  { %v2050_v42 = vpack.c.bf16 %v2009_v50, %v2008_v49 }
 0x4af   :  { %v7970_v31 = vpop.f32.mrb[20].mxu0 }
 0x4b0   :  { %10050 = vst [vmem:[#allocation113_spill] sm:$0xff] %v7970_v31  ;;  %v7972_v20 = vpop.f32.mrb[21].mxu0 }
 0x4b1   :  { %v7974_v36 = vpop.f32.mrb[22].mxu0 }
 0x4b2   :  { %10051 = vst [vmem:[#allocation114_spill] sm:$0xff] %v7974_v36  ;;  %v7976_v0 = vpop.f32.mrb[23].mxu0  ;;  %v2147_v36 = vpack.c.bf16 %v2107_v7, %v2106_v63  ;;  %v2110_v63 = vld [vmem:[#allocation2 + $0x2b9] sm:$0xff]  ;;  %v2111_v7 = vld [vmem:[#allocation2 + $0x2c1] sm:$0xff] }
 0x4b3   :  { %3896 = vmatmul.mubr.bf16.gmra.mrb[40].mxu1 %v2049_v27  ;;  %v2010_v27 = vld [vmem:[#allocation2 + $0x288] sm:$0xff] }
 0x4b4   :  { %3903 = vmatprep.mubr.bf16.mxu1 %v2146_v14  ;;  %v2011_v14 = vld [vmem:[#allocation2 + $0x290] sm:$0xff] }
 0x4b7   :  { %v7978_v28 = vpop.f32.mrb[24].mxu0 }
 0x4b8   :  { %10052 = vst [vmem:[#allocation115_spill] sm:$0xff] %v7978_v28  ;;  %v7980_v55 = vpop.f32.mrb[25].mxu0 }
 0x4b9   :  { %10053 = vst [vmem:[#allocation116_spill] sm:$0xff] %v7980_v55  ;;  %v7982_v62 = vpop.f32.mrb[26].mxu0  ;;  %v2051_v55 = vpack.c.bf16 %v2011_v14, %v2010_v27 }
 0x4ba   :  { %10054 = vst [vmem:[#allocation117_spill] sm:$0xff] %v7982_v62  ;;  %v7984_v3 = vpop.f32.mrb[27].mxu0  ;;  %v2148_v62 = vpack.c.bf16 %v2109_v35, %v2108_v12  ;;  %v2112_v12 = vld [vmem:[#allocation2 + $0x2d1] sm:$0xff]  ;;  %v2113_v35 = vld [vmem:[#allocation2 + $0x2d9] sm:$0xff] }
 0x4bb   :  { %10055 = vst [vmem:[#allocation118_spill] sm:$0xff] %v7984_v3  ;;  %3904 = vmatmul.mubr.bf16.gmra.mrb[44].mxu1 %v2050_v42  ;;  %v2012_v42 = vld [vmem:[#allocation2 + $0x2a0] sm:$0xff] }
 0x4bc   :  { %3911 = vmatprep.mubr.bf16.mxu1 %v2147_v36  ;;  %v2013_v36 = vld [vmem:[#allocation2 + $0x2a8] sm:$0xff] }
 0x4bd   :  { %v2052_v3 = vpack.c.bf16 %v2013_v36, %v2012_v42 }
 0x4bf   :  { %v7986_v18 = vpop.f32.mrb[28].mxu0 }
 0x4c0   :  { %10056 = vst [vmem:[#allocation119_spill] sm:$0xff] %v7986_v18  ;;  %v7988_v33 = vpop.f32.mrb[29].mxu0 }
 0x4c1   :  { %10057 = vst [vmem:[#allocation120_spill] sm:$0xff] %v7988_v33  ;;  %v7990_v28 = vpop.f32.mrb[30].mxu0 }
 0x4c2   :  { %10058 = vst [vmem:[#allocation121_spill] sm:$0xff] %v7990_v28  ;;  %v7992_v31 = vpop.f32.mrb[31].mxu0  ;;  %v2149_v28 = vpack.c.bf16 %v2111_v7, %v2110_v63  ;;  %v2114_v63 = vld [vmem:[#allocation2 + $0x2e9] sm:$0xff]  ;;  %v2115_v7 = vld [vmem:[#allocation2 + $0x2f1] sm:$0xff] }
 0x4c3   :  { %10059 = vst [vmem:[#allocation122_spill] sm:$0xff] %v7992_v31  ;;  %3912 = vmatmul.mubr.bf16.gmra.mrb[48].mxu1 %v2051_v55  ;;  %v2014_v55 = vld [vmem:[#allocation2 + $0x2b8] sm:$0xff] }
 0x4c4   :  { %3919 = vmatprep.mubr.bf16.mxu1 %v2148_v62  ;;  %v2015_v62 = vld [vmem:[#allocation2 + $0x2c0] sm:$0xff] }
 0x4c5   :  { %v2053_v31 = vpack.c.bf16 %v2015_v62, %v2014_v55 }
 0x4c7   :  { %v7994_v49 = vpop.f32.mrb[32].mxu0 }
 0x4c8   :  { %10060 = vst [vmem:[#allocation123_spill] sm:$0xff] %v7994_v49  ;;  %v7996_v50 = vpop.f32.mrb[33].mxu0 }
 0x4c9   :  { %10061 = vst [vmem:[#allocation124_spill] sm:$0xff] %v7996_v50  ;;  %v7998_v18 = vpop.f32.mrb[34].mxu0 }
 0x4ca   :  { %10062 = vst [vmem:[#allocation125_spill] sm:$0xff] %v7998_v18  ;;  %v8000_v33 = vpop.f32.mrb[35].mxu0  ;;  %v2150_v18 = vpack.c.bf16 %v2113_v35, %v2112_v12 }
 0x4cb   :  { %10063 = vst [vmem:[#allocation126_spill] sm:$0xff] %v8000_v33  ;;  %3920 = vmatmul.mubr.bf16.gmra.mrb[52].mxu1 %v2052_v3  ;;  %v2016_v3 = vld [vmem:[#allocation2 + $0x2d0] sm:$0xff] }
 0x4cc   :  { %3927 = vmatprep.mubr.bf16.mxu1 %v2149_v28  ;;  %v2017_v28 = vld [vmem:[#allocation2 + $0x2d8] sm:$0xff] }
 0x4cd   :  { %v2054_v33 = vpack.c.bf16 %v2017_v28, %v2016_v3 }
 0x4cf   :  { %v8002_v27 = vpop.f32.mrb[36].mxu0 }
 0x4d0   :  { %10064 = vst [vmem:[#allocation127_spill] sm:$0xff] %v8002_v27  ;;  %v8004_v14 = vpop.f32.mrb[37].mxu0 }
 0x4d1   :  { %10065 = vst [vmem:[#allocation128_spill] sm:$0xff] %v8004_v14  ;;  %v8006_v49 = vpop.f32.mrb[38].mxu0 }
 0x4d2   :  { %10066 = vst [vmem:[#allocation129_spill] sm:$0xff] %v8006_v49  ;;  %v8008_v50 = vpop.f32.mrb[39].mxu0  ;;  %v2151_v49 = vpack.c.bf16 %v2115_v7, %v2114_v63 }
 0x4d3   :  { %10067 = vst [vmem:[#allocation130_spill] sm:$0xff] %v8008_v50  ;;  %3928 = vmatmul.mubr.bf16.gmra.mrb[56].mxu1 %v2053_v31  ;;  %v2018_v31 = vld [vmem:[#allocation2 + $0x2e8] sm:$0xff] }
 0x4d4   :  { %3935 = vmatprep.mubr.bf16.mxu1 %v2150_v18  ;;  %v2019_v18 = vld [vmem:[#allocation2 + $0x2f0] sm:$0xff] }
 0x4d5   :  { %v2117_v50 = vld [vmem:[#allocation2 + $0x309] sm:$0xff]  ;;  %v2055_v63 = vpack.c.bf16 %v2019_v18, %v2018_v31 }
 0x4d7   :  { %v8010_v42 = vpop.f32.mrb[40].mxu0 }
 0x4d8   :  { %10068 = vst [vmem:[#allocation131_spill] sm:$0xff] %v8010_v42  ;;  %v8012_v36 = vpop.f32.mrb[41].mxu0 }
 0x4d9   :  { %10069 = vst [vmem:[#allocation132_spill] sm:$0xff] %v8012_v36  ;;  %v8014_v27 = vpop.f32.mrb[42].mxu0  ;;  %v2116_v36 = vld [vmem:[#allocation2 + $0x301] sm:$0xff] }
 0x4da   :  { %10070 = vst [vmem:[#allocation133_spill] sm:$0xff] %v8014_v27  ;;  %v8016_v14 = vpop.f32.mrb[43].mxu0  ;;  %v2152_v7 = vpack.c.bf16 %v2117_v50, %v2116_v36 }
 0x4db   :  { %3936 = vmatmul.mubr.bf16.gmra.mrb[60].mxu1 %v2054_v33 }
 0x4dc   :  { %3943 = vmatprep.mubr.bf16.mxu1 %v2151_v49 }
 0x4de   :  { %v3729_v55 = vpop.f32.mrb[84].mxu1 }
 0x4df   :  { %v8018_v62 = vpop.f32.mrb[44].mxu0  ;;  %v5188_v12 = vadd.f32 %v3729_v55, %v7878_v24  ;;  %v3731_v35 = vpop.f32.mrb[85].mxu1 }
 0x4e0   :  { %10071 = vst [vmem:[#allocation134_spill] sm:$0xff] %v8018_v62  ;;  %v8021_v42 = vpop.f32.mrb[45].mxu0  ;;  %v3732_v6 = vpop.f32.mrb[86].mxu1  ;;  %v2020_v62 = vld [vmem:[#allocation2 + $0x300] sm:$0xff] }
 0x4e1   :  { %10072 = vst [vmem:[#allocation135_spill] sm:$0xff] %v8021_v42  ;;  %v8023_v27 = vpop.f32.mrb[46].mxu0  ;;  %v8026_v3 = vadd.f32 %v5188_v12, %v7932_v17  ;;  %v5189_v33 = vadd.f32 %v3732_v6, %v7880_v48  ;;  %v3734_v49 = vpop.f32.mrb[87].mxu1  ;;  %v2118_v6 = vld [vmem:[#allocation2 + $0x319] sm:$0xff]  ;;  %v2119_v48 = vld [vmem:[#allocation2 + $0x321] sm:$0xff] }
 0x4e2   :  { %10073 = vst [vmem:[#allocation136_spill] sm:$0xff] %v8023_v27  ;;  %v8029_v28 = vpop.f32.mrb[47].mxu0  ;;  %v2021_v27 = vld [vmem:[#allocation2 + $0x308] sm:$0xff] }
 0x4e3   :  { %v8032_v24 = vadd.f32 %v5189_v33, %v7936_v15  ;;  %3944 = vmatmul.mubr.bf16.gmra.mrb[64].mxu1 %v2055_v63  ;;  %v2056_v33 = vpack.c.bf16 %v2021_v27, %v2020_v62  ;;  %v2153_v63 = vpack.c.bf16 %v2119_v48, %v2118_v6 }
 0x4e4   :  { %3951 = vmatprep.mubr.bf16.mxu1 %v2152_v7 }
 0x4e6   :  { %v3737_v55 = vpop.f32.mrb[88].mxu1 }
 0x4e7   :  { %v8034_v35 = vpop.f32.mrb[48].mxu0  ;;  %v5190_v17 = vadd.f32 %v3737_v55, %v7883_v8  ;;  %v3739_v12 = vpop.f32.mrb[89].mxu1 }
 0x4e8   :  { %10074 = vst [vmem:[#allocation137_spill] sm:$0xff] %v8034_v35  ;;  %v8037_v42 = vpop.f32.mrb[49].mxu0  ;;  %v3740_v49 = vpop.f32.mrb[90].mxu1  ;;  %v2022_v12 = vld [vmem:[#allocation2 + $0x318] sm:$0xff] }
 0x4e9   :  { %v8039_v31 = vpop.f32.mrb[50].mxu0  ;;  %v8042_v15 = vadd.f32 %v5190_v17, %v7930_v4  ;;  %v5191_v50 = vadd.f32 %v3740_v49, %v7885_v53  ;;  %v3742_v36 = vpop.f32.mrb[91].mxu1 }
 0x4ea   :  { %10075 = vst [vmem:[#allocation138_spill] sm:$0xff] %v8039_v31  ;;  %v8045_v18 = vpop.f32.mrb[51].mxu0  ;;  %v2023_v31 = vld [vmem:[#allocation2 + $0x320] sm:$0xff]  ;;  %v2123_v36 = vld [vmem:[#allocation2 + $0x351] sm:$0xff] }
 0x4eb   :  { %v8048_v8 = vadd.f32 %v5191_v50, %v7934_v16  ;;  %3952 = vmatmul.mubr.bf16.gmra.mrb[68].mxu1 %v2056_v33  ;;  %v2057_v48 = vpack.c.bf16 %v2023_v31, %v2022_v12 }
 0x4ec   :  { %3959 = vmatprep.mubr.bf16.mxu1 %v2153_v63 }
 0x4ee   :  { %v3745_v7 = vpop.f32.mrb[92].mxu1 }
 0x4ef   :  { %v8050_v55 = vpop.f32.mrb[52].mxu0  ;;  %v5192_v4 = vadd.f32 %v3745_v7, %v7888_v57  ;;  %v3747_v17 = vpop.f32.mrb[93].mxu1  ;;  %v2122_v57 = vld [vmem:[#allocation2 + $0x349] sm:$0xff] }
 0x4f0   :  { %v8053_v35 = vpop.f32.mrb[53].mxu0  ;;  %v3748_v53 = vpop.f32.mrb[94].mxu1  ;;  %v2024_v7 = vld [vmem:[#allocation2 + $0x330] sm:$0xff] }
 0x4f1   :  { %v8055_v49 = vpop.f32.mrb[54].mxu0  ;;  %v8058_v27 = vadd.f32 %v5192_v4, %v7940_v23  ;;  %v5193_v16 = vadd.f32 %v3748_v53, %v7890_v59  ;;  %v3750_v62 = vpop.f32.mrb[95].mxu1  ;;  %v2025_v23 = vld [vmem:[#allocation2 + $0x338] sm:$0xff] }
 0x4f2   :  { %v8061_v6 = vpop.f32.mrb[55].mxu0 }
 0x4f3   :  { %v8064_v50 = vadd.f32 %v5193_v16, %v7944_v13  ;;  %3960 = vmatmul.mubr.bf16.gmra.mrb[72].mxu1 %v2057_v48  ;;  %v2155_v13 = vpack.c.bf16 %v2123_v36, %v2122_v57  ;;  %v2058_v48 = vpack.c.bf16 %v2025_v23, %v2024_v7 }
 0x4f4   :  { %3967 = vmatprep.mubr.bf16.mxu1 %v7841_v1 }
 0x4f6   :  { %v3753_v33 = vpop.f32.mrb[96].mxu1 }
 0x4f7   :  { %v8067_v63 = vpop.f32.mrb[56].mxu0  ;;  %v5194_v4 = vadd.f32 %v3753_v33, %v7893_v26  ;;  %v3755_v59 = vpop.f32.mrb[97].mxu1 }
 0x4f8   :  { %10076 = vst [vmem:[#allocation139_spill] sm:$0xff] %v8067_v63  ;;  %v8070_v17 = vpop.f32.mrb[57].mxu0  ;;  %v3756_v53 = vpop.f32.mrb[98].mxu1 }
 0x4f9   :  { %v8072_v31 = vpop.f32.mrb[58].mxu0  ;;  %v8075_v12 = vadd.f32 %v5194_v4, %v7938_v22  ;;  %v5195_v1 = vadd.f32 %v3756_v53, %v7895_v19  ;;  %v3758_v16 = vpop.f32.mrb[99].mxu1 }
 0x4fa   :  { %10077 = vst [vmem:[#allocation140_spill] sm:$0xff] %v8072_v31  ;;  %v8078_v62 = vpop.f32.mrb[59].mxu0 }
 0x4fb   :  { %v8081_v63 = vadd.f32 %v5195_v1, %v7942_v47  ;;  %3968 = vmatmul.mubr.bf16.gmra.mrb[76].mxu1 %v2058_v48 }
 0x4fc   :  { %3975 = vmatprep.mubr.bf16.mxu1 %v2155_v13 }
 0x4fe   :  { %v3761_v26 = vpop.f32.mrb[100].mxu1 }
 0x4ff   :  { %v5196_v33 = vadd.f32 %v3761_v26, %v7898_v30  ;;  %v3763_v59 = vpop.f32.mrb[101].mxu1 }
 0x500   :  { %v3764_v31 = vpop.f32.mrb[102].mxu1 }
 0x501   :  { %v8085_v57 = vadd.f32 %v5196_v33, %v7948_v45  ;;  %v5197_v22 = vadd.f32 %v3764_v31, %v7900_v39  ;;  %v3766_v19 = vpop.f32.mrb[103].mxu1 }
 0x503   :  { %v8089_v36 = vadd.f32 %v5197_v22, %v7952_v32  ;;  %3976 = vmatmul.mubr.bf16.gmra.mrb[80].mxu1 %v7925_v2 }
 0x506   :  { %v3769_v47 = vpop.f32.mrb[104].mxu1 }
 0x507   :  { %v5198_v7 = vadd.f32 %v3769_v47, %v7903_v10  ;;  %v3771_v23 = vpop.f32.mrb[105].mxu1  ;;  %v4345_v47 = vmul.f32 %v8032_v24, %v8032_v24 }
 0x508   :  { %v3772_v4 = vpop.f32.mrb[106].mxu1 }
 0x509   :  { %v8094_v30 = vadd.f32 %v5198_v7, %v7946_v21  ;;  %v5199_v53 = vadd.f32 %v3772_v4, %v7905_v60  ;;  %v3774_v45 = vpop.f32.mrb[107].mxu1 }
 0x50b   :  { %v8098_v13 = vadd.f32 %v5199_v53, %v7950_v34 }
 0x50e   :  { %v3777_v39 = vpop.f32.mrb[108].mxu1 }
 0x50f   :  { %v5200_v32 = vadd.f32 %v3777_v39, %v7907_v54  ;;  %v3779_v31 = vpop.f32.mrb[109].mxu1 }
 0x510   :  { %v3780_v1 = vpop.f32.mrb[110].mxu1 }
 0x511   :  { %v8102_v2 = vadd.f32 %v5200_v32, %v7956_v41  ;;  %v5201_v10 = vadd.f32 %v3780_v1, %v7909_v58  ;;  %v3782_v16 = vpop.f32.mrb[111].mxu1 }
 0x513   :  { %v8106_v21 = vadd.f32 %v5201_v10, %v7960_v51  ;;  %v4348_v10 = vmul.f32 %v8058_v27, %v8058_v27 }
 0x516   :  { %v3785_v48 = vpop.f32.mrb[112].mxu1 }
 0x517   :  { %v5202_v60 = vadd.f32 %v3785_v48, %v7911_v11  ;;  %v3787_v26 = vpop.f32.mrb[113].mxu1 }
 0x518   :  { %v3788_v34 = vpop.f32.mrb[114].mxu1 }
 0x519   :  { %v8110_v33 = vadd.f32 %v5202_v60, %v7954_v61  ;;  %v5203_v54 = vadd.f32 %v3788_v34, %v7913_v38  ;;  %v3790_v59 = vpop.f32.mrb[115].mxu1  ;;  %v4344_v38 = vmul.f32 %v8026_v3, %v8026_v3 }
 0x51b   :  { %v8114_v41 = vadd.f32 %v5203_v54, %v7958_v37  ;;  %v4275_v37 = vadd.f32 %v8032_v24, %v8026_v3  ;;  %v4408_v4 = vadd.f32 %v4345_v47, %v4344_v38  ;;  %v4349_v54 = vmul.f32 %v8064_v50, %v8064_v50 }
 0x51d   :  { %v4276_v53 = vadd.f32 %v4275_v37, %v8042_v15  ;;  %v4351_v37 = vmul.f32 %v8081_v63, %v8081_v63 }
 0x51e   :  { %v3793_v22 = vpop.f32.mrb[116].mxu1 }
 0x51f   :  { %v5204_v58 = vadd.f32 %v3793_v22, %v7915_v43  ;;  %v3795_v19 = vpop.f32.mrb[117].mxu1  ;;  %v4346_v43 = vmul.f32 %v8042_v15, %v8042_v15  ;;  %v4277_v1 = vadd.f32 %v4276_v53, %v8048_v8 }
 0x520   :  { %v3796_v51 = vpop.f32.mrb[118].mxu1 }
 0x521   :  { %v8120_v11 = vadd.f32 %v5204_v58, %v7964_v56  ;;  %v5205_v61 = vadd.f32 %v3796_v51, %v7917_v25  ;;  %v3798_v7 = vpop.f32.mrb[119].mxu1  ;;  %v4409_v45 = vadd.f32 %v4408_v4, %v4346_v43  ;;  %v4347_v25 = vmul.f32 %v8048_v8, %v8048_v8 }
 0x522   :  { %v4278_v26 = vadd.f32 %v4277_v1, %v8058_v27  ;;  %v4352_v4 = vmul.f32 %v8085_v57, %v8085_v57  ;;  %v10081_v1 = vld [vmem:[#allocation113_spill] sm:$0xff] }
 0x523   :  { %v8130_v23 = vadd.f32 %v5205_v61, %v7968_v9  ;;  %v4410_v60 = vadd.f32 %v4409_v45, %v4347_v25  ;;  %v10080_v45 = vld [vmem:[#allocation77_spill] sm:$0xff] }
 0x524   :  { %v4279_v22 = vadd.f32 %v4278_v26, %v8064_v50  ;;  %v4354_v26 = vmul.f32 %v8094_v30, %v8094_v30 }
 0x526   :  { %v3801_v56 = vpop.f32.mrb[120].mxu1  ;;  %v4280_v47 = vadd.f32 %v4279_v22, %v8075_v12 }
 0x527   :  { %v5206_v39 = vadd.f32 %v3801_v56, %v7919_v29  ;;  %v3803_v32 = vpop.f32.mrb[121].mxu1  ;;  %v4411_v29 = vadd.f32 %v4410_v60, %v4348_v10  ;;  %v10082_v10 = vld [vmem:[#allocation82_spill] sm:$0xff] }
 0x528   :  { %v3804_v31 = vpop.f32.mrb[122].mxu1 }
 0x529   :  { %v8140_v9 = vadd.f32 %v5206_v39, %v7962_v44  ;;  %v5207_v16 = vadd.f32 %v3804_v31, %v7921_v52  ;;  %v3806_v48 = vpop.f32.mrb[123].mxu1  ;;  %v4350_v44 = vmul.f32 %v8075_v12, %v8075_v12  ;;  %v4412_v51 = vadd.f32 %v4411_v29, %v4349_v54  ;;  %v10083_v29 = vld [vmem:[#allocation114_spill] sm:$0xff] }
 0x52a   :  { %v4353_v31 = vmul.f32 %v8089_v36, %v8089_v36 }
 0x52b   :  { %v8145_v34 = vadd.f32 %v5207_v16, %v7966_v40  ;;  %v4413_v38 = vadd.f32 %v4412_v51, %v4350_v44 }
 0x52d   :  { %v4414_v56 = vadd.f32 %v4413_v38, %v4351_v37  ;;  %v4356_v38 = vmul.f32 %v8102_v2, %v8102_v2  ;;  %v10086_v37 = vld [vmem:[#allocation116_spill] sm:$0xff] }
 0x52e   :  { %v3809_v59 = vpop.f32.mrb[124].mxu1 }
 0x52f   :  { %v5208_v58 = vadd.f32 %v3809_v59, %v7923_v46  ;;  %v3811_v52 = vpop.f32.mrb[125].mxu1  ;;  %v4281_v46 = vadd.f32 %v4280_v47, %v8081_v63  ;;  %v4415_v32 = vadd.f32 %v4414_v56, %v4352_v4  ;;  %v10087_v4 = vld [vmem:[#allocation86_spill] sm:$0xff] }
 0x530   :  { %v3812_v19 = vpop.f32.mrb[126].mxu1  ;;  %v4355_v52 = vmul.f32 %v8098_v13, %v8098_v13 }
 0x531   :  { %v8155_v40 = vadd.f32 %v5208_v58, %v7972_v20  ;;  %v5209_v61 = vadd.f32 %v3812_v19, %v7927_v5  ;;  %v3814_v7 = vpop.f32.mrb[127].mxu1  ;;  %v4282_v20 = vadd.f32 %v4281_v46, %v8085_v57  ;;  %v4416_v59 = vadd.f32 %v4415_v32, %v4353_v31  ;;  %v10085_v19 = vld [vmem:[#allocation84_spill] sm:$0xff] }
 0x532   :  { %v4357_v32 = vmul.f32 %v8106_v21, %v8106_v21 }
 0x533   :  { %10078 = vst [vmem:[#allocation141_spill] sm:$0xff] %v8155_v40  ;;  %v8161_v43 = vadd.f32 %v5209_v61, %v7976_v0  ;;  %v4283_v60 = vadd.f32 %v4282_v20, %v8089_v36  ;;  %v4417_v58 = vadd.f32 %v4416_v59, %v4354_v26 }
 0x535   :  { %10079 = vst [vmem:[#allocation142_spill] sm:$0xff] %v8161_v43  ;;  %v4284_v22 = vadd.f32 %v4283_v60, %v8094_v30  ;;  %v4418_v20 = vadd.f32 %v4417_v58, %v4355_v52  ;;  %v10093_v58 = vld [vmem:[#allocation43_spill] sm:$0xff] }
 0x536   :  { %v3817_v53 = vpop.f32.mrb[0].mxu1 }
 0x537   :  { %v5210_v25 = vadd.f32 %v3817_v53, %v10080_v45  ;;  %v3819_v5 = vpop.f32.mrb[1].mxu1  ;;  %v4285_v7 = vadd.f32 %v4284_v22, %v8098_v13  ;;  %v10091_v22 = vld [vmem:[#allocation115_spill] sm:$0xff] }
 0x538   :  { %v3820_v39 = vpop.f32.mrb[2].mxu1 }
 0x539   :  { %v8171_v0 = vadd.f32 %v5210_v25, %v10081_v1  ;;  %v5211_v16 = vadd.f32 %v3820_v39, %v10082_v10  ;;  %v3822_v48 = vpop.f32.mrb[3].mxu1  ;;  %v4286_v45 = vadd.f32 %v4285_v7, %v8102_v2  ;;  %v10088_v25 = vld [vmem:[#allocation118_spill] sm:$0xff]  ;;  %v4419_v39 = vadd.f32 %v4418_v20, %v4356_v38  ;;  %v10096_v20 = vld [vmem:[#allocation45_spill] sm:$0xff] }
 0x53a   :  { %v4358_v10 = vmul.f32 %v8110_v33, %v8110_v33 }
 0x53b   :  { %v8178_v54 = vadd.f32 %v5211_v16, %v10083_v29  ;;  %v4287_v1 = vadd.f32 %v4286_v45, %v8106_v21  ;;  %v10090_v16 = vld [vmem:[#allocation88_spill] sm:$0xff]  ;;  %v4420_v29 = vadd.f32 %v4419_v39, %v4357_v32 }
 0x53d   :  { %10084 = vst [vmem:[#allocation77_spill] sm:$0xff] %v8178_v54  ;;  %v4288_v59 = vadd.f32 %v4287_v1, %v8110_v33  ;;  %v10097_v1 = vld [vmem:[#allocation120_spill] sm:$0xff] }
 0x53e   :  { %v3825_v44 = vpop.f32.mrb[4].mxu1 }
 0x53f   :  { %v5212_v51 = vadd.f32 %v3825_v44, %v10085_v19  ;;  %v3827_v47 = vpop.f32.mrb[5].mxu1  ;;  %v4289_v38 = vadd.f32 %v4288_v59, %v8114_v41  ;;  %v10100_v59 = vld [vmem:[#allocation122_spill] sm:$0xff] }
 0x540   :  { %v3828_v61 = vpop.f32.mrb[6].mxu1  ;;  %v4359_v47 = vmul.f32 %v8114_v41, %v8114_v41 }
 0x541   :  { %v8188_v46 = vadd.f32 %v5212_v51, %v10086_v37  ;;  %v5213_v53 = vadd.f32 %v3828_v61, %v10087_v4  ;;  %v3830_v56 = vpop.f32.mrb[7].mxu1  ;;  %v4421_v51 = vadd.f32 %v4420_v29, %v4358_v10  ;;  %v10094_v61 = vld [vmem:[#allocation117_spill] sm:$0xff]  ;;  %v4360_v37 = vmul.f32 %v8120_v11, %v8120_v11 }
 0x542   :  { %v4290_v56 = vadd.f32 %v4289_v38, %v8120_v11  ;;  %v4362_v29 = vmul.f32 %v8140_v9, %v8140_v9  ;;  %v4363_v38 = vmul.f32 %v8145_v34, %v8145_v34 }
 0x543   :  { %v8193_v5 = vadd.f32 %v5213_v53, %v10088_v25  ;;  %v4422_v53 = vadd.f32 %v4421_v51, %v4359_v47 }
 0x545   :  { %10089 = vst [vmem:[#allocation113_spill] sm:$0xff] %v8193_v5  ;;  %v4423_v32 = vadd.f32 %v4422_v53, %v4360_v37  ;;  %v10102_v37 = vld [vmem:[#allocation49_spill] sm:$0xff] }
 0x546   :  { %v3833_v31 = vpop.f32.mrb[8].mxu1 }
 0x547   :  { %v5214_v48 = vadd.f32 %v3833_v31, %v10090_v16  ;;  %v3835_v60 = vpop.f32.mrb[9].mxu1  ;;  %v4361_v31 = vmul.f32 %v8130_v23, %v8130_v23  ;;  %v10099_v16 = vld [vmem:[#allocation47_spill] sm:$0xff] }
 0x548   :  { %v3836_v26 = vpop.f32.mrb[10].mxu1 }
 0x549   :  { %v8203_v44 = vadd.f32 %v5214_v48, %v10091_v22  ;;  %v5215_v52 = vadd.f32 %v3836_v26, %v10093_v58  ;;  %v3838_v19 = vpop.f32.mrb[11].mxu1  ;;  %v4291_v26 = vadd.f32 %v4290_v56, %v8130_v23  ;;  %v4424_v58 = vadd.f32 %v4423_v32, %v4361_v31  ;;  %v10103_v32 = vld [vmem:[#allocation119_spill] sm:$0xff] }
 0x54b   :  { %10092 = vst [vmem:[#allocation82_spill] sm:$0xff] %v8203_v44  ;;  %v8209_v7 = vadd.f32 %v5215_v52, %v10094_v61  ;;  %v4292_v52 = vadd.f32 %v4291_v26, %v8140_v9  ;;  %v4425_v61 = vadd.f32 %v4424_v58, %v4362_v29  ;;  %v10105_v29 = vld [vmem:[#allocation121_spill] sm:$0xff] }
 0x54d   :  { %10095 = vst [vmem:[#allocation114_spill] sm:$0xff] %v8209_v7 }
 0x54e   :  { %v3841_v4 = vpop.f32.mrb[12].mxu1  ;;  %v8229_v19 = vpop.f32.mrb[60].mxu0 }
 0x54f   :  { %v5216_v45 = vadd.f32 %v3841_v4, %v10096_v20  ;;  %v3843_v25 = vpop.f32.mrb[13].mxu1  ;;  %v8231_v47 = vpop.f32.mrb[61].mxu0 }
 0x550   :  { %v3844_v39 = vpop.f32.mrb[14].mxu1  ;;  %v8236_v56 = vpop.f32.mrb[62].mxu0  ;;  %v4293_v25 = vadd.f32 %v4292_v52, %v8145_v34 }
 0x551   :  { %v8219_v10 = vadd.f32 %v5216_v45, %v10097_v1  ;;  %v5217_v48 = vadd.f32 %v3844_v39, %v10099_v16  ;;  %v3846_v60 = vpop.f32.mrb[15].mxu1  ;;  %v8238_v45 = vpop.f32.mrb[63].mxu0  ;;  %v4364_v39 = vmul.f32 %v8155_v40, %v8155_v40  ;;  %v10104_v1 = vld [vmem:[#allocation51_spill] sm:$0xff] }
 0x552   :  { %v4426_v60 = vadd.f32 %v4425_v61, %v4363_v38  ;;  %v4294_v26 = vadd.f32 %v4293_v25, %v8155_v40  ;;  %v10108_v25 = vld [vmem:[#allocation124_spill] sm:$0xff] }
 0x553   :  { %10098 = vst [vmem:[#allocation84_spill] sm:$0xff] %v8219_v10  ;;  %v8226_v22 = vadd.f32 %v5217_v48, %v10100_v59 }
 0x554   :  { %v4427_v58 = vadd.f32 %v4426_v60, %v4364_v39  ;;  %v10109_v39 = vld [vmem:[#allocation55_spill] sm:$0xff] }
 0x555   :  { %10101 = vst [vmem:[#allocation116_spill] sm:$0xff] %v8226_v22 }
 0x556   :  { %v3849_v51 = vpop.f32.mrb[16].mxu1 }
 0x557   :  { %v5218_v4 = vadd.f32 %v3849_v51, %v10102_v37  ;;  %v3851_v53 = vpop.f32.mrb[17].mxu1  ;;  %v4365_v51 = vmul.f32 %v8161_v43, %v8161_v43  ;;  %v4295_v37 = vadd.f32 %v4294_v26, %v8161_v43  ;;  %v4367_v26 = vmul.f32 %v8178_v54, %v8178_v54  ;;  %v10110_v43 = vld [vmem:[#allocation126_spill] sm:$0xff] }
 0x558   :  { %v3852_v20 = vpop.f32.mrb[18].mxu1  ;;  %v10107_v53 = vld [vmem:[#allocation53_spill] sm:$0xff] }
 0x559   :  { %v8244_v31 = vadd.f32 %v5218_v4, %v10103_v32  ;;  %v5219_v16 = vadd.f32 %v3852_v20, %v10104_v1  ;;  %v3854_v48 = vpop.f32.mrb[19].mxu1  ;;  %v4366_v4 = vmul.f32 %v8171_v0, %v8171_v0  ;;  %v4428_v61 = vadd.f32 %v4427_v58, %v4365_v51 }
 0x55a   :  { %v4296_v38 = vadd.f32 %v4295_v37, %v8171_v0  ;;  %v4368_v58 = vmul.f32 %v8188_v46, %v8188_v46 }
 0x55b   :  { %v8249_v59 = vadd.f32 %v5219_v16, %v10105_v29  ;;  %v4429_v29 = vadd.f32 %v4428_v61, %v4366_v4  ;;  %v4369_v61 = vmul.f32 %v8193_v5, %v8193_v5 }
 0x55d   :  { %10106 = vst [vmem:[#allocation86_spill] sm:$0xff] %v8249_v59  ;;  %v4430_v37 = vadd.f32 %v4429_v29, %v4367_v26  ;;  %v4370_v29 = vmul.f32 %v8203_v44, %v8203_v44  ;;  %v10115_v26 = vld [vmem:[#allocation125_spill] sm:$0xff] }
 0x55e   :  { %v3857_v52 = vpop.f32.mrb[20].mxu1 }
 0x55f   :  { %v5220_v32 = vadd.f32 %v3857_v52, %v10107_v53  ;;  %v3859_v20 = vpop.f32.mrb[21].mxu1  ;;  %v4297_v52 = vadd.f32 %v4296_v38, %v8178_v54  ;;  %v4431_v4 = vadd.f32 %v4430_v37, %v4368_v58 }
 0x560   :  { %v3860_v1 = vpop.f32.mrb[22].mxu1 }
 0x561   :  { %v8259_v16 = vadd.f32 %v5220_v32, %v10108_v25  ;;  %v5221_v48 = vadd.f32 %v3860_v1, %v10109_v39  ;;  %v3862_v60 = vpop.f32.mrb[23].mxu1  ;;  %v4298_v53 = vadd.f32 %v4297_v52, %v8188_v46  ;;  %v10111_v32 = vld [vmem:[#allocation57_spill] sm:$0xff]  ;;  %v10112_v39 = vld [vmem:[#allocation123_spill] sm:$0xff] }
 0x563   :  { %v8265_v40 = vadd.f32 %v5221_v48, %v10110_v43  ;;  %v10114_v48 = vld [vmem:[#allocation59_spill] sm:$0xff]  ;;  %v4299_v54 = vadd.f32 %v4298_v53, %v8193_v5  ;;  %v10118_v5 = vld [vmem:[#allocation128_spill] sm:$0xff] }
 0x565   :  { %v4300_v58 = vadd.f32 %v4299_v54, %v8203_v44 }
 0x566   :  { %v3865_v51 = vpop.f32.mrb[24].mxu1 }
 0x567   :  { %v5222_v20 = vadd.f32 %v3865_v51, %v10111_v32  ;;  %v3867_v1 = vpop.f32.mrb[25].mxu1  ;;  %v4432_v51 = vadd.f32 %v4431_v4, %v4369_v61  ;;  %v4301_v53 = vadd.f32 %v4300_v58, %v8209_v7  ;;  %v10119_v4 = vld [vmem:[#allocation63_spill] sm:$0xff] }
 0x568   :  { %v3868_v25 = vpop.f32.mrb[26].mxu1  ;;  %v10117_v1 = vld [vmem:[#allocation61_spill] sm:$0xff] }
 0x569   :  { %v8275_v43 = vadd.f32 %v5222_v20, %v10112_v39  ;;  %v5223_v38 = vadd.f32 %v3868_v25, %v10114_v48  ;;  %v3870_v60 = vpop.f32.mrb[27].mxu1  ;;  %v4433_v32 = vadd.f32 %v4432_v51, %v4370_v29  ;;  %v4371_v20 = vmul.f32 %v8209_v7, %v8209_v7  ;;  %v10120_v51 = vld [vmem:[#allocation130_spill] sm:$0xff] }
 0x56a   :  { %v4372_v60 = vmul.f32 %v8219_v10, %v8219_v10  ;;  %v4302_v29 = vadd.f32 %v4301_v53, %v8219_v10  ;;  %v10123_v53 = vld [vmem:[#allocation127_spill] sm:$0xff] }
 0x56b   :  { %10113 = vst [vmem:[#allocation118_spill] sm:$0xff] %v8275_v43  ;;  %v8282_v52 = vadd.f32 %v5223_v38, %v10115_v26  ;;  %v4434_v26 = vadd.f32 %v4433_v32, %v4371_v20 }
 0x56d   :  { %10116 = vst [vmem:[#allocation88_spill] sm:$0xff] %v8282_v52 }
 0x56e   :  { %v3873_v37 = vpop.f32.mrb[28].mxu1 }
 0x56f   :  { %v5224_v39 = vadd.f32 %v3873_v37, %v10117_v1  ;;  %v3875_v25 = vpop.f32.mrb[29].mxu1  ;;  %v4435_v37 = vadd.f32 %v4434_v26, %v4372_v60  ;;  %v4373_v1 = vmul.f32 %v8226_v22, %v8226_v22  ;;  %v10124_v60 = vld [vmem:[#allocation67_spill] sm:$0xff] }
 0x570   :  { %v3876_v48 = vpop.f32.mrb[30].mxu1  ;;  %v4303_v25 = vadd.f32 %v4302_v29, %v8226_v22  ;;  %v4375_v29 = vmul.f32 %v8249_v59, %v8249_v59  ;;  %v10125_v22 = vld [vmem:[#allocation129_spill] sm:$0xff] }
 0x571   :  { %v8292_v38 = vadd.f32 %v5224_v39, %v10118_v5  ;;  %v5225_v61 = vadd.f32 %v3876_v48, %v10119_v4  ;;  %v3878_v54 = vpop.f32.mrb[31].mxu1  ;;  %v4374_v5 = vmul.f32 %v8244_v31, %v8244_v31  ;;  %v10122_v39 = vld [vmem:[#allocation65_spill] sm:$0xff]  ;;  %v4436_v32 = vadd.f32 %v4435_v37, %v4373_v1 }
 0x572   :  { %v4304_v20 = vadd.f32 %v4303_v25, %v8244_v31  ;;  %v4376_v37 = vmul.f32 %v8259_v16, %v8259_v16 }
 0x573   :  { %v8297_v44 = vadd.f32 %v5225_v61, %v10120_v51  ;;  %v4437_v51 = vadd.f32 %v4436_v32, %v4374_v5  ;;  %v4377_v32 = vmul.f32 %v8265_v40, %v8265_v40 }
 0x575   :  { %10121 = vst [vmem:[#allocation115_spill] sm:$0xff] %v8297_v44  ;;  %v4438_v25 = vadd.f32 %v4437_v51, %v4375_v29  ;;  %v4378_v51 = vmul.f32 %v8275_v43, %v8275_v43 }
 0x576   :  { %v3881_v58 = vpop.f32.mrb[32].mxu1 }
 0x577   :  { %v5226_v7 = vadd.f32 %v3881_v58, %v10122_v39  ;;  %v3883_v48 = vpop.f32.mrb[33].mxu1  ;;  %v4305_v58 = vadd.f32 %v4304_v20, %v8249_v59  ;;  %v10127_v39 = vld [vmem:[#allocation69_spill] sm:$0xff]  ;;  %v4439_v5 = vadd.f32 %v4438_v25, %v4376_v37 }
 0x578   :  { %v3884_v4 = vpop.f32.mrb[34].mxu1 }
 0x579   :  { %v8307_v61 = vadd.f32 %v5226_v7, %v10123_v53  ;;  %v5227_v54 = vadd.f32 %v3884_v4, %v10124_v60  ;;  %v3886_v26 = vpop.f32.mrb[35].mxu1  ;;  %v4306_v7 = vadd.f32 %v4305_v58, %v8259_v16  ;;  %v10128_v60 = vld [vmem:[#allocation132_spill] sm:$0xff]  ;;  %v4440_v58 = vadd.f32 %v4439_v5, %v4377_v32 }
 0x57a   :  { %v10132_v5 = vld [vmem:[#allocation92_spill] sm:$0xff] }
 0x57b   :  { %v8313_v10 = vadd.f32 %v5227_v54, %v10125_v22  ;;  %v10129_v54 = vld [vmem:[#allocation71_spill] sm:$0xff]  ;;  %v4307_v59 = vadd.f32 %v4306_v7, %v8265_v40  ;;  %v4441_v25 = vadd.f32 %v4440_v58, %v4378_v51  ;;  %v10133_v58 = vld [vmem:[#allocation133_spill] sm:$0xff] }
 0x57d   :  { %10126 = vst [vmem:[#allocation43_spill] sm:$0xff] %v8313_v10  ;;  %v4308_v37 = vadd.f32 %v4307_v59, %v8275_v43 }
 0x57e   :  { %v3889_v1 = vpop.f32.mrb[36].mxu1 }
 0x57f   :  { %v5228_v48 = vadd.f32 %v3889_v1, %v10127_v39  ;;  %v3891_v4 = vpop.f32.mrb[37].mxu1  ;;  %v4379_v39 = vmul.f32 %v8282_v52, %v8282_v52  ;;  %v4309_v7 = vadd.f32 %v4308_v37, %v8282_v52 }
 0x580   :  { %v3892_v53 = vpop.f32.mrb[38].mxu1 }
 0x581   :  { %v8323_v22 = vadd.f32 %v5228_v48, %v10128_v60  ;;  %v5229_v20 = vadd.f32 %v3892_v53, %v10129_v54  ;;  %v3894_v26 = vpop.f32.mrb[39].mxu1  ;;  %v10130_v48 = vld [vmem:[#allocation74_spill] sm:$0xff]  ;;  %v4380_v54 = vmul.f32 %v8292_v38, %v8292_v38  ;;  %v4310_v51 = vadd.f32 %v4309_v7, %v8292_v38  ;;  %v10136_v7 = vld [vmem:[#allocation135_spill] sm:$0xff] }
 0x582   :  { %v10131_v26 = vld [vmem:[#allocation131_spill] sm:$0xff] }
 0x583   :  { %v8330_v29 = vadd.f32 %v5229_v20, %v8016_v14  ;;  %v4442_v20 = vadd.f32 %v4441_v25, %v4379_v39 }
 0x586   :  { %v3897_v1 = vpop.f32.mrb[40].mxu1 }
 0x587   :  { %v5230_v4 = vadd.f32 %v3897_v1, %v10130_v48  ;;  %v3899_v53 = vpop.f32.mrb[41].mxu1  ;;  %v4443_v1 = vadd.f32 %v4442_v20, %v4380_v54  ;;  %v4381_v48 = vmul.f32 %v8297_v44, %v8297_v44  ;;  %v10138_v54 = vld [vmem:[#allocation94_spill] sm:$0xff] }
 0x588   :  { %v3900_v60 = vpop.f32.mrb[42].mxu1  ;;  %v4311_v53 = vadd.f32 %v4310_v51, %v8297_v44  ;;  %v4383_v51 = vmul.f32 %v8313_v10, %v8313_v10 }
 0x589   :  { %v8340_v14 = vadd.f32 %v5230_v4, %v10131_v26  ;;  %v5231_v32 = vadd.f32 %v3900_v60, %v10132_v5  ;;  %v3902_v59 = vpop.f32.mrb[43].mxu1  ;;  %v4382_v4 = vmul.f32 %v8307_v61, %v8307_v61  ;;  %v10135_v26 = vld [vmem:[#allocation93_spill] sm:$0xff]  ;;  %v4444_v25 = vadd.f32 %v4443_v1, %v4381_v48 }
 0x58a   :  { %v4312_v39 = vadd.f32 %v4311_v53, %v8307_v61  ;;  %v4384_v1 = vmul.f32 %v8323_v22, %v8323_v22 }
 0x58b   :  { %v8345_v43 = vadd.f32 %v5231_v32, %v10133_v58  ;;  %v4445_v58 = vadd.f32 %v4444_v25, %v4382_v4  ;;  %v4385_v25 = vmul.f32 %v8330_v29, %v8330_v29 }
 0x58d   :  { %10134 = vst [vmem:[#allocation117_spill] sm:$0xff] %v8345_v43  ;;  %v4446_v53 = vadd.f32 %v4445_v58, %v4383_v51  ;;  %v4386_v58 = vmul.f32 %v8340_v14, %v8340_v14  ;;  %v10143_v51 = vld [vmem:[#allocation136_spill] sm:$0xff] }
 0x58e   :  { %v3905_v37 = vpop.f32.mrb[44].mxu1 }
 0x58f   :  { %v5232_v52 = vadd.f32 %v3905_v37, %v10135_v26  ;;  %v3907_v60 = vpop.f32.mrb[45].mxu1  ;;  %v4313_v37 = vadd.f32 %v4312_v39, %v8313_v10  ;;  %v10140_v26 = vld [vmem:[#allocation95_spill] sm:$0xff]  ;;  %v4447_v4 = vadd.f32 %v4446_v53, %v4384_v1 }
 0x590   :  { %v3908_v5 = vpop.f32.mrb[46].mxu1 }
 0x591   :  { %v8355_v32 = vadd.f32 %v5232_v52, %v10136_v7  ;;  %v5233_v59 = vadd.f32 %v3908_v5, %v10138_v54  ;;  %v3910_v20 = vpop.f32.mrb[47].mxu1  ;;  %v4314_v52 = vadd.f32 %v4313_v37, %v8323_v22  ;;  %v10141_v54 = vld [vmem:[#allocation134_spill] sm:$0xff] }
 0x593   :  { %10137 = vst [vmem:[#allocation45_spill] sm:$0xff] %v8355_v32  ;;  %v8361_v44 = vadd.f32 %v5233_v59, %v8029_v28  ;;  %v10142_v59 = vld [vmem:[#allocation96_spill] sm:$0xff]  ;;  %v4315_v10 = vadd.f32 %v4314_v52, %v8330_v29 }
 0x595   :  { %10139 = vst [vmem:[#allocation120_spill] sm:$0xff] %v8361_v44  ;;  %v4316_v1 = vadd.f32 %v4315_v10, %v8340_v14 }
 0x596   :  { %v3913_v48 = vpop.f32.mrb[48].mxu1 }
 0x597   :  { %v5234_v60 = vadd.f32 %v3913_v48, %v10140_v26  ;;  %v3915_v5 = vpop.f32.mrb[49].mxu1  ;;  %v4448_v48 = vadd.f32 %v4447_v4, %v4385_v25  ;;  %v4317_v52 = vadd.f32 %v4316_v1, %v8345_v43  ;;  %v10145_v4 = vld [vmem:[#allocation98_spill] sm:$0xff] }
 0x598   :  { %v3916_v7 = vpop.f32.mrb[50].mxu1  ;;  %v10144_v5 = vld [vmem:[#allocation97_spill] sm:$0xff] }
 0x599   :  { %v8371_v28 = vadd.f32 %v5234_v60, %v10141_v54  ;;  %v5235_v39 = vadd.f32 %v3916_v7, %v10142_v59  ;;  %v3918_v20 = vpop.f32.mrb[51].mxu1  ;;  %v4449_v26 = vadd.f32 %v4448_v48, %v4386_v58  ;;  %v4387_v60 = vmul.f32 %v8345_v43, %v8345_v43 }
 0x59a   :  { %v4388_v20 = vmul.f32 %v8355_v32, %v8355_v32  ;;  %v4318_v58 = vadd.f32 %v4317_v52, %v8355_v32  ;;  %v10147_v52 = vld [vmem:[#allocation137_spill] sm:$0xff] }
 0x59b   :  { %v8378_v37 = vadd.f32 %v5235_v39, %v10143_v51  ;;  %v4450_v51 = vadd.f32 %v4449_v26, %v4387_v60 }
 0x59e   :  { %v3921_v53 = vpop.f32.mrb[52].mxu1 }
 0x59f   :  { %v5236_v54 = vadd.f32 %v3921_v53, %v10144_v5  ;;  %v3923_v7 = vpop.f32.mrb[53].mxu1  ;;  %v4451_v53 = vadd.f32 %v4450_v51, %v4388_v20  ;;  %v4389_v5 = vmul.f32 %v8361_v44, %v8361_v44  ;;  %v10148_v20 = vld [vmem:[#allocation100_spill] sm:$0xff] }
 0x5a0   :  { %v3924_v59 = vpop.f32.mrb[54].mxu1  ;;  %v4319_v7 = vadd.f32 %v4318_v58, %v8361_v44  ;;  %v4391_v58 = vmul.f32 %v8378_v37, %v8378_v37  ;;  %v10149_v44 = vld [vmem:[#allocation138_spill] sm:$0xff] }
 0x5a1   :  { %v8388_v39 = vadd.f32 %v5236_v54, %v8037_v42  ;;  %v5237_v25 = vadd.f32 %v3924_v59, %v10145_v4  ;;  %v3926_v10 = vpop.f32.mrb[55].mxu1  ;;  %v4390_v42 = vmul.f32 %v8371_v28, %v8371_v28  ;;  %v10146_v54 = vld [vmem:[#allocation99_spill] sm:$0xff]  ;;  %v4452_v26 = vadd.f32 %v4451_v53, %v4389_v5 }
 0x5a2   :  { %v4320_v60 = vadd.f32 %v4319_v7, %v8371_v28 }
 0x5a3   :  { %v8393_v48 = vadd.f32 %v5237_v25, %v8045_v18  ;;  %v4453_v51 = vadd.f32 %v4452_v26, %v4390_v42  ;;  %v4392_v53 = vmul.f32 %v8388_v39, %v8388_v39 }
 0x5a5   :  { %v4454_v7 = vadd.f32 %v4453_v51, %v4391_v58  ;;  %v4393_v26 = vmul.f32 %v8393_v48, %v8393_v48 }
 0x5a6   :  { %v3929_v1 = vpop.f32.mrb[56].mxu1 }
 0x5a7   :  { %v5238_v43 = vadd.f32 %v3929_v1, %v10146_v54  ;;  %v3931_v59 = vpop.f32.mrb[57].mxu1  ;;  %v4321_v1 = vadd.f32 %v4320_v60, %v8378_v37  ;;  %v10150_v54 = vld [vmem:[#allocation101_spill] sm:$0xff]  ;;  %v4455_v42 = vadd.f32 %v4454_v7, %v4392_v53 }
 0x5a8   :  { %v3932_v4 = vpop.f32.mrb[58].mxu1 }
 0x5a9   :  { %v8403_v18 = vadd.f32 %v5238_v43, %v10147_v52  ;;  %v5239_v25 = vadd.f32 %v3932_v4, %v10148_v20  ;;  %v3934_v10 = vpop.f32.mrb[59].mxu1  ;;  %v4322_v43 = vadd.f32 %v4321_v1, %v8388_v39  ;;  %v10151_v20 = vld [vmem:[#allocation102_spill] sm:$0xff]  ;;  %v4456_v1 = vadd.f32 %v4455_v42, %v4393_v26  ;;  %v10153_v42 = vld [vmem:[#allocation104_spill] sm:$0xff] }
 0x5ab   :  { %v8409_v32 = vadd.f32 %v5239_v25, %v10149_v44  ;;  %v4323_v10 = vadd.f32 %v4322_v43, %v8393_v48  ;;  %v4394_v51 = vmul.f32 %v8403_v18, %v8403_v18 }
 0x5ad   :  { %v4324_v53 = vadd.f32 %v4323_v10, %v8403_v18  ;;  %v4457_v7 = vadd.f32 %v4456_v1, %v4394_v51 }
 0x5ae   :  { %v3937_v5 = vpop.f32.mrb[60].mxu1 }
 0x5af   :  { %v5240_v59 = vadd.f32 %v3937_v5, %v10150_v54  ;;  %v3939_v4 = vpop.f32.mrb[61].mxu1  ;;  %v10152_v54 = vld [vmem:[#allocation103_spill] sm:$0xff]  ;;  %v4325_v43 = vadd.f32 %v4324_v53, %v8409_v32 }
 0x5b0   :  { %v3940_v52 = vpop.f32.mrb[62].mxu1 }
 0x5b1   :  { %v8419_v44 = vadd.f32 %v5240_v59, %v8053_v35  ;;  %v5241_v60 = vadd.f32 %v3940_v52, %v10151_v20  ;;  %v3942_v25 = vpop.f32.mrb[63].mxu1  ;;  %v4395_v35 = vmul.f32 %v8409_v32, %v8409_v32 }
 0x5b3   :  { %v8426_v58 = vadd.f32 %v5241_v60, %v8061_v6  ;;  %v4396_v20 = vmul.f32 %v8419_v44, %v8419_v44  ;;  %v4458_v25 = vadd.f32 %v4457_v7, %v4395_v35  ;;  %v4326_v10 = vadd.f32 %v4325_v43, %v8419_v44  ;;  %v10156_v43 = vld [vmem:[#allocation106_spill] sm:$0xff] }
 0x5b5   :  { %v4459_v1 = vadd.f32 %v4458_v25, %v4396_v20 }
 0x5b6   :  { %v3945_v5 = vpop.f32.mrb[64].mxu1 }
 0x5b7   :  { %v5242_v59 = vadd.f32 %v3945_v5, %v10152_v54  ;;  %v3947_v4 = vpop.f32.mrb[65].mxu1  ;;  %v4397_v5 = vmul.f32 %v8426_v58, %v8426_v58  ;;  %v4327_v54 = vadd.f32 %v4326_v10, %v8426_v58 }
 0x5b8   :  { %v3948_v52 = vpop.f32.mrb[66].mxu1 }
 0x5b9   :  { %v8436_v6 = vadd.f32 %v5242_v59, %v8050_v55  ;;  %v5243_v26 = vadd.f32 %v3948_v52, %v10153_v42  ;;  %v3950_v60 = vpop.f32.mrb[67].mxu1  ;;  %v10155_v59 = vld [vmem:[#allocation105_spill] sm:$0xff]  ;;  %v4460_v7 = vadd.f32 %v4459_v1, %v4397_v5 }
 0x5bb   :  { %v8441_v51 = vadd.f32 %v5243_v26, %v8055_v49  ;;  %v4398_v55 = vmul.f32 %v8436_v6, %v8436_v6  ;;  %v4328_v35 = vadd.f32 %v4327_v54, %v8436_v6 }
 0x5bd   :  { %10154 = vst [vmem:[#allocation47_spill] sm:$0xff] %v8441_v51  ;;  %v4461_v60 = vadd.f32 %v4460_v7, %v4398_v55  ;;  %v4399_v25 = vmul.f32 %v8441_v51, %v8441_v51 }
 0x5be   :  { %v3953_v53 = vpop.f32.mrb[68].mxu1 }
 0x5bf   :  { %v5244_v4 = vadd.f32 %v3953_v53, %v10155_v59  ;;  %v3955_v52 = vpop.f32.mrb[69].mxu1  ;;  %v4329_v53 = vadd.f32 %v4328_v35, %v8441_v51  ;;  %v4462_v54 = vadd.f32 %v4461_v60, %v4399_v25  ;;  %v10158_v59 = vld [vmem:[#allocation107_spill] sm:$0xff]  ;;  %v10162_v25 = vld [vmem:[#allocation140_spill] sm:$0xff] }
 0x5c0   :  { %v3956_v42 = vpop.f32.mrb[70].mxu1 }
 0x5c1   :  { %v8451_v49 = vadd.f32 %v5244_v4, %v8070_v17  ;;  %v5245_v20 = vadd.f32 %v3956_v42, %v10156_v43  ;;  %v3958_v26 = vpop.f32.mrb[71].mxu1  ;;  %v10159_v43 = vld [vmem:[#allocation139_spill] sm:$0xff] }
 0x5c3   :  { %v8457_v10 = vadd.f32 %v5245_v20, %v8078_v62  ;;  %v4400_v1 = vmul.f32 %v8451_v49, %v8451_v49  ;;  %v4330_v17 = vadd.f32 %v4329_v53, %v8451_v49  ;;  %v10161_v20 = vld [vmem:[#allocation108_spill] sm:$0xff] }
 0x5c5   :  { %10157 = vst [vmem:[#allocation122_spill] sm:$0xff] %v8457_v10  ;;  %v4463_v55 = vadd.f32 %v4462_v54, %v4400_v1  ;;  %v4401_v7 = vmul.f32 %v8457_v10, %v8457_v10  ;;  %v4331_v51 = vadd.f32 %v4330_v17, %v8457_v10 }
 0x5c6   :  { %v3961_v5 = vpop.f32.mrb[72].mxu1 }
 0x5c7   :  { %v5246_v4 = vadd.f32 %v3961_v5, %v10158_v59  ;;  %v3963_v52 = vpop.f32.mrb[73].mxu1  ;;  %v4464_v5 = vadd.f32 %v4463_v55, %v4401_v7 }
 0x5c8   :  { %v3964_v42 = vpop.f32.mrb[74].mxu1  ;;  %v10164_v52 = vld [vmem:[#allocation109_spill] sm:$0xff] }
 0x5c9   :  { %v8467_v62 = vadd.f32 %v5246_v4, %v10159_v43  ;;  %v5247_v35 = vadd.f32 %v3964_v42, %v10161_v20  ;;  %v3966_v26 = vpop.f32.mrb[75].mxu1 }
 0x5ca   :  { %v10165_v26 = vld [vmem:[#allocation110_spill] sm:$0xff] }
 0x5cb   :  { %10160 = vst [vmem:[#allocation49_spill] sm:$0xff] %v8467_v62  ;;  %v4402_v60 = vmul.f32 %v8467_v62, %v8467_v62  ;;  %v8474_v53 = vadd.f32 %v5247_v35, %v10162_v25  ;;  %v4332_v1 = vadd.f32 %v4331_v51, %v8467_v62 }
 0x5cd   :  { %10163 = vst [vmem:[#allocation119_spill] sm:$0xff] %v8474_v53  ;;  %v4465_v59 = vadd.f32 %v4464_v5, %v4402_v60  ;;  %v4403_v4 = vmul.f32 %v8474_v53, %v8474_v53  ;;  %v4333_v35 = vadd.f32 %v4332_v1, %v8474_v53 }
 0x5ce   :  { %v3969_v54 = vpop.f32.mrb[76].mxu1 }
 0x5cf   :  { %v5248_v43 = vadd.f32 %v3969_v54, %v10164_v52  ;;  %v3971_v42 = vpop.f32.mrb[77].mxu1  ;;  %v4466_v7 = vadd.f32 %v4465_v59, %v4403_v4 }
 0x5d0   :  { %v3972_v20 = vpop.f32.mrb[78].mxu1  ;;  %v10166_v42 = vld [vmem:[#allocation111_spill] sm:$0xff] }
 0x5d1   :  { %v5249_v17 = vadd.f32 %v3972_v20, %v10165_v26  ;;  %v8482_v10 = vadd.f32 %v5248_v43, %v8231_v47  ;;  %v3974_v25 = vpop.f32.mrb[79].mxu1 }
 0x5d2   :  { %v10167_v25 = vld [vmem:[#allocation112_spill] sm:$0xff] }
 0x5d3   :  { %v4334_v55 = vadd.f32 %v4333_v35, %v8482_v10  ;;  %v4404_v51 = vmul.f32 %v8482_v10, %v8482_v10  ;;  %v8489_v60 = vadd.f32 %v5249_v17, %v8238_v45 }
 0x5d5   :  { %v4467_v5 = vadd.f32 %v4466_v7, %v4404_v51  ;;  %v4335_v54 = vadd.f32 %v4334_v55, %v8489_v60  ;;  %v4405_v52 = vmul.f32 %v8489_v60, %v8489_v60 }
 0x5d6   :  { %v3977_v47 = vpop.f32.mrb[80].mxu1 }
 0x5d7   :  { %v4468_v43 = vadd.f32 %v4467_v5, %v4405_v52  ;;  %v5250_v1 = vadd.f32 %v3977_v47, %v10166_v42  ;;  %v3979_v20 = vpop.f32.mrb[81].mxu1 }
 0x5d8   :  { %v3980_v26 = vpop.f32.mrb[82].mxu1 }
 0x5d9   :  { %v8496_v35 = vadd.f32 %v5250_v1, %v8229_v19  ;;  %v5251_v59 = vadd.f32 %v3980_v26, %v10167_v25  ;;  %v3982_v4 = vpop.f32.mrb[83].mxu1 }
 0x5db   :  { %v4336_v45 = vadd.f32 %v4335_v54, %v8496_v35  ;;  %v4406_v17 = vmul.f32 %v8496_v35, %v8496_v35  ;;  %v8503_v55 = vadd.f32 %v5251_v59, %v8236_v56 }
 0x5dd   :  { %v4469_v51 = vadd.f32 %v4468_v43, %v4406_v17  ;;  %v4337_v7 = vadd.f32 %v4336_v45, %v8503_v55  ;;  %v4407_v5 = vmul.f32 %v8503_v55, %v8503_v55  ;;  %v8515_v17 = vld [vmem:[%s9762_s7] ss:$0 sm:$0xff] }
 0x5df   :  { %v4338_v52 = vrot.slane %v4337_v7, 4  ;;  %v4470_v19 = vadd.f32 %v4469_v51, %v4407_v5  ;;  %v10168_v5 = vld [vmem:[#allocation6_spill] sm:$0xff] }
 0x5e1   :  { %v4339_v47 = vadd.f32 %v4338_v52, %v4337_v7  ;;  %v4471_v42 = vrot.slane %v4470_v19, 4  ;;  %v8519_v52 = vadd.f32 %v8515_v17, %v10168_v5 }
 0x5e3   :  { %v4340_v1 = vrot.slane %v4339_v47, 2  ;;  %v4472_v20 = vadd.f32 %v4471_v42, %v4470_v19  ;;  %10169 = vst [vmem:[#allocation51_spill] sm:$0xff] %v8519_v52  ;;  %v10170_v19 = vld [vmem:[#allocation7_spill] sm:$0xff]  ;;  %v10174_v42 = vld [vmem:[#allocation9_spill] sm:$0xff]  ;;  %v10310_v52 = vld [vmem:[#allocation118_spill] sm:$0xff] }
 0x5e5   :  { %v4341_v26 = vadd.f32 %v4340_v1, %v4339_v47  ;;  %v4473_v54 = vrot.slane %v4472_v20, 2  ;;  %v8531_v1 = vadd.f32 %v8515_v17, %v10174_v42  ;;  %v10188_v42 = vld [vmem:[#allocation16_spill] sm:$0xff] }
 0x5e7   :  { %v4342_v25 = vrot.slane %v4341_v26, 1  ;;  %v4474_v4 = vadd.f32 %v4473_v54, %v4472_v20  ;;  %10175 = vst [vmem:[#allocation124_spill] sm:$0xff] %v8531_v1  ;;  %v10176_v20 = vld [vmem:[#allocation10_spill] sm:$0xff]  ;;  %v10178_v54 = vld [vmem:[#allocation11_spill] sm:$0xff]  ;;  %v10305_v1 = vld [vmem:[#allocation84_spill] sm:$0xff] }
 0x5e9   :  { %v4343_v53 = vadd.f32 %v4342_v25, %v4341_v26  ;;  %v4475_v62 = vrot.slane %v4474_v4, 1  ;;  %v8535_v26 = vadd.f32 %v8515_v17, %v10176_v20  ;;  %v8539_v25 = vadd.f32 %v8515_v17, %v10178_v54  ;;  %v10190_v54 = vld [vmem:[#allocation17_spill] sm:$0xff] }
 0x5ea   :  { %v8559_v20 = vadd.f32 %v8515_v17, %v10188_v42 }
 0x5eb   :  { %v4476_v56 = vadd.f32 %v4475_v62, %v4474_v4  ;;  %v8508_v59 = vmul.f32 0.001953125, %v4343_v53  ;;  %v8523_v62 = vadd.f32 %v8515_v17, %v10170_v19  ;;  %v10172_v53 = vld [vmem:[#allocation8_spill] sm:$0xff]  ;;  %10177 = vst [vmem:[#allocation55_spill] sm:$0xff] %v8535_v26  ;;  %10179 = vst [vmem:[#allocation126_spill] sm:$0xff] %v8539_v25  ;;  %v10186_v19 = vld [vmem:[#allocation15_spill] sm:$0xff] }
 0x5ec   :  { %v8527_v47 = vadd.f32 %v8515_v17, %v10172_v53  ;;  %v10180_v4 = vld [vmem:[#allocation12_spill] sm:$0xff]  ;;  %v8555_v53 = vadd.f32 %v8515_v17, %v10186_v19  ;;  %10189 = vst [vmem:[#allocation61_spill] sm:$0xff] %v8559_v20  ;;  %v10200_v20 = vld [vmem:[#allocation22_spill] sm:$0xff] }
 0x5ed   :  { %v4478_v43 = vmul.f32 0.001953125, %v4476_v56  ;;  %v4479_v45 = vmul.f32 %v8508_v59, %v8508_v59  ;;  %10171 = vst [vmem:[#allocation121_spill] sm:$0xff] %v8523_v62  ;;  %v8543_v56 = vadd.f32 %v8515_v17, %v10180_v4  ;;  %v8563_v4 = vadd.f32 %v8515_v17, %v10190_v54  ;;  %v10256_v25 = vld [vmem:[#allocation58_spill] sm:$0xff] }
 0x5ee   :  { %10173 = vst [vmem:[#allocation53_spill] sm:$0xff] %v8527_v47  ;;  %10187 = vst [vmem:[#allocation125_spill] sm:$0xff] %v8555_v53  ;;  %v10198_v53 = vld [vmem:[#allocation21_spill] sm:$0xff]  ;;  %v8583_v54 = vadd.f32 %v8515_v17, %v10200_v20  ;;  %v10268_v26 = vld [vmem:[#allocation70_spill] sm:$0xff] }
 0x5ef   :  { %v4480_v51 = vsub.f32 %v4478_v43, %v4479_v45  ;;  %10181 = vst [vmem:[#allocation57_spill] sm:$0xff] %v8543_v56  ;;  %v10182_v43 = vld [vmem:[#allocation13_spill] sm:$0xff]  ;;  %10191 = vst [vmem:[#allocation128_spill] sm:$0xff] %v8563_v4  ;;  %v8579_v42 = vadd.f32 %v8515_v17, %v10198_v53  ;;  %v10202_v4 = vld [vmem:[#allocation23_spill] sm:$0xff] }
 0x5f0   :  { %v8547_v45 = vadd.f32 %v8515_v17, %v10182_v43  ;;  %10201 = vst [vmem:[#allocation67_spill] sm:$0xff] %v8583_v54  ;;  %v10212_v54 = vld [vmem:[#allocation28_spill] sm:$0xff]  ;;  %v10307_v62 = vld [vmem:[#allocation86_spill] sm:$0xff] }
 0x5f1   :  { %v4481_v7 = vadd.f32 1e-05, %v4480_v51  ;;  %v10184_v51 = vld [vmem:[#allocation14_spill] sm:$0xff]  ;;  %10199 = vst [vmem:[#allocation127_spill] sm:$0xff] %v8579_v42  ;;  %v10210_v42 = vld [vmem:[#allocation27_spill] sm:$0xff]  ;;  %v10306_v47 = vld [vmem:[#allocation116_spill] sm:$0xff] }
 0x5f2   :  { %10183 = vst [vmem:[#allocation123_spill] sm:$0xff] %v8547_v45  ;;  %v8551_v5 = vadd.f32 %v8515_v17, %v10184_v51  ;;  %v10194_v45 = vld [vmem:[#allocation19_spill] sm:$0xff]  ;;  %v8603_v20 = vadd.f32 %v8515_v17, %v10210_v42 }
 0x5f3   :  { %5625 = vrsqrt.f32 %v4481_v7  ;;  %v10192_v7 = vld [vmem:[#allocation18_spill] sm:$0xff]  ;;  %v8571_v51 = vadd.f32 %v8515_v17, %v10194_v45 }
 0x5f4   :  { %10185 = vst [vmem:[#allocation59_spill] sm:$0xff] %v8551_v5  ;;  %v8567_v43 = vadd.f32 %v8515_v17, %v10192_v7  ;;  %v10196_v5 = vld [vmem:[#allocation20_spill] sm:$0xff]  ;;  %v8587_v7 = vadd.f32 %v8515_v17, %v10202_v4  ;;  %10211 = vst [vmem:[#allocation74_spill] sm:$0xff] %v8603_v20  ;;  %v8607_v4 = vadd.f32 %v8515_v17, %v10212_v54  ;;  %v10222_v20 = vld [vmem:[#allocation33_spill] sm:$0xff] }
 0x5f5   :  { %10195 = vst [vmem:[#allocation130_spill] sm:$0xff] %v8571_v51  ;;  %v8575_v19 = vadd.f32 %v8515_v17, %v10196_v5  ;;  %v10206_v51 = vld [vmem:[#allocation25_spill] sm:$0xff]  ;;  %v8627_v54 = vadd.f32 %v8515_v17, %v10222_v20 }
 0x5f6   :  { %10193 = vst [vmem:[#allocation63_spill] sm:$0xff] %v8567_v43  ;;  %10203 = vst [vmem:[#allocation129_spill] sm:$0xff] %v8587_v7  ;;  %v10204_v43 = vld [vmem:[#allocation24_spill] sm:$0xff]  ;;  %v8595_v5 = vadd.f32 %v8515_v17, %v10206_v51  ;;  %v10214_v7 = vld [vmem:[#allocation29_spill] sm:$0xff] }
 0x5f7   :  { %10197 = vst [vmem:[#allocation65_spill] sm:$0xff] %v8575_v19  ;;  %v8591_v45 = vadd.f32 %v8515_v17, %v10204_v43  ;;  %v10208_v19 = vld [vmem:[#allocation26_spill] sm:$0xff]  ;;  %10213 = vst [vmem:[#allocation131_spill] sm:$0xff] %v8607_v4  ;;  %v8611_v43 = vadd.f32 %v8515_v17, %v10214_v7 }
 0x5f8   :  { %10207 = vst [vmem:[#allocation132_spill] sm:$0xff] %v8595_v5  ;;  %v8599_v53 = vadd.f32 %v8515_v17, %v10208_v19  ;;  %v10218_v5 = vld [vmem:[#allocation31_spill] sm:$0xff]  ;;  %10223 = vst [vmem:[#allocation94_spill] sm:$0xff] %v8627_v54  ;;  %v10224_v4 = vld [vmem:[#allocation34_spill] sm:$0xff] }
 0x5f9   :  { %10205 = vst [vmem:[#allocation69_spill] sm:$0xff] %v8591_v45  ;;  %10215 = vst [vmem:[#allocation92_spill] sm:$0xff] %v8611_v43  ;;  %v10216_v45 = vld [vmem:[#allocation30_spill] sm:$0xff]  ;;  %v8619_v19 = vadd.f32 %v8515_v17, %v10218_v5  ;;  %v8631_v7 = vadd.f32 %v8515_v17, %v10224_v4  ;;  %v10226_v43 = vld [vmem:[#allocation35_spill] sm:$0xff] }
 0x5fa   :  { %10209 = vst [vmem:[#allocation71_spill] sm:$0xff] %v8599_v53  ;;  %v8615_v51 = vadd.f32 %v8515_v17, %v10216_v45  ;;  %v10220_v53 = vld [vmem:[#allocation32_spill] sm:$0xff]  ;;  %v8635_v45 = vadd.f32 %v8515_v17, %v10226_v43  ;;  %v10234_v54 = vld [vmem:[#allocation39_spill] sm:$0xff] }
 0x5fb   :  { %10219 = vst [vmem:[#allocation93_spill] sm:$0xff] %v8619_v19  ;;  %v8623_v42 = vadd.f32 %v8515_v17, %v10220_v53  ;;  %10225 = vst [vmem:[#allocation95_spill] sm:$0xff] %v8631_v7  ;;  %v10230_v19 = vld [vmem:[#allocation37_spill] sm:$0xff]  ;;  %v8651_v4 = vadd.f32 %v8515_v17, %v10234_v54  ;;  %v10236_v7 = vld [vmem:[#allocation40_spill] sm:$0xff] }
 0x5fc   :  { %10217 = vst [vmem:[#allocation133_spill] sm:$0xff] %v8615_v51  ;;  %10227 = vst [vmem:[#allocation134_spill] sm:$0xff] %v8635_v45  ;;  %v10228_v51 = vld [vmem:[#allocation36_spill] sm:$0xff]  ;;  %v8643_v53 = vadd.f32 %v8515_v17, %v10230_v19  ;;  %v8655_v43 = vadd.f32 %v8515_v17, %v10236_v7  ;;  %v10238_v45 = vld [vmem:[#allocation41_spill] sm:$0xff] }
 0x5fd   :  { %10221 = vst [vmem:[#allocation135_spill] sm:$0xff] %v8623_v42  ;;  %v8639_v5 = vadd.f32 %v8515_v17, %v10228_v51  ;;  %v10232_v42 = vld [vmem:[#allocation38_spill] sm:$0xff]  ;;  %10235 = vst [vmem:[#allocation98_spill] sm:$0xff] %v8651_v4  ;;  %v8659_v51 = vadd.f32 %v8515_v17, %v10238_v45  ;;  %v10246_v45 = vld [vmem:[#allocation48_spill] sm:$0xff] }
 0x5fe   :  { %10231 = vst [vmem:[#allocation136_spill] sm:$0xff] %v8643_v53  ;;  %v8647_v20 = vadd.f32 %v8515_v17, %v10232_v42  ;;  %10237 = vst [vmem:[#allocation99_spill] sm:$0xff] %v8655_v43  ;;  %v10242_v53 = vld [vmem:[#allocation44_spill] sm:$0xff]  ;;  %v4273_v7 = vld [vmem:[%s9760_s5] sm:$0x1]  ;;  %v5626_v43 = vpop.eup %5625 }
 0x5ff   :  { %10229 = vst [vmem:[#allocation96_spill] sm:$0xff] %v8639_v5  ;;  %10239 = vst [vmem:[#allocation137_spill] sm:$0xff] %v8659_v51  ;;  %v10240_v5 = vld [vmem:[#allocation42_spill] sm:$0xff]  ;;  %v8667_v42 = vadd.f32 %v8515_v17, %v10242_v53  ;;  %v10254_v4 = vld [vmem:[#allocation56_spill] sm:$0xff] }
 0x600   :  { %10233 = vst [vmem:[#allocation97_spill] sm:$0xff] %v8647_v20  ;;  %v8663_v19 = vadd.f32 %v8515_v17, %v10240_v5  ;;  %v10244_v20 = vld [vmem:[#allocation46_spill] sm:$0xff]  ;;  %v8682_v5 = vadd.f32 %v8515_v17, %v10246_v45  ;;  %v8698_v56 = vadd.f32 %v8515_v17, %v10254_v4  ;;  %v8702_v45 = vadd.f32 %v8515_v17, %v10256_v25 }
 0x601   :  { %10243 = vst [vmem:[#allocation138_spill] sm:$0xff] %v8667_v42  ;;  %v8671_v54 = vadd.f32 %v8515_v17, %v10244_v20  ;;  %v10250_v42 = vld [vmem:[#allocation52_spill] sm:$0xff] }
 0x602   :  { %10241 = vst [vmem:[#allocation100_spill] sm:$0xff] %v8663_v19  ;;  %10247 = vst [vmem:[#allocation102_spill] sm:$0xff] %v8682_v5  ;;  %v10248_v19 = vld [vmem:[#allocation50_spill] sm:$0xff]  ;;  %v8690_v20 = vadd.f32 %v8515_v17, %v10250_v42  ;;  %v10258_v5 = vld [vmem:[#allocation60_spill] sm:$0xff] }
 0x603   :  { %10245 = vst [vmem:[#allocation101_spill] sm:$0xff] %v8671_v54  ;;  %v8686_v53 = vadd.f32 %v8515_v17, %v10248_v19  ;;  %v10252_v54 = vld [vmem:[#allocation54_spill] sm:$0xff]  ;;  %10255 = vst [vmem:[#allocation106_spill] sm:$0xff] %v8698_v56  ;;  %v8706_v19 = vadd.f32 %v8515_v17, %v10258_v5  ;;  %v10266_v56 = vld [vmem:[#allocation68_spill] sm:$0xff]  ;;  %v8726_v5 = vadd.f32 %v8515_v17, %v10268_v26 }
 0x604   :  { %10251 = vst [vmem:[#allocation104_spill] sm:$0xff] %v8690_v20  ;;  %v8694_v51 = vadd.f32 %v8515_v17, %v10252_v54  ;;  %10257 = vst [vmem:[#allocation107_spill] sm:$0xff] %v8702_v45  ;;  %v10262_v20 = vld [vmem:[#allocation64_spill] sm:$0xff]  ;;  %v8722_v25 = vadd.f32 %v8515_v17, %v10266_v56  ;;  %v4483_v45 = vmul.f32 %v5626_v43, %v4273_v7  ;;  %v10278_v43 = vld [vmem:[#allocation78_spill] sm:$0xff] }
 0x605   :  { %10249 = vst [vmem:[#allocation103_spill] sm:$0xff] %v8686_v53  ;;  %10259 = vst [vmem:[#allocation139_spill] sm:$0xff] %v8706_v19  ;;  %v10260_v53 = vld [vmem:[#allocation62_spill] sm:$0xff]  ;;  %v8714_v54 = vadd.f32 %v8515_v17, %v10262_v20  ;;  %v10270_v19 = vld [vmem:[#allocation72_spill] sm:$0xff]  ;;  %v8746_v26 = vadd.f32 %v8515_v17, %v10278_v43 }
 0x606   :  { %10253 = vst [vmem:[#allocation105_spill] sm:$0xff] %v8694_v51  ;;  %v8710_v42 = vadd.f32 %v8515_v17, %v10260_v53  ;;  %v10264_v51 = vld [vmem:[#allocation66_spill] sm:$0xff]  ;;  %10267 = vst [vmem:[#allocation110_spill] sm:$0xff] %v8722_v25  ;;  %v8730_v53 = vadd.f32 %v8515_v17, %v10270_v19  ;;  %v8754_v19 = vmul.f32 %v4483_v45, %v8508_v59  ;;  %v10285_v43 = vld [vmem:[#allocation81_spill] sm:$0xff] }
 0x607   :  { %10263 = vst [vmem:[#allocation140_spill] sm:$0xff] %v8714_v54  ;;  %v8718_v4 = vadd.f32 %v8515_v17, %v10264_v51  ;;  %10269 = vst [vmem:[#allocation111_spill] sm:$0xff] %v8726_v5  ;;  %v10274_v54 = vld [vmem:[#allocation75_spill] sm:$0xff]  ;;  %v8751_v7 = vld [vmem:[%s9761_s6] sm:$0x1] }
 0x608   :  { %10261 = vst [vmem:[#allocation108_spill] sm:$0xff] %v8710_v42  ;;  %10271 = vst [vmem:[#allocation112_spill] sm:$0xff] %v8730_v53  ;;  %v10272_v42 = vld [vmem:[#allocation73_spill] sm:$0xff]  ;;  %v8738_v51 = vadd.f32 %v8515_v17, %v10274_v54  ;;  %v10287_v53 = vld [vmem:[#allocation83_spill] sm:$0xff] }
 0x609   :  { %10265 = vst [vmem:[#allocation109_spill] sm:$0xff] %v8718_v4  ;;  %v8734_v20 = vadd.f32 %v8515_v17, %v10272_v42  ;;  %v10276_v4 = vld [vmem:[#allocation76_spill] sm:$0xff]  ;;  %10279 = vst [vmem:[#allocation9_spill] sm:$0xff] %v8746_v26  ;;  %v10280_v42 = vld [vmem:[#allocation91_spill] sm:$0xff]  ;;  %v8769_v26 = vadd.f32 %v8515_v17, %v10285_v43  ;;  %v8773_v5 = vadd.f32 %v8515_v17, %v10287_v53 }
 0x60a   :  { %10275 = vst [vmem:[#allocation7_spill] sm:$0xff] %v8738_v51  ;;  %v8742_v56 = vadd.f32 %v8515_v17, %v10276_v4  ;;  %v8757_v54 = vrot.slane %v4483_v45, %v10280_v42  ;;  %v10281_v51 = vld [vmem:[#allocation79_spill] sm:$0xff]  ;;  %v10289_v59 = vld [vmem:[#allocation85_spill] sm:$0xff] }
 0x60b   :  { %10273 = vst [vmem:[#allocation6_spill] sm:$0xff] %v8734_v20  ;;  %v8761_v4 = vadd.f32 %v8515_v17, %v10281_v51  ;;  %10286 = vst [vmem:[#allocation12_spill] sm:$0xff] %v8769_v26  ;;  %v8777_v45 = vadd.f32 %v8515_v17, %v10289_v59  ;;  %v10291_v25 = vld [vmem:[#allocation87_spill] sm:$0xff]  ;;  %v8798_v59 = vstv %s8676_s17  ;;  %v10299_v53 = vld [vmem:[#allocation141_spill] sm:$0xff] }
 0x60c   :  { %10277 = vst [vmem:[#allocation8_spill] sm:$0xff] %v8742_v56  ;;  %v10283_v56 = vld [vmem:[#allocation80_spill] sm:$0xff]  ;;  %10288 = vst [vmem:[#allocation13_spill] sm:$0xff] %v8773_v5  ;;  %v8781_v51 = vadd.f32 %v8515_v17, %v10291_v25  ;;  %v8795_v5 = vmul.f32 %v8757_v54, %v8026_v3  ;;  %v8805_v25 = vmul.f32 %v8757_v54, %v8032_v24  ;;  %v10303_v26 = vld [vmem:[#allocation82_spill] sm:$0xff] }
 0x60d   :  { %10282 = vst [vmem:[#allocation10_spill] sm:$0xff] %v8761_v4  ;;  %v8765_v20 = vadd.f32 %v8515_v17, %v10283_v56  ;;  %10290 = vst [vmem:[#allocation14_spill] sm:$0xff] %v8777_v45  ;;  %v10293_v4 = vld [vmem:[#allocation89_spill] sm:$0xff]  ;;  %v8801_v45 = vstv %s8678_s8  ;;  %v8817_v3 = vmul.f32 %v8757_v54, %v8058_v27  ;;  %v8825_v24 = vmul.f32 %v8757_v54, %v8075_v12 }
 0x60e   :  { %10292 = vst [vmem:[#allocation15_spill] sm:$0xff] %v8781_v51  ;;  %v8785_v56 = vadd.f32 %v8515_v17, %v10293_v4  ;;  %10297 = vst [vmem:[#allocation18_spill] sm:$0xff] %v8798_v59  ;;  %v8809_v4 = vmul.f32 %v8757_v54, %v8042_v15  ;;  %v8829_v15 = vmul.f32 %v8757_v54, %v8081_v63  ;;  %v10302_v51 = vld [vmem:[#allocation113_spill] sm:$0xff]  ;;  %v10311_v59 = vld [vmem:[#allocation88_spill] sm:$0xff] }
 0x60f   :  { %10284 = vst [vmem:[#allocation11_spill] sm:$0xff] %v8765_v20  ;;  %v10295_v20 = vld [vmem:[#allocation90_spill] sm:$0xff]  ;;  %10298 = vst [vmem:[#allocation19_spill] sm:$0xff] %v8801_v45  ;;  %v8837_v27 = vmul.f32 %v8757_v54, %v8089_v36  ;;  %v8845_v12 = vmul.f32 %v8757_v54, %v8098_v13  ;;  %v8849_v63 = vmul.f32 %v8757_v54, %v8102_v2 }
 0x610   :  { %10294 = vst [vmem:[#allocation16_spill] sm:$0xff] %v8785_v56  ;;  %v8789_v43 = vadd.f32 %v8515_v17, %v10295_v20  ;;  %v8813_v17 = vmul.f32 %v8757_v54, %v8048_v8  ;;  %v8821_v20 = vmul.f32 %v8757_v54, %v8064_v50  ;;  %v8833_v8 = vmul.f32 %v8757_v54, %v8085_v57  ;;  %v10301_v56 = vld [vmem:[#allocation77_spill] sm:$0xff]  ;;  %v10304_v45 = vld [vmem:[#allocation114_spill] sm:$0xff] }
 0x611   :  { %v8841_v50 = vmul.f32 %v8757_v54, %v8094_v30  ;;  %v8853_v57 = vmul.f32 %v8757_v54, %v8106_v21  ;;  %v8857_v36 = vmul.f32 %v8757_v54, %v8110_v33  ;;  %v8861_v30 = vmul.f32 %v8757_v54, %v8114_v41 }
 0x612   :  { %10296 = vst [vmem:[#allocation17_spill] sm:$0xff] %v8789_v43  ;;  %v8865_v13 = vmul.f32 %v8757_v54, %v8120_v11  ;;  %v8869_v2 = vmul.f32 %v8757_v54, %v8130_v23  ;;  %v8873_v21 = vmul.f32 %v8757_v54, %v8140_v9  ;;  %v8877_v33 = vmul.f32 %v8757_v54, %v8145_v34  ;;  %v10300_v43 = vld [vmem:[#allocation142_spill] sm:$0xff] }
 0x613   :  { %v8881_v41 = vmul.f32 %v8757_v54, %v10299_v53  ;;  %v8885_v11 = vmul.f32 %v8757_v54, %v10300_v43  ;;  %v8889_v23 = vmul.f32 %v8757_v54, %v8171_v0  ;;  %v8893_v9 = vmul.f32 %v8757_v54, %v10301_v56 }
 0x614   :  { %v8897_v34 = vmul.f32 %v8757_v54, %v8188_v46  ;;  %v8901_v53 = vmul.f32 %v8757_v54, %v10302_v51  ;;  %v8905_v43 = vmul.f32 %v8757_v54, %v10303_v26  ;;  %v8909_v0 = vmul.f32 %v8757_v54, %v10304_v45 }
 0x615   :  { %v8913_v56 = vmul.f32 %v8757_v54, %v10305_v1  ;;  %v8917_v46 = vmul.f32 %v8757_v54, %v10306_v47  ;;  %v8921_v51 = vmul.f32 %v8757_v54, %v8244_v31  ;;  %v8925_v26 = vmul.f32 %v8757_v54, %v10307_v62 }
 0x616   :  { %v8929_v45 = vmul.f32 %v8757_v54, %v8259_v16  ;;  %v8933_v1 = vmul.f32 %v8757_v54, %v8265_v40  ;;  %v8937_v47 = vmul.f32 %v8757_v54, %v10310_v52  ;;  %v8941_v31 = vmul.f32 %v8757_v54, %v10311_v59 }
 0x617   :  { %10308 = vst [vmem:[#allocation20_spill] sm:$0xff] %v8925_v26  ;;  %v8945_v62 = vmul.f32 %v8757_v54, %v8292_v38  ;;  %v10312_v26 = vld [vmem:[#allocation115_spill] sm:$0xff]  ;;  %v8953_v40 = vmul.f32 %v8757_v54, %v8307_v61  ;;  %v8961_v59 = vmul.f32 %v8757_v54, %v8323_v22  ;;  %v8965_v38 = vmul.f32 %v8757_v54, %v8330_v29 }
 0x618   :  { %10309 = vst [vmem:[#allocation21_spill] sm:$0xff] %v8933_v1  ;;  %v8949_v16 = vmul.f32 %v8757_v54, %v10312_v26  ;;  %v10315_v1 = vld [vmem:[#allocation43_spill] sm:$0xff]  ;;  %v8969_v26 = vmul.f32 %v8757_v54, %v8340_v14  ;;  %v8985_v29 = vmul.f32 %v8757_v54, %v8371_v28  ;;  %v8989_v14 = vmul.f32 %v8757_v54, %v8378_v37 }
 0x619   :  { %10314 = vst [vmem:[#allocation23_spill] sm:$0xff] %v8953_v40  ;;  %v8957_v52 = vmul.f32 %v8757_v54, %v10315_v1  ;;  %v10318_v40 = vld [vmem:[#allocation45_spill] sm:$0xff]  ;;  %v9005_v28 = vmul.f32 %v8757_v54, %v8409_v32  ;;  %v9009_v37 = vmul.f32 %v8757_v54, %v8419_v44  ;;  %v9025_v32 = vmul.f32 %v8757_v54, %v8496_v35 }
 0x61a   :  { %10313 = vst [vmem:[#allocation22_spill] sm:$0xff] %v8949_v16  ;;  %v10317_v16 = vld [vmem:[#allocation117_spill] sm:$0xff]  ;;  %v8977_v1 = vmul.f32 %v8757_v54, %v10318_v40  ;;  %v8997_v40 = vmul.f32 %v8757_v54, %v8393_v48  ;;  %v9017_v48 = vmul.f32 %v8757_v54, %v8482_v10  ;;  %v4546_v44 = vmul.f32 %v8757_v54, %v8436_v6 }
 0x61b   :  { %10316 = vst [vmem:[#allocation24_spill] sm:$0xff] %v8957_v52  ;;  %v8973_v61 = vmul.f32 %v8757_v54, %v10317_v16  ;;  %v10319_v52 = vld [vmem:[#allocation120_spill] sm:$0xff]  ;;  %v8993_v16 = vmul.f32 %v8757_v54, %v8388_v39  ;;  %10320 = vst [vmem:[#allocation25_spill] sm:$0xff] %v9005_v28  ;;  %v9013_v39 = vmul.f32 %v8757_v54, %v8426_v58  ;;  %v10329_v6 = vld [vmem:[#allocation49_spill] sm:$0xff] }
 0x61c   :  { %v8981_v22 = vmul.f32 %v8757_v54, %v10319_v52  ;;  %v9001_v52 = vmul.f32 %v8757_v54, %v8403_v18  ;;  %10321 = vst [vmem:[#allocation26_spill] sm:$0xff] %v9009_v37  ;;  %10323 = vst [vmem:[#allocation28_spill] sm:$0xff] %v9017_v48  ;;  %v9021_v18 = vmul.f32 %v8757_v54, %v8489_v60  ;;  %v10326_v37 = vld [vmem:[#allocation47_spill] sm:$0xff] }
 0x61d   :  { %10322 = vst [vmem:[#allocation27_spill] sm:$0xff] %v9013_v39  ;;  %10325 = vst [vmem:[#allocation30_spill] sm:$0xff] %v9025_v32  ;;  %v4547_v28 = vmul.f32 %v8757_v54, %v10326_v37  ;;  %v9033_v58 = vmul.f32 %v8757_v54, %v8503_v55  ;;  %v10327_v10 = vsub.f32 %v8751_v7, %v8754_v19  ;;  %v10328_v32 = vld [vmem:[#allocation122_spill] sm:$0xff]  ;;  %v10330_v37 = vld [vmem:[#allocation119_spill] sm:$0xff] }
 0x61e   :  { %10324 = vst [vmem:[#allocation29_spill] sm:$0xff] %v9021_v18  ;;  %v4548_v35 = vmul.f32 %v8757_v54, %v8451_v49  ;;  %v4549_v18 = vmul.f32 %v8757_v54, %v10328_v32  ;;  %v4550_v48 = vmul.f32 %v8757_v54, %v10329_v6  ;;  %v4551_v39 = vmul.f32 %v8757_v54, %v10330_v37 }
 0x61f   :  { %v9039_v60 = vrot.slane %v10327_v10, %v10280_v42  ;;  %v10332_v32 = vld [vmem:[#allocation21_spill] sm:$0xff] }
 0x620   :  { %v10334_v37 = vld [vmem:[#allocation23_spill] sm:$0xff] }
 0x621   :  { %v9051_v55 = vadd.f32 %v9039_v60, %v8795_v5  ;;  %v9055_v7 = vadd.f32 %v9039_v60, %v8805_v25  ;;  %v9059_v49 = vadd.f32 %v9039_v60, %v8809_v4  ;;  %v9063_v19 = vadd.f32 %v9039_v60, %v8813_v17  ;;  %v10333_v6 = vld [vmem:[#allocation22_spill] sm:$0xff] }
 0x622   :  { %v9067_v42 = vadd.f32 %v9039_v60, %v8817_v3  ;;  %v9071_v5 = vadd.f32 %v9039_v60, %v8821_v20  ;;  %v9075_v54 = vadd.f32 %v9039_v60, %v8825_v24  ;;  %v9079_v25 = vadd.f32 %v9039_v60, %v8829_v15 }
 0x623   :  { %v9083_v4 = vadd.f32 %v9039_v60, %v8833_v8  ;;  %v9087_v17 = vadd.f32 %v9039_v60, %v8837_v27  ;;  %v9091_v3 = vadd.f32 %v9039_v60, %v8841_v50  ;;  %v9095_v20 = vadd.f32 %v9039_v60, %v8845_v12 }
 0x624   :  { %v9099_v24 = vadd.f32 %v9039_v60, %v8849_v63  ;;  %v9103_v15 = vadd.f32 %v9039_v60, %v8853_v57  ;;  %v9107_v8 = vadd.f32 %v9039_v60, %v8857_v36  ;;  %v9111_v27 = vadd.f32 %v9039_v60, %v8861_v30 }
 0x625   :  { %v9115_v50 = vadd.f32 %v9039_v60, %v8865_v13  ;;  %v9119_v12 = vadd.f32 %v9039_v60, %v8869_v2  ;;  %v9123_v63 = vadd.f32 %v9039_v60, %v8873_v21  ;;  %v9127_v57 = vadd.f32 %v9039_v60, %v8877_v33 }
 0x626   :  { %v9131_v36 = vadd.f32 %v9039_v60, %v8881_v41  ;;  %v9135_v30 = vadd.f32 %v9039_v60, %v8885_v11  ;;  %v9139_v13 = vadd.f32 %v9039_v60, %v8889_v23  ;;  %v9143_v2 = vadd.f32 %v9039_v60, %v8893_v9 }
 0x627   :  { %v9147_v21 = vadd.f32 %v9039_v60, %v8897_v34  ;;  %v9151_v33 = vadd.f32 %v9039_v60, %v8901_v53  ;;  %v9155_v41 = vadd.f32 %v9039_v60, %v8905_v43  ;;  %v9159_v11 = vadd.f32 %v9039_v60, %v8909_v0  ;;  %v10331_v53 = vld [vmem:[#allocation20_spill] sm:$0xff] }
 0x628   :  { %v9163_v23 = vadd.f32 %v9039_v60, %v8913_v56  ;;  %v9167_v9 = vadd.f32 %v9039_v60, %v8917_v46  ;;  %v9171_v34 = vadd.f32 %v9039_v60, %v8921_v51  ;;  %v9175_v43 = vadd.f32 %v9039_v60, %v10331_v53 }
 0x629   :  { %v9179_v0 = vadd.f32 %v9039_v60, %v8929_v45  ;;  %v9183_v56 = vadd.f32 %v9039_v60, %v10332_v32  ;;  %v9187_v46 = vadd.f32 %v9039_v60, %v8937_v47  ;;  %v9191_v51 = vadd.f32 %v9039_v60, %v8941_v31  ;;  %v10335_v32 = vld [vmem:[#allocation24_spill] sm:$0xff] }
 0x62a   :  { %v9195_v10 = vadd.f32 %v9039_v60, %v8945_v62  ;;  %v9199_v45 = vadd.f32 %v9039_v60, %v10333_v6  ;;  %v9203_v53 = vadd.f32 %v9039_v60, %v10334_v37  ;;  %v9207_v47 = vadd.f32 %v9039_v60, %v10335_v32 }
 0x62b   :  { %v9211_v31 = vadd.f32 %v9039_v60, %v8961_v59  ;;  %v9215_v62 = vadd.f32 %v9039_v60, %v8965_v38  ;;  %v9219_v6 = vadd.f32 %v9039_v60, %v8969_v26  ;;  %v9223_v37 = vadd.f32 %v9039_v60, %v8973_v61 }
 0x62c   :  { %v9227_v32 = vadd.f32 %v9039_v60, %v8977_v1  ;;  %v9231_v59 = vadd.f32 %v9039_v60, %v8981_v22  ;;  %v9235_v38 = vadd.f32 %v9039_v60, %v8985_v29  ;;  %v9239_v26 = vadd.f32 %v9039_v60, %v8989_v14 }
 0x62d   :  { %10336 = vst [vmem:[#allocation31_spill] sm:$0xff] %v9223_v37  ;;  %v9243_v61 = vadd.f32 %v9039_v60, %v8993_v16  ;;  %v9247_v1 = vadd.f32 %v9039_v60, %v8997_v40  ;;  %v9251_v22 = vadd.f32 %v9039_v60, %v9001_v52  ;;  %v9269_v40 = vadd.f32 %v9039_v60, %v4547_v28  ;;  %v10373_v37 = vld [vmem:[#allocation125_spill] sm:$0xff] }
 0x62e   :  { %10337 = vst [vmem:[#allocation32_spill] sm:$0xff] %v9227_v32  ;;  %10338 = vst [vmem:[#allocation33_spill] sm:$0xff] %v9231_v59  ;;  %v10344_v59 = vld [vmem:[#allocation25_spill] sm:$0xff]  ;;  %v9272_v52 = vadd.f32 %v9039_v60, %v4548_v35 }
 0x62f   :  { %10339 = vst [vmem:[#allocation34_spill] sm:$0xff] %v9235_v38  ;;  %10340 = vst [vmem:[#allocation35_spill] sm:$0xff] %v9239_v26  ;;  %v9255_v29 = vadd.f32 %v9039_v60, %v10344_v59  ;;  %v10346_v38 = vld [vmem:[#allocation26_spill] sm:$0xff]  ;;  %v10348_v26 = vld [vmem:[#allocation27_spill] sm:$0xff]  ;;  %v9275_v59 = vadd.f32 %v9039_v60, %v4549_v18  ;;  %v9297_v18 = vadd.f32 %v9039_v60, %v9033_v58 }
 0x630   :  { %10341 = vst [vmem:[#allocation36_spill] sm:$0xff] %v9243_v61  ;;  %10342 = vst [vmem:[#allocation37_spill] sm:$0xff] %v9247_v1  ;;  %v9259_v14 = vadd.f32 %v9039_v60, %v10346_v38  ;;  %v9263_v16 = vadd.f32 %v9039_v60, %v10348_v26  ;;  %v9266_v61 = vadd.f32 %v9039_v60, %v4546_v44  ;;  %v10356_v26 = vld [vmem:[#allocation28_spill] sm:$0xff]  ;;  %v10358_v44 = vld [vmem:[#allocation29_spill] sm:$0xff] }
 0x631   :  { %10343 = vst [vmem:[#allocation38_spill] sm:$0xff] %v9251_v22  ;;  %10345 = vst [vmem:[#allocation39_spill] sm:$0xff] %v9255_v29  ;;  %v9278_v29 = vadd.f32 %v9039_v60, %v4550_v48  ;;  %v9281_v38 = vadd.f32 %v9039_v60, %v4551_v39  ;;  %v9289_v28 = vadd.f32 %v9039_v60, %v10358_v44  ;;  %v10363_v48 = vld [vmem:[#allocation18_spill] sm:$0xff]  ;;  %v10371_v22 = vld [vmem:[#allocation123_spill] sm:$0xff] }
 0x632   :  { %10347 = vst [vmem:[#allocation40_spill] sm:$0xff] %v9259_v14  ;;  %10349 = vst [vmem:[#allocation41_spill] sm:$0xff] %v9263_v16  ;;  %v9285_v16 = vadd.f32 %v9039_v60, %v10356_v26  ;;  %v4628_v39 = vmul.f32 %v10363_v48, %v9051_v55  ;;  %v4630_v26 = vmul.f32 %v10363_v48, %v9059_v49  ;;  %v10370_v14 = vld [vmem:[#allocation57_spill] sm:$0xff] }
 0x633   :  { %10350 = vst [vmem:[#allocation42_spill] sm:$0xff] %v9266_v61  ;;  %10351 = vst [vmem:[#allocation44_spill] sm:$0xff] %v9269_v40  ;;  %v10360_v40 = vld [vmem:[#allocation30_spill] sm:$0xff]  ;;  %v4631_v44 = vmul.f32 %v10363_v48, %v9063_v19  ;;  %v4634_v58 = vmul.f32 %v10363_v48, %v9075_v54  ;;  %v4636_v55 = vmul.f32 %v10363_v48, %v9083_v4 }
 0x634   :  { %10352 = vst [vmem:[#allocation46_spill] sm:$0xff] %v9272_v52  ;;  %10353 = vst [vmem:[#allocation48_spill] sm:$0xff] %v9275_v59  ;;  %v9293_v35 = vadd.f32 %v9039_v60, %v10360_v40  ;;  %v4632_v40 = vmul.f32 %v10363_v48, %v9067_v42  ;;  %v4635_v60 = vmul.f32 %v10363_v48, %v9079_v25  ;;  %v10368_v59 = vld [vmem:[#allocation55_spill] sm:$0xff] }
 0x635   :  { %10354 = vst [vmem:[#allocation50_spill] sm:$0xff] %v9278_v29  ;;  %10355 = vst [vmem:[#allocation52_spill] sm:$0xff] %v9281_v38  ;;  %v4629_v38 = vmul.f32 %v10363_v48, %v9055_v7  ;;  %v4637_v7 = vmul.f32 %v10363_v48, %v9087_v17  ;;  %v4638_v49 = vmul.f32 %v10363_v48, %v9091_v3  ;;  %v10367_v29 = vld [vmem:[#allocation124_spill] sm:$0xff] }
 0x636   :  { %10357 = vst [vmem:[#allocation54_spill] sm:$0xff] %v9285_v16  ;;  %10359 = vst [vmem:[#allocation56_spill] sm:$0xff] %v9289_v28  ;;  %v4639_v19 = vmul.f32 %v10363_v48, %v9095_v20  ;;  %v4640_v42 = vmul.f32 %v10363_v48, %v9099_v24  ;;  %v4642_v54 = vmul.f32 %v10363_v48, %v9107_v8 }
 0x637   :  { %10361 = vst [vmem:[#allocation58_spill] sm:$0xff] %v9293_v35  ;;  %10362 = vst [vmem:[#allocation60_spill] sm:$0xff] %v9297_v18  ;;  %v4633_v35 = vmul.f32 %v10363_v48, %v9071_v5  ;;  %v4641_v5 = vmul.f32 %v10363_v48, %v9103_v15  ;;  %v4643_v25 = vmul.f32 %v10363_v48, %v9111_v27  ;;  %v10365_v18 = vld [vmem:[#allocation121_spill] sm:$0xff] }
 0x638   :  { %v4644_v4 = vmul.f32 %v10363_v48, %v9115_v50  ;;  %v4645_v17 = vmul.f32 %v10363_v48, %v9119_v12  ;;  %v4646_v3 = vmul.f32 %v10363_v48, %v9123_v63  ;;  %v4647_v20 = vmul.f32 %v10363_v48, %v9127_v57 }
 0x639   :  { %v4648_v24 = vmul.f32 %v10363_v48, %v9131_v36  ;;  %v4649_v15 = vmul.f32 %v10363_v48, %v9135_v30  ;;  %v4650_v8 = vmul.f32 %v10363_v48, %v9139_v13  ;;  %v4651_v27 = vmul.f32 %v10363_v48, %v9143_v2 }
 0x63a   :  { %v4652_v50 = vmul.f32 %v10363_v48, %v9147_v21  ;;  %v4653_v12 = vmul.f32 %v10363_v48, %v9151_v33  ;;  %v4654_v63 = vmul.f32 %v10363_v48, %v9155_v41  ;;  %v4655_v57 = vmul.f32 %v10363_v48, %v9159_v11  ;;  %v10364_v21 = vld [vmem:[#allocation51_spill] sm:$0xff]  ;;  %v10366_v41 = vld [vmem:[#allocation53_spill] sm:$0xff] }
 0x63b   :  { %v4656_v36 = vmul.f32 %v10363_v48, %v9163_v23  ;;  %v4657_v30 = vmul.f32 %v10363_v48, %v9167_v9  ;;  %v4658_v13 = vmul.f32 %v10363_v48, %v9171_v34  ;;  %v4659_v2 = vmul.f32 %v10363_v48, %v9175_v43  ;;  %v10369_v23 = vld [vmem:[#allocation126_spill] sm:$0xff]  ;;  %v10372_v34 = vld [vmem:[#allocation59_spill] sm:$0xff]  ;;  %v10374_v48 = vld [vmem:[#allocation61_spill] sm:$0xff] }
 0x63c   :  { %v4660_v33 = vadd.f32 %v4628_v39, %v10364_v21  ;;  %v4661_v28 = vadd.f32 %v4629_v38, %v10365_v18  ;;  %v4662_v16 = vadd.f32 %v4630_v26, %v10366_v41  ;;  %v4663_v11 = vadd.f32 %v4631_v44, %v10367_v29  ;;  %v10375_v21 = vld [vmem:[#allocation128_spill] sm:$0xff]  ;;  %v10376_v18 = vld [vmem:[#allocation63_spill] sm:$0xff]  ;;  %v10377_v41 = vld [vmem:[#allocation130_spill] sm:$0xff] }
 0x63d   :  { %v4664_v52 = vadd.f32 %v4632_v40, %v10368_v59  ;;  %v4665_v61 = vadd.f32 %v4633_v35, %v10369_v23  ;;  %v4666_v9 = vadd.f32 %v4634_v58, %v10370_v14  ;;  %v4667_v1 = vadd.f32 %v4635_v60, %v10371_v22  ;;  %v10378_v44 = vld [vmem:[#allocation65_spill] sm:$0xff]  ;;  %v10379_v40 = vld [vmem:[#allocation127_spill] sm:$0xff] }
 0x63e   :  { %v4668_v32 = vadd.f32 %v4636_v55, %v10372_v34  ;;  %v4669_v43 = vadd.f32 %v4637_v7, %v10373_v37  ;;  %v4670_v39 = vadd.f32 %v4638_v49, %v10374_v48  ;;  %v4671_v38 = vadd.f32 %v4639_v19, %v10375_v21  ;;  %v10380_v23 = vld [vmem:[#allocation67_spill] sm:$0xff]  ;;  %v10381_v58 = vld [vmem:[#allocation129_spill] sm:$0xff]  ;;  %v10383_v34 = vld [vmem:[#allocation132_spill] sm:$0xff] }
 0x63f   :  { %v4672_v26 = vadd.f32 %v4640_v42, %v10376_v18  ;;  %v4673_v29 = vadd.f32 %v4641_v5, %v10377_v41  ;;  %v4674_v59 = vadd.f32 %v4642_v54, %v10378_v44  ;;  %v4675_v35 = vadd.f32 %v4643_v25, %v10379_v40  ;;  %v10382_v60 = vld [vmem:[#allocation69_spill] sm:$0xff]  ;;  %v10384_v7 = vld [vmem:[#allocation71_spill] sm:$0xff]  ;;  %v10385_v19 = vld [vmem:[#allocation74_spill] sm:$0xff] }
 0x640   :  { %v4676_v14 = vadd.f32 %v4644_v4, %v10380_v23  ;;  %v4677_v22 = vadd.f32 %v4645_v17, %v10381_v58  ;;  %v4678_v55 = vadd.f32 %v4646_v3, %v10382_v60  ;;  %v4679_v37 = vadd.f32 %v4647_v20, %v10383_v34  ;;  %v10386_v42 = vld [vmem:[#allocation131_spill] sm:$0xff]  ;;  %v10387_v54 = vld [vmem:[#allocation92_spill] sm:$0xff]  ;;  %v10388_v25 = vld [vmem:[#allocation133_spill] sm:$0xff] }
 0x641   :  { %v9384_v49 = vadd.f32 %v4648_v24, %v10384_v7  ;;  %v9387_v48 = vadd.f32 %v4649_v15, %v10385_v19  ;;  %v9390_v5 = vadd.f32 %v4650_v8, %v10386_v42  ;;  %v9393_v21 = vadd.f32 %v4651_v27, %v10387_v54  ;;  %v10389_v17 = vld [vmem:[#allocation93_spill] sm:$0xff]  ;;  %v10390_v3 = vld [vmem:[#allocation135_spill] sm:$0xff]  ;;  %v10391_v24 = vld [vmem:[#allocation94_spill] sm:$0xff] }
 0x642   :  { %v9396_v4 = vadd.f32 %v4652_v50, %v10388_v25  ;;  %v9399_v18 = vadd.f32 %v4653_v12, %v10389_v17  ;;  %v9402_v20 = vadd.f32 %v4654_v63, %v10390_v3  ;;  %v9405_v41 = vadd.f32 %v4655_v57, %v10391_v24  ;;  %v10392_v15 = vld [vmem:[#allocation95_spill] sm:$0xff]  ;;  %v10393_v8 = vld [vmem:[#allocation134_spill] sm:$0xff]  ;;  %v10394_v27 = vld [vmem:[#allocation96_spill] sm:$0xff] }
 0x643   :  { %v9408_v44 = vadd.f32 %v4656_v36, %v10392_v15  ;;  %v9411_v40 = vadd.f32 %v4657_v30, %v10393_v8  ;;  %v9414_v23 = vadd.f32 %v4658_v13, %v10394_v27  ;;  %v10395_v50 = vld [vmem:[#allocation136_spill] sm:$0xff]  ;;  %v4692_v12 = vmax.f32 %v4660_v33, 0.0  ;;  %v10400_v24 = vld [vmem:[#allocation34_spill] sm:$0xff]  ;;  %v10405_v27 = vld [vmem:[#allocation39_spill] sm:$0xff] }
 0x644   :  { %v9417_v58 = vadd.f32 %v4659_v2, %v10395_v50  ;;  %v4693_v60 = vmax.f32 %v4661_v28, 0.0  ;;  %v4694_v34 = vmax.f32 %v4662_v16, 0.0  ;;  %v4695_v63 = vmax.f32 %v4663_v11, 0.0  ;;  %v10398_v3 = vld [vmem:[#allocation32_spill] sm:$0xff]  ;;  %v10404_v8 = vld [vmem:[#allocation38_spill] sm:$0xff] }
 0x645   :  { %v4696_v7 = vmax.f32 %v4664_v52, 0.0  ;;  %v4697_v19 = vmax.f32 %v4665_v61, 0.0  ;;  %v4698_v57 = vmax.f32 %v4666_v9, 0.0  ;;  %v4699_v42 = vmax.f32 %v4667_v1, 0.0  ;;  %4724 = vst [vmem:[%s9764_s9] sm:$0xff] %v4692_v12  ;;  %v10402_v15 = vld [vmem:[#allocation36_spill] sm:$0xff]  ;;  %v10407_v12 = vld [vmem:[#allocation41_spill] sm:$0xff] }
 0x646   :  { %v4700_v54 = vmax.f32 %v4668_v32, 0.0  ;;  %v4701_v36 = vmax.f32 %v4669_v43, 0.0  ;;  %v4702_v25 = vmax.f32 %v4670_v39, 0.0  ;;  %v4703_v17 = vmax.f32 %v4671_v38, 0.0  ;;  %4725 = vst [vmem:[%s9764_s9 + $0x8] sm:$0xff] %v4693_v60  ;;  %4726 = vst [vmem:[%s9764_s9 + $0x10] sm:$0xff] %v4694_v34 }
 0x647   :  { %4727 = vst [vmem:[%s9764_s9 + $0x18] sm:$0xff] %v4695_v63  ;;  %v4704_v32 = vmax.f32 %v4672_v26, 0.0  ;;  %v4705_v61 = vmax.f32 %v4673_v29, 0.0  ;;  %v4706_v1 = vmax.f32 %v4674_v59, 0.0  ;;  %v4707_v16 = vmax.f32 %v4675_v35, 0.0  ;;  %4728 = vst [vmem:[%s9764_s9 + $0x20] sm:$0xff] %v4696_v7 }
 0x648   :  { %4729 = vst [vmem:[%s9764_s9 + $0x28] sm:$0xff] %v4697_v19  ;;  %4730 = vst [vmem:[%s9764_s9 + $0x30] sm:$0xff] %v4698_v57  ;;  %v4708_v52 = vmax.f32 %v4676_v14, 0.0  ;;  %v4709_v28 = vmax.f32 %v4677_v22, 0.0  ;;  %v4710_v30 = vmax.f32 %v4678_v55, 0.0  ;;  %v4711_v13 = vmax.f32 %v4679_v37, 0.0 }
 0x649   :  { %4731 = vst [vmem:[%s9764_s9 + $0x38] sm:$0xff] %v4699_v42  ;;  %4732 = vst [vmem:[%s9764_s9 + $0x40] sm:$0xff] %v4700_v54  ;;  %v4712_v2 = vmax.f32 %v9384_v49, 0.0  ;;  %v4713_v33 = vmax.f32 %v9387_v48, 0.0  ;;  %v4714_v11 = vmax.f32 %v9390_v5, 0.0  ;;  %v4715_v9 = vmax.f32 %v9393_v21, 0.0 }
 0x64a   :  { %4733 = vst [vmem:[%s9764_s9 + $0x48] sm:$0xff] %v4701_v36  ;;  %4734 = vst [vmem:[%s9764_s9 + $0x50] sm:$0xff] %v4702_v25  ;;  %v4716_v43 = vmax.f32 %v9396_v4, 0.0  ;;  %v4717_v39 = vmax.f32 %v9399_v18, 0.0  ;;  %v4718_v38 = vmax.f32 %v9402_v20, 0.0  ;;  %v4719_v26 = vmax.f32 %v9405_v41, 0.0 }
 0x64b   :  { %4735 = vst [vmem:[%s9764_s9 + $0x58] sm:$0xff] %v4703_v17  ;;  %4736 = vst [vmem:[%s9764_s9 + $0x60] sm:$0xff] %v4704_v32  ;;  %v4720_v29 = vmax.f32 %v9408_v44, 0.0  ;;  %v4721_v59 = vmax.f32 %v9411_v40, 0.0  ;;  %v4722_v35 = vmax.f32 %v9414_v23, 0.0  ;;  %v4723_v14 = vmax.f32 %v9417_v58, 0.0 }
 0x64c   :  { %4737 = vst [vmem:[%s9764_s9 + $0x68] sm:$0xff] %v4705_v61  ;;  %4738 = vst [vmem:[%s9764_s9 + $0x70] sm:$0xff] %v4706_v1  ;;  %v10396_v22 = vld [vmem:[#allocation19_spill] sm:$0xff]  ;;  %v10399_v20 = vld [vmem:[#allocation33_spill] sm:$0xff] }
 0x64d   :  { %4739 = vst [vmem:[%s9764_s9 + $0x78] sm:$0xff] %v4707_v16  ;;  %4740 = vst [vmem:[%s9764_s9 + $0x80] sm:$0xff] %v4708_v52  ;;  %v4758_v55 = vmul.f32 %v10396_v22, %v9179_v0  ;;  %v4759_v37 = vmul.f32 %v10396_v22, %v9183_v56  ;;  %v4760_v49 = vmul.f32 %v10396_v22, %v9187_v46  ;;  %v10397_v18 = vld [vmem:[#allocation31_spill] sm:$0xff]  ;;  %v10403_v44 = vld [vmem:[#allocation37_spill] sm:$0xff] }
 0x64e   :  { %4741 = vst [vmem:[%s9764_s9 + $0x88] sm:$0xff] %v4709_v28  ;;  %4742 = vst [vmem:[%s9764_s9 + $0x90] sm:$0xff] %v4710_v30  ;;  %v4761_v48 = vmul.f32 %v10396_v22, %v9191_v51  ;;  %v4762_v0 = vmul.f32 %v10396_v22, %v9195_v10  ;;  %v4763_v56 = vmul.f32 %v10396_v22, %v9199_v45  ;;  %v10401_v41 = vld [vmem:[#allocation35_spill] sm:$0xff]  ;;  %v10406_v50 = vld [vmem:[#allocation40_spill] sm:$0xff] }
 0x64f   :  { %4743 = vst [vmem:[%s9764_s9 + $0x98] sm:$0xff] %v4711_v13  ;;  %4744 = vst [vmem:[%s9764_s9 + $0xa0] sm:$0xff] %v4712_v2  ;;  %v4764_v46 = vmul.f32 %v10396_v22, %v9203_v53  ;;  %v4765_v51 = vmul.f32 %v10396_v22, %v9207_v47  ;;  %v4766_v5 = vmul.f32 %v10396_v22, %v9211_v31  ;;  %v10408_v34 = vld [vmem:[#allocation42_spill] sm:$0xff]  ;;  %v10409_v7 = vld [vmem:[#allocation44_spill] sm:$0xff] }
 0x650   :  { %4745 = vst [vmem:[%s9764_s9 + $0xa8] sm:$0xff] %v4713_v33  ;;  %4746 = vst [vmem:[%s9764_s9 + $0xb0] sm:$0xff] %v4714_v11  ;;  %v4767_v21 = vmul.f32 %v10396_v22, %v9215_v62  ;;  %v4768_v4 = vmul.f32 %v10396_v22, %v9219_v6  ;;  %v4769_v10 = vmul.f32 %v10396_v22, %v10397_v18  ;;  %v10410_v57 = vld [vmem:[#allocation46_spill] sm:$0xff]  ;;  %v10411_v54 = vld [vmem:[#allocation48_spill] sm:$0xff] }
 0x651   :  { %4747 = vst [vmem:[%s9764_s9 + $0xb8] sm:$0xff] %v4715_v9  ;;  %4748 = vst [vmem:[%s9764_s9 + $0xc0] sm:$0xff] %v4716_v43  ;;  %v4770_v45 = vmul.f32 %v10396_v22, %v10398_v3  ;;  %v4771_v53 = vmul.f32 %v10396_v22, %v10399_v20  ;;  %v4772_v47 = vmul.f32 %v10396_v22, %v10400_v24  ;;  %v10412_v25 = vld [vmem:[#allocation50_spill] sm:$0xff]  ;;  %v10413_v32 = vld [vmem:[#allocation52_spill] sm:$0xff] }
 0x652   :  { %4749 = vst [vmem:[%s9764_s9 + $0xc8] sm:$0xff] %v4717_v39  ;;  %4750 = vst [vmem:[%s9764_s9 + $0xd0] sm:$0xff] %v4718_v38  ;;  %v4773_v31 = vmul.f32 %v10396_v22, %v10401_v41  ;;  %v4774_v62 = vmul.f32 %v10396_v22, %v10402_v15  ;;  %v4775_v6 = vmul.f32 %v10396_v22, %v10403_v44  ;;  %v10414_v1 = vld [vmem:[#allocation54_spill] sm:$0xff]  ;;  %v10415_v52 = vld [vmem:[#allocation56_spill] sm:$0xff] }
 0x653   :  { %4751 = vst [vmem:[%s9764_s9 + $0xd8] sm:$0xff] %v4719_v26  ;;  %4752 = vst [vmem:[%s9764_s9 + $0xe0] sm:$0xff] %v4720_v29  ;;  %v4776_v40 = vmul.f32 %v10396_v22, %v10404_v8  ;;  %v4777_v23 = vmul.f32 %v10396_v22, %v10405_v27  ;;  %v4778_v58 = vmul.f32 %v10396_v22, %v10406_v50  ;;  %v10416_v30 = vld [vmem:[#allocation58_spill] sm:$0xff]  ;;  %v10417_v2 = vld [vmem:[#allocation60_spill] sm:$0xff] }
 0x654   :  { %4753 = vst [vmem:[%s9764_s9 + $0xe8] sm:$0xff] %v4721_v59  ;;  %4754 = vst [vmem:[%s9764_s9 + $0xf0] sm:$0xff] %v4722_v35  ;;  %v4779_v60 = vmul.f32 %v10396_v22, %v10407_v12  ;;  %v4780_v63 = vmul.f32 %v10396_v22, %v10408_v34  ;;  %v4781_v19 = vmul.f32 %v10396_v22, %v10409_v7  ;;  %v10418_v11 = vld [vmem:[#allocation97_spill] sm:$0xff]  ;;  %v10419_v43 = vld [vmem:[#allocation98_spill] sm:$0xff] }
 0x655   :  { %4755 = vst [vmem:[%s9764_s9 + $0xf8] sm:$0xff] %v4723_v14  ;;  %v4782_v42 = vmul.f32 %v10396_v22, %v10410_v57  ;;  %v4783_v36 = vmul.f32 %v10396_v22, %v10411_v54  ;;  %v4784_v17 = vmul.f32 %v10396_v22, %v10412_v25  ;;  %v4785_v61 = vmul.f32 %v10396_v22, %v10413_v32  ;;  %v10420_v38 = vld [vmem:[#allocation99_spill] sm:$0xff]  ;;  %v10421_v29 = vld [vmem:[#allocation137_spill] sm:$0xff]  ;;  %v10422_v35 = vld [vmem:[#allocation100_spill] sm:$0xff] }
 0x656   :  { %v4786_v16 = vmul.f32 %v10396_v22, %v10414_v1  ;;  %v4787_v28 = vmul.f32 %v10396_v22, %v10415_v52  ;;  %v4788_v13 = vmul.f32 %v10396_v22, %v10416_v30  ;;  %v4789_v33 = vmul.f32 %v10396_v22, %v10417_v2  ;;  %v10423_v18 = vld [vmem:[#allocation138_spill] sm:$0xff]  ;;  %v10424_v20 = vld [vmem:[#allocation101_spill] sm:$0xff]  ;;  %v10426_v44 = vld [vmem:[#allocation103_spill] sm:$0xff] }
 0x657   :  { %v4790_v9 = vadd.f32 %v4758_v55, %v10418_v11  ;;  %v4791_v39 = vadd.f32 %v4759_v37, %v10419_v43  ;;  %v4792_v26 = vadd.f32 %v4760_v49, %v10420_v38  ;;  %v4793_v59 = vadd.f32 %v4761_v48, %v10421_v29  ;;  %v10425_v41 = vld [vmem:[#allocation102_spill] sm:$0xff]  ;;  %v10427_v27 = vld [vmem:[#allocation104_spill] sm:$0xff]  ;;  %v10428_v50 = vld [vmem:[#allocation105_spill] sm:$0xff] }
 0x658   :  { %v4794_v14 = vadd.f32 %v4762_v0, %v10422_v35  ;;  %v4795_v3 = vadd.f32 %v4763_v56, %v10423_v18  ;;  %v4796_v24 = vadd.f32 %v4764_v46, %v10424_v20  ;;  %v4797_v15 = vadd.f32 %v4765_v51, %v10425_v41  ;;  %v10429_v12 = vld [vmem:[#allocation106_spill] sm:$0xff]  ;;  %v10430_v34 = vld [vmem:[#allocation107_spill] sm:$0xff]  ;;  %v10432_v57 = vld [vmem:[#allocation108_spill] sm:$0xff] }
 0x659   :  { %v4798_v8 = vadd.f32 %v4766_v5, %v10426_v44  ;;  %v4799_v22 = vadd.f32 %v4767_v21, %v10427_v27  ;;  %v4800_v55 = vadd.f32 %v4768_v4, %v10428_v50  ;;  %v4801_v37 = vadd.f32 %v4769_v10, %v10429_v12  ;;  %v10431_v7 = vld [vmem:[#allocation139_spill] sm:$0xff]  ;;  %v10433_v54 = vld [vmem:[#allocation140_spill] sm:$0xff]  ;;  %v10434_v25 = vld [vmem:[#allocation109_spill] sm:$0xff] }
 0x65a   :  { %v4802_v49 = vadd.f32 %v4770_v45, %v10430_v34  ;;  %v4803_v48 = vadd.f32 %v4771_v53, %v10431_v7  ;;  %v4804_v0 = vadd.f32 %v4772_v47, %v10432_v57  ;;  %v4805_v56 = vadd.f32 %v4773_v31, %v10433_v54  ;;  %v10435_v32 = vld [vmem:[#allocation110_spill] sm:$0xff]  ;;  %v10436_v1 = vld [vmem:[#allocation111_spill] sm:$0xff]  ;;  %v10437_v52 = vld [vmem:[#allocation112_spill] sm:$0xff] }
 0x65b   :  { %v4806_v46 = vadd.f32 %v4774_v62, %v10434_v25  ;;  %v4807_v51 = vadd.f32 %v4775_v6, %v10435_v32  ;;  %v4808_v5 = vadd.f32 %v4776_v40, %v10436_v1  ;;  %v4809_v21 = vadd.f32 %v4777_v23, %v10437_v52  ;;  %v10438_v30 = vld [vmem:[#allocation6_spill] sm:$0xff]  ;;  %v10439_v10 = vld [vmem:[#allocation7_spill] sm:$0xff]  ;;  %v10440_v45 = vld [vmem:[#allocation8_spill] sm:$0xff] }
 0x65c   :  { %v9612_v4 = vadd.f32 %v4778_v58, %v10438_v30  ;;  %v9615_v2 = vadd.f32 %v4779_v60, %v10439_v10  ;;  %v9618_v53 = vadd.f32 %v4780_v63, %v10440_v45  ;;  %v10441_v47 = vld [vmem:[#allocation9_spill] sm:$0xff]  ;;  %v10442_v31 = vld [vmem:[#allocation10_spill] sm:$0xff]  ;;  %v10443_v6 = vld [vmem:[#allocation11_spill] sm:$0xff]  ;;  %v4823_v41 = vmax.f32 %v4791_v39, 0.0 }
 0x65d   :  { %v9621_v11 = vadd.f32 %v4781_v19, %v10441_v47  ;;  %v9624_v62 = vadd.f32 %v4782_v42, %v10442_v31  ;;  %v9627_v43 = vadd.f32 %v4783_v36, %v10443_v6  ;;  %v10444_v40 = vld [vmem:[#allocation12_spill] sm:$0xff]  ;;  %v10445_v58 = vld [vmem:[#allocation13_spill] sm:$0xff]  ;;  %v10446_v60 = vld [vmem:[#allocation14_spill] sm:$0xff]  ;;  %v4822_v36 = vmax.f32 %v4790_v9, 0.0 }
 0x65e   :  { %v9630_v23 = vadd.f32 %v4784_v17, %v10444_v40  ;;  %v9633_v38 = vadd.f32 %v4785_v61, %v10445_v58  ;;  %v9636_v29 = vadd.f32 %v4786_v16, %v10446_v60  ;;  %v10447_v63 = vld [vmem:[#allocation15_spill] sm:$0xff]  ;;  %v10448_v19 = vld [vmem:[#allocation16_spill] sm:$0xff]  ;;  %v10449_v42 = vld [vmem:[#allocation17_spill] sm:$0xff]  ;;  %v4824_v44 = vmax.f32 %v4792_v26, 0.0  ;;  %4855 = vst [vmem:[%s9764_s9 + $0x108] sm:$0xff] %v4823_v41 }
 0x65f   :  { %v9639_v35 = vadd.f32 %v4787_v28, %v10447_v63  ;;  %v9642_v18 = vadd.f32 %v4788_v13, %v10448_v19  ;;  %v9645_v20 = vadd.f32 %v4789_v33, %v10449_v42  ;;  %v4825_v17 = vmax.f32 %v4793_v59, 0.0  ;;  %4854 = vst [vmem:[%s9764_s9 + $0x100] sm:$0xff] %v4822_v36 }
 0x660   :  { %v4826_v27 = vmax.f32 %v4794_v14, 0.0  ;;  %v4827_v50 = vmax.f32 %v4795_v3, 0.0  ;;  %v4828_v61 = vmax.f32 %v4796_v24, 0.0  ;;  %v4829_v12 = vmax.f32 %v4797_v15, 0.0  ;;  %4856 = vst [vmem:[%s9764_s9 + $0x110] sm:$0xff] %v4824_v44 }
 0x661   :  { %v4830_v34 = vmax.f32 %v4798_v8, 0.0  ;;  %v4831_v16 = vmax.f32 %v4799_v22, 0.0  ;;  %v4832_v7 = vmax.f32 %v4800_v55, 0.0  ;;  %v4833_v57 = vmax.f32 %v4801_v37, 0.0  ;;  %4857 = vst [vmem:[%s9764_s9 + $0x118] sm:$0xff] %v4825_v17 }
 0x662   :  { %v4834_v28 = vmax.f32 %v4802_v49, 0.0  ;;  %v4835_v13 = vmax.f32 %v4803_v48, 0.0  ;;  %v4836_v33 = vmax.f32 %v4804_v0, 0.0  ;;  %v4837_v9 = vmax.f32 %v4805_v56, 0.0  ;;  %4858 = vst [vmem:[%s9764_s9 + $0x120] sm:$0xff] %v4826_v27  ;;  %4859 = vst [vmem:[%s9764_s9 + $0x128] sm:$0xff] %v4827_v50 }
 0x663   :  { %4860 = vst [vmem:[%s9764_s9 + $0x130] sm:$0xff] %v4828_v61  ;;  %4861 = vst [vmem:[%s9764_s9 + $0x138] sm:$0xff] %v4829_v12  ;;  %v4838_v39 = vmax.f32 %v4806_v46, 0.0  ;;  %v4839_v26 = vmax.f32 %v4807_v51, 0.0  ;;  %v4840_v59 = vmax.f32 %v4808_v5, 0.0  ;;  %v4841_v14 = vmax.f32 %v4809_v21, 0.0 }
 0x664   :  { %4862 = vst [vmem:[%s9764_s9 + $0x140] sm:$0xff] %v4830_v34  ;;  %4863 = vst [vmem:[%s9764_s9 + $0x148] sm:$0xff] %v4831_v16  ;;  %v4842_v3 = vmax.f32 %v9612_v4, 0.0  ;;  %v4843_v24 = vmax.f32 %v9615_v2, 0.0  ;;  %v4844_v15 = vmax.f32 %v9618_v53, 0.0  ;;  %v4845_v8 = vmax.f32 %v9621_v11, 0.0 }
 0x665   :  { %4864 = vst [vmem:[%s9764_s9 + $0x150] sm:$0xff] %v4832_v7  ;;  %4865 = vst [vmem:[%s9764_s9 + $0x158] sm:$0xff] %v4833_v57  ;;  %v4846_v22 = vmax.f32 %v9624_v62, 0.0  ;;  %v4847_v55 = vmax.f32 %v9627_v43, 0.0  ;;  %v4848_v37 = vmax.f32 %v9630_v23, 0.0  ;;  %v4849_v49 = vmax.f32 %v9633_v38, 0.0 }
 0x666   :  { %4866 = vst [vmem:[%s9764_s9 + $0x160] sm:$0xff] %v4834_v28  ;;  %4867 = vst [vmem:[%s9764_s9 + $0x168] sm:$0xff] %v4835_v13  ;;  %v4850_v48 = vmax.f32 %v9636_v29, 0.0  ;;  %v4851_v0 = vmax.f32 %v9639_v35, 0.0  ;;  %v4852_v54 = vmax.f32 %v9642_v18, 0.0  ;;  %v4853_v56 = vmax.f32 %v9645_v20, 0.0 }
 0x667   :  { %4868 = vst [vmem:[%s9764_s9 + $0x170] sm:$0xff] %v4836_v33  ;;  %4869 = vst [vmem:[%s9764_s9 + $0x178] sm:$0xff] %v4837_v9 }
 0x668   :  { %4870 = vst [vmem:[%s9764_s9 + $0x180] sm:$0xff] %v4838_v39  ;;  %4871 = vst [vmem:[%s9764_s9 + $0x188] sm:$0xff] %v4839_v26 }
 0x669   :  { %4872 = vst [vmem:[%s9764_s9 + $0x190] sm:$0xff] %v4840_v59  ;;  %4873 = vst [vmem:[%s9764_s9 + $0x198] sm:$0xff] %v4841_v14 }
 0x66a   :  { %4874 = vst [vmem:[%s9764_s9 + $0x1a0] sm:$0xff] %v4842_v3  ;;  %4875 = vst [vmem:[%s9764_s9 + $0x1a8] sm:$0xff] %v4843_v24 }
 0x66b   :  { %4876 = vst [vmem:[%s9764_s9 + $0x1b0] sm:$0xff] %v4844_v15  ;;  %4877 = vst [vmem:[%s9764_s9 + $0x1b8] sm:$0xff] %v4845_v8 }
 0x66c   :  { %4878 = vst [vmem:[%s9764_s9 + $0x1c0] sm:$0xff] %v4846_v22  ;;  %4879 = vst [vmem:[%s9764_s9 + $0x1c8] sm:$0xff] %v4847_v55 }
 0x66d   :  { %4880 = vst [vmem:[%s9764_s9 + $0x1d0] sm:$0xff] %v4848_v37  ;;  %4881 = vst [vmem:[%s9764_s9 + $0x1d8] sm:$0xff] %v4849_v49 }
 0x66e   :  { %4882 = vst [vmem:[%s9764_s9 + $0x1e0] sm:$0xff] %v4850_v48  ;;  %4883 = vst [vmem:[%s9764_s9 + $0x1e8] sm:$0xff] %v4851_v0 }
 0x66f   :  { %4884 = vst [vmem:[%s9764_s9 + $0x1f0] sm:$0xff] %v4852_v54  ;;  %4885 = vst [vmem:[%s9764_s9 + $0x1f8] sm:$0xff] %v4853_v56 }
 0x670   :  { %4890 = vsyncpa [#allocation4], 1 }

</bundles_post_ra>
